<compile_context>
chip_gen: v7x
topology: tpu7x:2x2x1
jax: 0.10.0
libtpu: 0.0.40
codegen_flags: <defaults>
</compile_context>

<pallas_src>
import math

import jax
import jax.numpy as jnp
from jax.experimental import pallas as pl
from jax.experimental.pallas import tpu as pltpu


def _pick_tile(m, pref=256):
    for t in (pref, 512, 256, 128, 64, 32, 16, 8):
        if t <= pref and m % t == 0:
            return t
    return m


# ---------------------------------------------------------------------------
# Pallas kernel 1: cross non-local attention (NonLocalTarget), grid = (n_seq, Mq tiles)
# ---------------------------------------------------------------------------
def nonlocal_cross_attention(xq_seq, kv_bf16, w_theta, w_kv, w_z, tile_m=256):
    """Embedded-Gaussian cross non-local block.

    xq_seq : (n_seq, Mq, C) f32   test features (queries), n_test folded into Mq = n_test*H*W
    kv_bf16: (n_seq, Nkv, C) bf16 ROI-pooled train features (keys/values), pre-cast in wrapper
    w_theta: (C, Ci)   w_kv: (C, 2*Ci) = concat(w_phi, w_g)   w_z: (Ci, C)
    Returns z = W(softmax(theta(q) phi(kv)^T) g(kv)) + xq   (f32 residual kept in f32).
    """
    n_seq, Mq, C = xq_seq.shape
    Nkv = kv_bf16.shape[1]
    Ci = w_theta.shape[1]

    wt_b = w_theta.astype(jnp.bfloat16)
    wkv_b = w_kv.astype(jnp.bfloat16)
    wz_b = w_z.astype(jnp.bfloat16)
    tmq = _pick_tile(Mq, tile_m)

    def kernel(xq_ref, kv_ref, wt_ref, wkv_ref, wz_ref, z_ref):
        xq = xq_ref[0]                                                    # (tmq, C) f32 residual
        q = jnp.dot(xq.astype(jnp.bfloat16), wt_ref[...],
                    preferred_element_type=jnp.float32)                   # (tmq, Ci)
        kvp = jnp.dot(kv_ref[0], wkv_ref[...],
                      preferred_element_type=jnp.float32)                 # (Nkv, 2*Ci)
        k = kvp[:, :Ci].astype(jnp.bfloat16)
        v = kvp[:, Ci:].astype(jnp.bfloat16)
        f = jax.lax.dot_general(q.astype(jnp.bfloat16), k,
                                (((1,), (1,)), ((), ())),
                                preferred_element_type=jnp.float32)       # (tmq, Nkv)
        # f32 softmax (v5e has no bf16 VALU/EUP); denom via EUP approx reciprocal.
        f = f - jnp.max(f, axis=-1, keepdims=True)
        p = jnp.exp(f)
        attn = p * pl.reciprocal(jnp.sum(p, axis=-1, keepdims=True), approx=True)
        y = jnp.dot(attn.astype(jnp.bfloat16), v,
                    preferred_element_type=jnp.float32)                   # (tmq, Ci)
        z_ref[0] = jnp.dot(y.astype(jnp.bfloat16), wz_ref[...],
                           preferred_element_type=jnp.float32) + xq

    return pl.pallas_call(
        kernel,
        out_shape=jax.ShapeDtypeStruct((n_seq, Mq, C), jnp.float32),
        grid=(n_seq, Mq // tmq),
        in_specs=[
            pl.BlockSpec((1, tmq, C), lambda s, m: (s, m, 0)),
            pl.BlockSpec((1, Nkv, C), lambda s, m: (s, 0, 0)),
            pl.BlockSpec((C, Ci), lambda s, m: (0, 0)),
            pl.BlockSpec((C, 2 * Ci), lambda s, m: (0, 0)),
            pl.BlockSpec((Ci, C), lambda s, m: (0, 0)),
        ],
        out_specs=pl.BlockSpec((1, tmq, C), lambda s, m: (s, m, 0)),
        compiler_params=pltpu.CompilerParams(
            dimension_semantics=("parallel", "parallel")),
    )(xq_seq, kv_bf16, wt_b, wkv_b, wz_b)


# ---------------------------------------------------------------------------
# Pallas kernel 2: (M,K)@(K,N) + bias (+ReLU), M tiled over the grid (batch folded into M)
# ---------------------------------------------------------------------------
def matmul_bias_act(x, w, bias=None, relu=False, tile_m=256):
    M, K = x.shape
    N = w.shape[1]
    xb = x.astype(jnp.bfloat16)
    wb = w.astype(jnp.bfloat16)
    b2 = (jnp.zeros((1, N), jnp.float32) if bias is None
          else bias.reshape(1, N).astype(jnp.float32))
    tm = _pick_tile(M, tile_m)

    def kernel(x_ref, w_ref, b_ref, o_ref):
        acc = jnp.dot(x_ref[...], w_ref[...],
                      preferred_element_type=jnp.float32) + b_ref[...]
        if relu:
            acc = jnp.maximum(acc, 0.0)
        o_ref[...] = acc

    return pl.pallas_call(
        kernel,
        out_shape=jax.ShapeDtypeStruct((M, N), jnp.float32),
        grid=(M // tm,),
        in_specs=[
            pl.BlockSpec((tm, K), lambda i: (i, 0)),
            pl.BlockSpec((K, N), lambda i: (0, 0)),
            pl.BlockSpec((1, N), lambda i: (0, 0)),
        ],
        out_specs=pl.BlockSpec((tm, N), lambda i: (i, 0)),
        compiler_params=pltpu.CompilerParams(dimension_semantics=("parallel",)),
    )(xb, wb, b2)


# ---------------------------------------------------------------------------
# Pallas kernel 3: fused DCNv2 (gather-as-matmul + single K=9*C contraction + bias + ReLU)
#                  + final 3x3 conv channel contraction (per-tap contributions, lane-dense)
# ---------------------------------------------------------------------------
def dcn_head_fused(h1_bf16, idx, wgt, col_ids, w_dcn_flat, b_dcn, w_final_r):
    """h1_bf16:(B,HW,C) bf16; idx/wgt:(B,HW,36) corner indices & combined weights
       (bilinear * in-bounds * valid * modulation mask);
       col_ids:(HW,HW) int32 resident iota; w_dcn_flat:(9*C,Cout) bf16 (tap-major, C within);
       b_dcn:(1,Cout); w_final_r:(Cout,NT) bf16 (final conv weight per tap, padded to 128 lanes).
       Returns per-pixel per-tap contributions of the final conv: (B, HW, NT) f32."""
    B, HW, C = h1_bf16.shape
    Cout = b_dcn.shape[1]
    NT = w_final_r.shape[1]

    def kernel(h1_ref, idx_ref, wgt_ref, cid_ref, wd_ref, b_ref, wf_ref, t_ref):
        h1 = h1_ref[0]                                                    # (HW, C) bf16
        idxm = idx_ref[0]                                                 # (HW, 36) i32
        wgtm = wgt_ref[0]                                                 # (HW, 36) f32
        col_ids = cid_ref[...]                                            # (HW, HW) i32 resident

        def tap_sampling_matrix(k):
            # Sparse sampling matrix for tap k, built in one streamed expression
            # (no zeros init / RMW chain), f32 selects, single cast to bf16 for the MXU.
            c0 = 4 * k
            s = (jnp.where(col_ids == idxm[:, c0 + 0:c0 + 1], wgtm[:, c0 + 0:c0 + 1], 0.0)
                 + jnp.where(col_ids == idxm[:, c0 + 1:c0 + 2], wgtm[:, c0 + 1:c0 + 2], 0.0)
                 + jnp.where(col_ids == idxm[:, c0 + 2:c0 + 3], wgtm[:, c0 + 2:c0 + 3], 0.0)
                 + jnp.where(col_ids == idxm[:, c0 + 3:c0 + 4], wgtm[:, c0 + 3:c0 + 4], 0.0))
            return s.astype(jnp.bfloat16)
            # TODO(synk): pltpu.roll-based one-hot derivation (1 compare + 3 XLU rolls per tap)
            # would shave more VALU work but needs unclipped mod-HW indices; kept the safe form.

        # Gather-first: G_k = S_k @ h1 (lane-dense N=C), concatenated along K, then one
        # K = 9*C contraction against the natural DCN weight layout.
        g_cat = jnp.concatenate(
            [jnp.dot(tap_sampling_matrix(k), h1,
                     preferred_element_type=jnp.float32).astype(jnp.bfloat16)
             for k in range(9)], axis=-1)                                 # (HW, 9*C) bf16
        acc = jnp.dot(g_cat, wd_ref[...],
                      preferred_element_type=jnp.float32)                 # (HW, Cout)
        h2 = jnp.maximum(acc + b_ref[...], 0.0)                           # DCN bias + ReLU
        t_ref[0] = jnp.dot(h2.astype(jnp.bfloat16), wf_ref[...],
                           preferred_element_type=jnp.float32)            # (HW, NT) lane-dense

    return pl.pallas_call(
        kernel,
        out_shape=jax.ShapeDtypeStruct((B, HW, NT), jnp.float32),
        grid=(B,),
        in_specs=[
            pl.BlockSpec((1, HW, C), lambda b: (b, 0, 0)),
            pl.BlockSpec((1, HW, 36), lambda b: (b, 0, 0)),
            pl.BlockSpec((1, HW, 36), lambda b: (b, 0, 0)),
            pl.BlockSpec((HW, HW), lambda b: (0, 0)),
            pl.BlockSpec((9 * C, Cout), lambda b: (0, 0)),
            pl.BlockSpec((1, Cout), lambda b: (0, 0)),
            pl.BlockSpec((Cout, NT), lambda b: (0, 0)),
        ],
        out_specs=pl.BlockSpec((1, HW, NT), lambda b: (b, 0, 0)),
        compiler_params=pltpu.CompilerParams(dimension_semantics=("parallel",)),
    )(h1_bf16, idx, wgt, col_ids, w_dcn_flat, b_dcn, w_final_r)


# ---------------------------------------------------------------------------
# JAX glue: im2col for 3x3/stride-1/pad-1 convs (patch extraction only; matmul in Pallas)
# TODO(synk): could be folded into the conv kernel (shifted-tap matmuls) to avoid the 9x
# activation expansion, but the in-kernel sublane-offset slices/reshapes are lowering-fragile.
# ---------------------------------------------------------------------------
def im2col_3x3(x_nhwc):
    B, H, W, C = x_nhwc.shape
    xp = jnp.pad(x_nhwc, ((0, 0), (1, 1), (1, 1), (0, 0)))
    cols = [xp[:, dy:dy + H, dx:dx + W, :] for dy in range(3) for dx in range(3)]
    return jnp.concatenate(cols, axis=-1).reshape(B * H * W, 9 * C)


# ---------------------------------------------------------------------------
# JAX glue: PrRoIPool2D (FilterPool) — exact closed-form integral of the bilinear interpolant
# ---------------------------------------------------------------------------
def prroi_pool_nhwc(feat, rois, pooled_h, pooled_w, spatial_scale):
    """feat: (B,H,W,C); rois: (R,5) = (batch_idx, x1, y1, x2, y2) in image coords."""
    B, H, W, C = feat.shape
    bidx = rois[:, 0].astype(jnp.int32)
    x1 = rois[:, 1] * spatial_scale
    y1 = rois[:, 2] * spatial_scale
    x2 = rois[:, 3] * spatial_scale
    y2 = rois[:, 4] * spatial_scale
    bin_w = jnp.maximum(x2 - x1, 0.0) / pooled_w
    bin_h = jnp.maximum(y2 - y1, 0.0) / pooled_h

    def tri_int(u):
        u = jnp.clip(u, -1.0, 1.0)
        return jnp.where(u <= 0.0, 0.5 * (u + 1.0) ** 2, 1.0 - 0.5 * (1.0 - u) ** 2)

    pw = jnp.arange(pooled_w, dtype=jnp.float32)
    ph = jnp.arange(pooled_h, dtype=jnp.float32)
    wx_lo = x1[:, None] + pw[None, :] * bin_w[:, None]
    wx_hi = wx_lo + bin_w[:, None]
    wy_lo = y1[:, None] + ph[None, :] * bin_h[:, None]
    wy_hi = wy_lo + bin_h[:, None]
    gx = jnp.arange(W, dtype=jnp.float32)
    gy = jnp.arange(H, dtype=jnp.float32)
    Ix = tri_int(wx_hi[:, :, None] - gx) - tri_int(wx_lo[:, :, None] - gx)   # (R, PW, W)
    Iy = tri_int(wy_hi[:, :, None] - gy) - tri_int(wy_lo[:, :, None] - gy)   # (R, PH, H)
    feat_r = feat[bidx]                                                      # (R, H, W, C)
    integral = jnp.einsum('rhwc,rph,rqw->rpqc', feat_r, Iy, Ix)
    area = (bin_w * bin_h)[:, None, None, None]
    return jnp.where(area > 0.0, integral / jnp.maximum(area, 1e-12), 0.0)


# ---------------------------------------------------------------------------
# JAX glue: DCNv2 sampling corner indices + combined bilinear/valid/mask weights
# TODO(synk): could be fused into dcn_head_fused (pass raw om block) to kill ~40 small XLA ops;
# kept in XLA glue because the in-kernel per-tap column math is lane-sparse on TPU.
# ---------------------------------------------------------------------------
def dcn_sample_indices_weights(offset, mask, H, W):
    """offset: (B,H,W,18) [per tap k: dy=2k, dx=2k+1]; mask: (B,H,W,9) post-sigmoid.
    Returns idx (B,H*W,36) int32 flat corner indices and wgt (B,H*W,36) f32 weights
    (tap-major, 4 bilinear corners per tap)."""
    # TODO(synk): offset channel layout assumed dy=2k / dx=2k+1 (DCNv2 cat(o1,o2) convention);
    # only matters when loading trained weights.
    B = offset.shape[0]
    hh = jnp.arange(H, dtype=jnp.float32)[None, :, None]
    ww = jnp.arange(W, dtype=jnp.float32)[None, None, :]
    idx_all, wgt_all = [], []
    for k in range(9):
        ki, kj = k // 3, k % 3
        sy = hh - 1.0 + ki + offset[..., 2 * k]
        sx = ww - 1.0 + kj + offset[..., 2 * k + 1]
        valid = (sy > -1.0) & (sy < H) & (sx > -1.0) & (sx < W)
        y0 = jnp.floor(sy)
        x0 = jnp.floor(sx)
        for oy, ox in ((0, 0), (0, 1), (1, 0), (1, 1)):
            yc = y0 + oy
            xc = x0 + ox
            wb = (1.0 - jnp.abs(sy - yc)) * (1.0 - jnp.abs(sx - xc))
            inb = (yc >= 0) & (yc <= H - 1) & (xc >= 0) & (xc <= W - 1)
            yi = jnp.clip(yc, 0, H - 1).astype(jnp.int32)
            xi = jnp.clip(xc, 0, W - 1).astype(jnp.int32)
            idx_all.append(yi * W + xi)
            wgt_all.append(wb * inb * valid * mask[..., k])
    idx = jnp.stack(idx_all, axis=-1).reshape(B, H * W, 36)
    wgt = jnp.stack(wgt_all, axis=-1).astype(jnp.float32).reshape(B, H * W, 36)
    return idx, wgt


# ---------------------------------------------------------------------------
# Parameters (deterministic, mimicking the module's __init__ re-initialization)
# ---------------------------------------------------------------------------
def init_params(key, C=256, Ci=256):
    ks = jax.random.split(key, 8)

    def conv_normal(k, kh, kw, cin, cout):
        std = math.sqrt(2.0 / (kh * kw * cout))
        return std * jax.random.normal(k, (kh, kw, cin, cout), jnp.float32)

    p = {}
    # NonLocalTarget 1x1 convs (biases exist but are zero-initialized -> omitted)
    p["w_theta"] = conv_normal(ks[0], 1, 1, C, Ci).reshape(C, Ci)
    p["w_phi"] = conv_normal(ks[1], 1, 1, C, Ci).reshape(C, Ci)
    p["w_g"] = conv_normal(ks[2], 1, 1, C, Ci).reshape(C, Ci)
    p["w_z"] = conv_normal(ks[3], 1, 1, Ci, C).reshape(Ci, C)
    # head
    p["w_head1"] = conv_normal(ks[4], 3, 3, C, C)            # Conv2d(256,256,3,1,1,bias=False)
    p["w_offset_mask"] = conv_normal(ks[5], 3, 3, C, 27)     # DCN.conv_offset_mask
    p["b_offset_mask"] = jnp.zeros((27,), jnp.float32)
    stdv = 1.0 / math.sqrt(C * 3 * 3)                        # DCN main weight: DCNv2 default init
    p["w_dcn"] = jax.random.uniform(ks[6], (3, 3, C, 64), jnp.float32, -stdv, stdv)
    p["b_dcn"] = jnp.zeros((64,), jnp.float32)
    p["w_final"] = conv_normal(ks[7], 3, 3, 64, 1)           # Conv2d(64,1,3,1,1,bias=False)
    return p


# ---------------------------------------------------------------------------
# Full forward (mirrors NonlocalClassifier.forward / regress)
# ---------------------------------------------------------------------------
def nonlocal_classifier_forward(train_feat, test_feat, train_bb, params,
                                filter_size=4, feature_stride=4):
    assert train_bb.ndim == 3
    num_sequences = train_bb.shape[1]
    if train_feat.ndim == 5:
        train_feat = train_feat.reshape(-1, *train_feat.shape[-3:])
    if test_feat.ndim == 5:
        test_feat = test_feat.reshape(-1, *test_feat.shape[-3:])
    # TODO(synk): the reference passes an external backbone head (feature_extractor); not
    # specified here -> identity.

    C = train_feat.shape[1]
    H, W = test_feat.shape[-2], test_feat.shape[-1]
    n_train = train_feat.shape[0] // num_sequences
    n_test = test_feat.shape[0] // num_sequences

    train_nhwc = jnp.transpose(train_feat, (0, 2, 3, 1))
    test_nhwc = jnp.transpose(test_feat, (0, 2, 3, 1))

    # ---- FilterPool (PrRoIPool2D, spatial_scale = 1/feature_stride, pool_square=False) ----
    bb = train_bb.reshape(-1, 4)
    batch_index = jnp.arange(bb.shape[0], dtype=jnp.float32)[:, None]
    rois = jnp.concatenate([batch_index, bb[:, :2], bb[:, :2] + bb[:, 2:]], axis=1)
    feat_pool = prroi_pool_nhwc(train_nhwc, rois, filter_size, filter_size,
                                1.0 / feature_stride)        # (n_train*n_seq, fs, fs, C)

    # ---- NonLocalTarget: cross non-local attention (Pallas), n_test folded into M ----
    fp = feat_pool.reshape(n_train, num_sequences, filter_size, filter_size, C)
    kv = jnp.transpose(fp, (1, 0, 2, 3, 4)).reshape(
        num_sequences, n_train * filter_size * filter_size, C)
    xq = test_nhwc.reshape(n_test, num_sequences, H * W, C)
    xq_seq = jnp.transpose(xq, (1, 0, 2, 3)).reshape(num_sequences, n_test * H * W, C)
    w_kv = jnp.concatenate([params["w_phi"], params["w_g"]], axis=1)
    z = nonlocal_cross_attention(xq_seq, kv.astype(jnp.bfloat16),
                                 params["w_theta"], w_kv, params["w_z"])
    z = z.reshape(num_sequences, n_test, H * W, C)
    feat_nonlocal = jnp.transpose(z, (1, 0, 2, 3)).reshape(n_test * num_sequences, H, W, C)
    Bimg = n_test * num_sequences

    # ---- head conv1: Conv3x3(256,256,bias=False) + ReLU (Pallas matmul on im2col patches) ----
    w1 = params["w_head1"].reshape(9 * C, C)
    h1_flat = matmul_bias_act(im2col_3x3(feat_nonlocal.astype(jnp.bfloat16)), w1,
                              relu=True)                                   # (Bimg*H*W, C)
    h1_img = h1_flat.reshape(Bimg, H, W, C)

    # ---- DCN offset/mask conv (Pallas matmul, output channels padded 27 -> 128, lane-dense) ----
    N_OM = 128
    w_om = jnp.pad(params["w_offset_mask"].reshape(9 * C, 27), ((0, 0), (0, N_OM - 27)))
    b_om = jnp.pad(params["b_offset_mask"], (0, N_OM - 27))
    om = matmul_bias_act(im2col_3x3(h1_img.astype(jnp.bfloat16)), w_om, b_om)
    om = om.reshape(Bimg, H, W, N_OM)
    offset = om[..., :18]
    mask = jax.nn.sigmoid(om[..., 18:27])

    # ---- DCNv2 sampling prep (glue) + fused gather/contraction/ReLU/final-conv taps (Pallas) ----
    idx, wgt = dcn_sample_indices_weights(offset, mask, H, W)
    col_ids = jax.lax.broadcasted_iota(jnp.int32, (H * W, H * W), 1)       # resident in kernel
    w_dcn_flat = params["w_dcn"].reshape(9 * C, 64).astype(jnp.bfloat16)   # tap-major, C within
    NT = 128                                                               # lane-dense per-tap out
    w_final_r = jnp.pad(params["w_final"][..., 0].transpose(2, 0, 1).reshape(64, 9),
                        ((0, 0), (0, NT - 9))).astype(jnp.bfloat16)        # (64, 128)
    tap_maps = dcn_head_fused(
        h1_flat.reshape(Bimg, H * W, C).astype(jnp.bfloat16),
        idx, wgt, col_ids, w_dcn_flat,
        params["b_dcn"].reshape(1, 64), w_final_r)                         # (Bimg, H*W, 128)

    # ---- final 3x3 conv = 9-tap shifted sum of the per-tap contributions (glue, tiny) ----
    tap_maps = tap_maps.reshape(Bimg, H, W, NT)[..., :9]
    t_pad = jnp.pad(tap_maps, ((0, 0), (1, 1), (1, 1), (0, 0)))
    scores = jnp.zeros((Bimg, H, W), jnp.float32)
    for dy in range(3):
        for dx in range(3):
            scores = scores + t_pad[:, dy:dy + H, dx:dx + W, 3 * dy + dx]

    offset_maps = scores.reshape(n_test, num_sequences, H, W)
    feat_nonlocal_nchw = jnp.transpose(feat_nonlocal, (0, 3, 1, 2))        # back to NCHW
    return offset_maps, feat_nonlocal_nchw


# ---------------------------------------------------------------------------
if __name__ == "__main__":
    key = jax.random.PRNGKey(0)
    k_tr, k_te, k_xy, k_wh, k_par = jax.random.split(key, 5)

    n_train, n_test, n_seq = 2, 2, 2
    C, H, W = 256, 16, 16          # NonLocalTarget / head hard-code 256 channels
    filter_size, feature_stride = 4, 4

    train_feat = jax.random.normal(k_tr, (n_train, n_seq, C, H, W), jnp.float32)
    test_feat = jax.random.normal(k_te, (n_test, n_seq, C, H, W), jnp.float32)
    # target boxes (x, y, w, h) in image coordinates (image ~ 64x64 at stride 4)
    xy = jax.random.uniform(k_xy, (n_train, n_seq, 2), jnp.float32, 6.0, 24.0)
    wh = jax.random.uniform(k_wh, (n_train, n_seq, 2), jnp.float32, 16.0, 32.0)
    train_bb = jnp.concatenate([xy, wh], axis=-1)

    params = init_params(k_par, C=C, Ci=C)

    offset_maps, feat_nonlocal = nonlocal_classifier_forward(
        train_feat, test_feat, train_bb, params,
        filter_size=filter_size, feature_stride=feature_stride)
    jax.block_until_ready((offset_maps, feat_nonlocal))

    assert offset_maps.shape == (n_test, n_seq, H, W)
    assert feat_nonlocal.shape == (n_test * n_seq, C, H, W)
    print("KERNEL_OK")
</pallas_src>

<mosaic_0001>
module attributes {stable_mosaic.version = 11 : i64} {
  func.func @kernel(%arg0: i32, %arg1: i32, %arg2: memref<1x256x256xf32, #tpu.memory_space<vmem>>, %arg3: memref<1x32x256xbf16, #tpu.memory_space<vmem>>, %arg4: memref<256x256xbf16, #tpu.memory_space<vmem>>, %arg5: memref<256x512xbf16, #tpu.memory_space<vmem>>, %arg6: memref<256x256xbf16, #tpu.memory_space<vmem>>, %arg7: memref<1x256x256xf32, #tpu.memory_space<vmem>>) attributes {dimension_semantics = [#tpu.dimension_semantics<parallel>, #tpu.dimension_semantics<parallel>], iteration_bounds = array<i64: 2, 2>, scalar_prefetch = 0 : i64, scratch_operands = 0 : i64, tpu.core_type = #tpu.core_type<tc>, window_params = [{transform_indices = @transform_0, window_bounds = array<i64: 1, 256, 256>}, {transform_indices = @transform_1, window_bounds = array<i64: 1, 32, 256>}, {pipeline_mode = #tpu.pipeline_mode<synchronous>, transform_indices = @transform_2, window_bounds = array<i64: 256, 256>}, {pipeline_mode = #tpu.pipeline_mode<synchronous>, transform_indices = @transform_3, window_bounds = array<i64: 256, 512>}, {pipeline_mode = #tpu.pipeline_mode<synchronous>, transform_indices = @transform_4, window_bounds = array<i64: 256, 256>}, {transform_indices = @transform_5, window_bounds = array<i64: 1, 256, 256>}]} {
    %c0 = arith.constant 0 : index
    %c0_0 = arith.constant 0 : index
    %c0_1 = arith.constant 0 : index
    %0 = vector.load %arg2[%c0, %c0_0, %c0_1] : memref<1x256x256xf32, #tpu.memory_space<vmem>>, vector<1x256x256xf32>
    %1 = vector.shape_cast %0 : vector<1x256x256xf32> to vector<256x256xf32>
    %2 = arith.truncf %1 : vector<256x256xf32> to vector<256x256xbf16>
    %c0_2 = arith.constant 0 : index
    %c0_3 = arith.constant 0 : index
    %3 = vector.load %arg4[%c0_2, %c0_3] : memref<256x256xbf16, #tpu.memory_space<vmem>>, vector<256x256xbf16>
    %cst = arith.constant dense<0.000000e+00> : vector<256x256xf32>
    %4 = tpu.matmul %2, %3, %cst {dimension_numbers = #tpu.dot_dimension_numbers<[1], [0], [0], [1], [0, 0, 1, 1], [], []>} : vector<256x256xbf16>, vector<256x256xbf16>, vector<256x256xf32> -> vector<256x256xf32>
    %c0_4 = arith.constant 0 : index
    %c0_5 = arith.constant 0 : index
    %c0_6 = arith.constant 0 : index
    %5 = vector.load %arg3[%c0_4, %c0_5, %c0_6] : memref<1x32x256xbf16, #tpu.memory_space<vmem>>, vector<1x32x256xbf16>
    %6 = vector.shape_cast %5 : vector<1x32x256xbf16> to vector<32x256xbf16>
    %c0_7 = arith.constant 0 : index
    %c0_8 = arith.constant 0 : index
    %7 = vector.load %arg5[%c0_7, %c0_8] : memref<256x512xbf16, #tpu.memory_space<vmem>>, vector<256x512xbf16>
    %cst_9 = arith.constant dense<0.000000e+00> : vector<32x512xf32>
    %8 = tpu.matmul %6, %7, %cst_9 {dimension_numbers = #tpu.dot_dimension_numbers<[1], [0], [0], [1], [0, 0, 1, 1], [], []>} : vector<32x256xbf16>, vector<256x512xbf16>, vector<32x512xf32> -> vector<32x512xf32>
    %9 = vector.extract_strided_slice %8 {offsets = [0, 0], sizes = [32, 256], strides = [1, 1]} : vector<32x512xf32> to vector<32x256xf32>
    %10 = arith.truncf %9 : vector<32x256xf32> to vector<32x256xbf16>
    %11 = vector.extract_strided_slice %8 {offsets = [0, 256], sizes = [32, 256], strides = [1, 1]} : vector<32x512xf32> to vector<32x256xf32>
    %12 = arith.truncf %11 : vector<32x256xf32> to vector<32x256xbf16>
    %13 = arith.truncf %4 : vector<256x256xf32> to vector<256x256xbf16>
    %cst_10 = arith.constant dense<0.000000e+00> : vector<256x32xf32>
    %14 = tpu.matmul %13, %10, %cst_10 {dimension_numbers = #tpu.dot_dimension_numbers<[1], [1], [0], [0], [0, 0, 1, 0], [], []>} : vector<256x256xbf16>, vector<32x256xbf16>, vector<256x32xf32> -> vector<256x32xf32>
    %cst_11 = arith.constant dense<0xFF800000> : vector<256xf32>
    %15 = vector.multi_reduction <maximumf>, %14, %cst_11 [1] : vector<256x32xf32> to vector<256xf32>
    %16 = vector.shape_cast %15 : vector<256xf32> to vector<256x1xf32>
    %17 = vector.broadcast %16 : vector<256x1xf32> to vector<256x32xf32>
    %18 = arith.subf %14, %17 : vector<256x32xf32>
    %19 = math.exp %18 : vector<256x32xf32>
    %cst_12 = arith.constant dense<0.000000e+00> : vector<256xf32>
    %20 = vector.multi_reduction <add>, %19, %cst_12 [1] : vector<256x32xf32> to vector<256xf32>
    %21 = vector.shape_cast %20 : vector<256xf32> to vector<256x1xf32>
    %22 = tpu.reciprocal %21 {approx = true} : vector<256x1xf32> -> vector<256x1xf32>
    %23 = vector.broadcast %22 : vector<256x1xf32> to vector<256x32xf32>
    %24 = arith.mulf %19, %23 : vector<256x32xf32>
    %25 = arith.truncf %24 : vector<256x32xf32> to vector<256x32xbf16>
    %cst_13 = arith.constant dense<0.000000e+00> : vector<256x256xf32>
    %26 = tpu.matmul %25, %12, %cst_13 {dimension_numbers = #tpu.dot_dimension_numbers<[1], [0], [0], [1], [0, 0, 1, 1], [], []>} : vector<256x32xbf16>, vector<32x256xbf16>, vector<256x256xf32> -> vector<256x256xf32>
    %27 = arith.truncf %26 : vector<256x256xf32> to vector<256x256xbf16>
    %c0_14 = arith.constant 0 : index
    %c0_15 = arith.constant 0 : index
    %28 = vector.load %arg6[%c0_14, %c0_15] : memref<256x256xbf16, #tpu.memory_space<vmem>>, vector<256x256xbf16>
    %cst_16 = arith.constant dense<0.000000e+00> : vector<256x256xf32>
    %29 = tpu.matmul %27, %28, %cst_16 {dimension_numbers = #tpu.dot_dimension_numbers<[1], [0], [0], [1], [0, 0, 1, 1], [], []>} : vector<256x256xbf16>, vector<256x256xbf16>, vector<256x256xf32> -> vector<256x256xf32>
    %30 = arith.addf %29, %1 : vector<256x256xf32>
    %c0_17 = arith.constant 0 : index
    %c0_18 = arith.constant 0 : index
    %c0_19 = arith.constant 0 : index
    %31 = vector.load %arg7[%c0_17, %c0_18, %c0_19] : memref<1x256x256xf32, #tpu.memory_space<vmem>>, vector<1x256x256xf32>
    %32 = vector.shape_cast %31 : vector<1x256x256xf32> to vector<256x256xf32>
    %33 = vector.shape_cast %30 : vector<256x256xf32> to vector<1x256x256xf32>
    tpu.vector_store %arg7[%c0_17, %c0_18, %c0_19], %33 {strides = array<i32>} : memref<1x256x256xf32, #tpu.memory_space<vmem>>, vector<1x256x256xf32>,
    return
  }
  func.func @transform_0(%arg0: i32, %arg1: i32) -> (i32, i32, i32) {
    %c0_i32 = arith.constant 0 : i32
    %c0_i32_0 = arith.constant 0 : i32
    return %arg0, %arg1, %c0_i32 : i32, i32, i32
  }
  func.func @transform_1(%arg0: i32, %arg1: i32) -> (i32, i32, i32) {
    %c0_i32 = arith.constant 0 : i32
    %c0_i32_0 = arith.constant 0 : i32
    %c0_i32_1 = arith.constant 0 : i32
    return %arg0, %c0_i32, %c0_i32_0 : i32, i32, i32
  }
  func.func @transform_2(%arg0: i32, %arg1: i32) -> (i32, i32) {
    %c0_i32 = arith.constant 0 : i32
    %c0_i32_0 = arith.constant 0 : i32
    %c0_i32_1 = arith.constant 0 : i32
    return %c0_i32, %c0_i32_0 : i32, i32
  }
  func.func @transform_3(%arg0: i32, %arg1: i32) -> (i32, i32) {
    %c0_i32 = arith.constant 0 : i32
    %c0_i32_0 = arith.constant 0 : i32
    %c0_i32_1 = arith.constant 0 : i32
    return %c0_i32, %c0_i32_0 : i32, i32
  }
  func.func @transform_4(%arg0: i32, %arg1: i32) -> (i32, i32) {
    %c0_i32 = arith.constant 0 : i32
    %c0_i32_0 = arith.constant 0 : i32
    %c0_i32_1 = arith.constant 0 : i32
    return %c0_i32, %c0_i32_0 : i32, i32
  }
  func.func @transform_5(%arg0: i32, %arg1: i32) -> (i32, i32, i32) {
    %c0_i32 = arith.constant 0 : i32
    %c0_i32_0 = arith.constant 0 : i32
    return %arg0, %arg1, %c0_i32 : i32, i32, i32
  }
}

</mosaic_0001>

<bundles_post_ra>
// kernel: tpu_custom_call.1
= control target key start
LH: loop header
LB: loop body
LE: loop exit
PB: predicated region body
PF: predicated region fallthrough
CT: control target
= control target key end

     0   :  { %s5076_s0 = inlined_call_operand.hbm [shape: f32[2,512,256], index: 0, kind: input, shape index: {}]   ;;  %s5077_s1 = inlined_call_operand.hbm [shape: bf16[2,32,256], index: 1, kind: input, shape index: {}]   ;;  %s5078_s2 = inlined_call_operand.hbm [shape: bf16[256,256], index: 2, kind: input, shape index: {}]   ;;  %s5079_s3 = inlined_call_operand.hbm [shape: bf16[256,512], index: 3, kind: input, shape index: {}]   ;;  %s5080_s4 = inlined_call_operand.hbm [shape: bf16[256,256], index: 4, kind: input, shape index: {}]   ;;  %s5081_s5 = inlined_call_operand.hbm [shape: f32[2,512,256], index: 5, kind: output, shape index: {}]  }
   0x1   :  { %5119 = sst [smem:[#allocation41_spill]] %s5078_s2 }
   0x2   :  { %5120 = sst [smem:[#allocation42_spill]] %s5079_s3 }
   0x3   :  { %5121 = sst [smem:[#allocation43_spill]] %s5080_s4 }
   0x4   :  { %5122 = sst [smem:[#allocation44_spill]] %s5081_s5 }
   0x5   :  { %10 = vsyncpa [#allocation3], 0 }
   0x6   :  { %12 = vsyncpa [#allocation3 + $0x1], 0 }
   0x7   :  { %13 = vsyncpa [#allocation6], 0 }
   0x8   :  { %15 = vsyncpa [#allocation6 + $0x1], 0 }
   0x9   :  { %16 = vsyncpa [#allocation9], 0 }
   0xa   :  { %17 = vsyncpa [#allocation4], 0 }
   0xb   :  { %19 = vsyncpa [#allocation4 + $0x1], 0  ;;  %s3831_s18 = smov 0   ;;  %s3833_s19 = smov 0  }
   0xc   :  { %s3835_s20 = smov 0   ;;  %s3837_s21 = smov 0  }
   0xd   :  { %s3839_s22 = smov 0   ;;  %s3841_s23 = smov 0  }
   0xe   :  { %s3843_s24 = smov 0   ;;  %s3845_s25 = smov 0  }
   0xf   :  { %s3847_s26 = smov 0   ;;  %s3849_s27 = smov 0  }
  0x10   :  { %s3851_s28 = smov 0  }
  0x11 LB: > { %5123 = sst [smem:[#allocation17_spill]] %s3758_s21  ;;  %s3885_s29 = sadd.s32 4294967295, %s3786_s28   ;;  %s3786_s28 = sphi %s3851_s28, %s25_s28   ;;  %s3782_s27 = sphi %s3849_s27, %s5240_s27   ;;  %s3778_s26 = sphi %s3847_s26, %s5239_s26   ;;  %s3774_s25 = sphi %s3845_s25, %s5238_s25   ;;  %s3770_s24 = sphi %s3843_s24, %s5237_s24   ;;  %s3766_s23 = sphi %s3841_s23, %s5236_s23   ;;  %s3762_s22 = sphi %s3839_s22, %s5235_s22   ;;  %s3758_s21 = sphi %s3837_s21, %s5234_s21   ;;  %s3754_s20 = sphi %s3835_s20, %s5233_s20   ;;  %s3750_s19 = sphi %s3833_s19, %s5232_s19   ;;  %s3746_s18 = sphi %s3831_s18, %s5231_s18  }
  0x12   : > { %5124 = sst [smem:[#allocation18_spill]] %s3770_s24  ;;  %s2794_s30 = sadd.s32 4294967294, %s3786_s28  }
  0x13   : > { %5125 = sst [smem:[#allocation19_spill]] %s3774_s25  ;;  %p59_p0 = scmp.ne.s32.totalorder %s3762_s22, %s3758_s21 }
  0x14   : > { %p5083_p1 = scmp.eq.s32.totalorder %s3885_s29, 0  ;;  %p85_p2 = scmp.ne.s32.totalorder %s3750_s19, %s3746_s18 }
  0x15   : > { %p180_p5 = scmp.eq.s32.totalorder %s2794_s30, 3  ;;  %p2795_p7 = scmp.ge.s32.totalorder %s3786_s28, 1 }
  0x16   : > { %p3895_p4 = por %p5083_p1, %p59_p0  ;;  %p3901_p6 = por %p85_p2, %p5083_p1 }
  0x17   : > { %p3906_p8 = por %p180_p5, %p59_p0  ;;  %p187_p9 = scmp.lt.s32.totalorder %s3786_s28, 5 }
  0x18   : > { %s5126_s6 = scalar_select %p3895_p4, 1, 0 }
  0x19   : > { %s5127_s7 = scalar_select %p3901_p6, 1, 0 }
  0x1a   : > { %s5129_s8 = scalar_select %p3906_p8, 1, 0 }
  0x1b   : > { %5128 = sst [smem:[#allocation20_spill]] %s5127_s7  ;;  %p3911_p10 = pnand %p2795_p7, %p187_p9 }
  0x1c   : > { %5130 = sst [smem:[#allocation21_spill]] %s5129_s8  ;;  %s3788_s10 = smov [#allocation7]  }
  0x1d   : > { %s5131_s9 = scalar_select %p3911_p10, 1, 0 }
  0x1e   : > { %s199_s11 = sshll.u32 %s3788_s10, 4  ;;  %p2991_p11 = pneg %p3911_p10  ;;  %s200_s11 = int_to_ptr.vmem [resolvable:$true] %s199_s11 }
  0x1f   : > { %s3789_s13 = smov [#allocation8]   ;;  %s5133_s2 = sld [smem:[#allocation41_spill]] }
  0x20   : > { %p3919_p12 = pnand %p2991_p11, %p5083_p1  ;;  %s212_s14 = sshll.u32 %s3789_s13, 4  ;;  %s3923_s14 = int_to_ptr.vmem [resolvable:$true] %s212_s14 }
  0x22   : > { %p3933_p0 = pneg %p3919_p12 }
  0x25   : > { %s3508_s17 = scalar_lea.hbm %s5133_s2, 4096 }
  0x26   : > { %p3509_p13 = scmp.ne.s32.totalorder %s5133_s2, %s3508_s17  ;;  %p3515_p7 = scmp.lt.u32.totalorder %s3508_s17, %s5133_s2 }
  0x28   : > { %p3511_p2 = pnand %p3933_p0, %p3509_p13 }
  0x2a   : > { %p3512_p5 = pneg %p3511_p2 }
  0x2c   : > { %p3517_p9 = pnand %p3515_p7, %p3512_p5 }
  0x2e   : > { %3520 = shalt.err (!%p3517_p9)
}
  0x2f   : > { %s3521_s15 = scalar_lea.vmem %s200_s11, 4096  ;;  %p3529_p8 = scmp.lt.s32.totalorder %s200_s11, %s200_s11 }
  0x30   : > { %p3522_p11 = scmp.ne.s32.totalorder %s200_s11, %s3521_s15  ;;  %p3530_p6 = scmp.lt.s32.totalorder %s3521_s15, %s3521_s15 }
  0x32   : > { %p3524_p1 = pnand %p3522_p11, %p3933_p0  ;;  %p3531_p4 = por %p3530_p6, %p3529_p8 }
  0x34   : > { %p3525_p3 = pneg %p3524_p1 }
  0x36   : > { %p3532_p10 = pnand %p3531_p4, %p3525_p3 }
  0x38   : > { %3535 = shalt.err (!%p3532_p10)
}
  0x39   : > { %s5089_s16 = smov 128   ;;  %s5091_s18 = smov 8  }
  0x3a   : > { %2994 = dma.hbm_to_vmem [thread:$0]  (!%p3919_p12), %s5133_s2, 4096, %s200_s11, [#allocation6], %s5089_s16, %s5089_s16, %s5091_s18  }
  0x3b   : > { %s5135_s3 = sld [smem:[#allocation42_spill]] }
  0x41   : > { %s3536_s21 = scalar_lea.hbm %s5135_s3, 8192 }
  0x42   : > { %p3537_p1 = scmp.ne.s32.totalorder %s5135_s3, %s3536_s21  ;;  %p3543_p6 = scmp.lt.u32.totalorder %s3536_s21, %s5135_s3 }
  0x44   : > { %p3539_p3 = pnand %p3537_p1, %p3933_p0 }
  0x46   : > { %p3540_p4 = pneg %p3539_p3 }
  0x48   : > { %p3545_p8 = pnand %p3543_p6, %p3540_p4 }
  0x4a   : > { %3548 = shalt.err (!%p3545_p8)
}
  0x4b   : > { %s3549_s11 = scalar_lea.vmem %s3923_s14, 8192  ;;  %p3557_p5 = scmp.lt.s32.totalorder %s3923_s14, %s3923_s14 }
  0x4c   : > { %p3550_p10 = scmp.ne.s32.totalorder %s3923_s14, %s3549_s11  ;;  %p3558_p7 = scmp.lt.s32.totalorder %s3549_s11, %s3549_s11 }
  0x4e   : > { %p3552_p13 = pnand %p3550_p10, %p3933_p0  ;;  %p3559_p9 = por %p3558_p7, %p3557_p5 }
  0x50   : > { %p3553_p2 = pneg %p3552_p13 }
  0x52   : > { %p3560_p11 = pnand %p3559_p9, %p3553_p2 }
  0x54   : > { %3563 = shalt.err (!%p3560_p11)
}
  0x55   : > { %s5093_s5 = smov 256   ;;  %s5094_s21 = smov 16  }
  0x56   : > { %2997 = dma.hbm_to_vmem [thread:$0]  (!%p3919_p12), %s5135_s3, 8192, %s3923_s14, [#allocation9], %s5093_s5, %s5093_s5, %s5094_s21  }
  0x57   : > { %s3794_s8 = smov [#allocation10]   ;;  %s5136_s4 = sld [smem:[#allocation43_spill]] }
  0x58   : > { %s225_s17 = sshll.u32 %s3794_s8, 4  ;;  %s226_s17 = int_to_ptr.vmem [resolvable:$true] %s225_s17 }
  0x5d   : > { %s3564_s15 = scalar_lea.hbm %s5136_s4, 4096 }
  0x5e   : > { %p3565_p1 = scmp.ne.s32.totalorder %s5136_s4, %s3564_s15  ;;  %p3571_p6 = scmp.lt.u32.totalorder %s3564_s15, %s5136_s4 }
  0x60   : > { %p3567_p3 = pnand %p3565_p1, %p3933_p0 }
  0x62   : > { %p3568_p4 = pneg %p3567_p3 }
  0x64   : > { %p3573_p8 = pnand %p3571_p6, %p3568_p4 }
  0x66   : > { %3576 = shalt.err (!%p3573_p8)
}
  0x67   : > { %s3577_s14 = scalar_lea.vmem %s226_s17, 4096  ;;  %p3585_p5 = scmp.lt.s32.totalorder %s226_s17, %s226_s17 }
  0x68   : > { %p3578_p10 = scmp.ne.s32.totalorder %s226_s17, %s3577_s14  ;;  %p3586_p7 = scmp.lt.s32.totalorder %s3577_s14, %s3577_s14 }
  0x6a   : > { %p3580_p13 = pnand %p3578_p10, %p3933_p0  ;;  %p3587_p9 = por %p3586_p7, %p3585_p5 }
  0x6c   : > { %p3581_p2 = pneg %p3580_p13 }
  0x6e   : > { %p3588_p11 = pnand %p3587_p9, %p3581_p2 }
  0x70   : > { %3591 = shalt.err (!%p3588_p11)
}
  0x71   : > { %s5137_s16 = smov 8   ;;  %s5138_s24 = smov 128  }
  0x72   : > { %3000 = dma.hbm_to_vmem [thread:$0]  (!%p3919_p12), %s5136_s4, 4096, %s226_s17, [#allocation9], %s5138_s24, %s5138_s24, %s5137_s16  }
  0x73   : > { %s34_s12 = sadd.s32 1, %s3778_s26  ;;  %s37_s10 = sadd.s32 1, %s3782_s27 }
  0x74   : > { %p35_p0 = scmp.ge.s32.totalorder %s34_s12, 2  ;;  %s46_s25 = sadd.s32 1, %s3766_s23 }
  0x75   : > { %p53_p1 = scmp.ne.s32.totalorder %s3766_s23, %s3762_s22  ;;  %p5102_p3 = scmp.eq.s32.totalorder %s3786_s28, 0 }
  0x76   : > { %s5242_s12 = smov (%p35_p0, %s34_s12), 0  ;;  %s5244_s10 = smov (!%p35_p0, %s37_s10), %s3782_s27 }
  0x77   : > { %5139 = sst [smem:[#allocation22_spill]] %s5242_s12  ;;  %s42_s8 = ssub.s32 %s3778_s26, %s5242_s12 }
  0x78   : > { %p39_p4 = scmp.ge.s32.totalorder %s5244_s10, 2  ;;  %p5140_p6 = scmp.eq.s32.totalorder %s3885_s29, 3 }
  0x79   : > { %p4018_p12 = por %p5102_p3, %p53_p1  ;;  %p5101_p10 = scmp.lt.s32.totalorder %s3786_s28, 4 }
  0x7a   : > { %p4012_p8 = por %p5140_p6, %p53_p1  ;;  %s5246_s10 = smov (%p39_p4, %s5244_s10), 0 }
  0x7b   : > { %5144 = sst [smem:[#allocation24_spill]] %s5246_s10  ;;  %s239_s13 = sand.u32 1, %s3766_s23  }
  0x7c   : > { %s5141_s30 = scalar_select %p4012_p8, 1, 0 }
  0x7d   : > { %s2970_s15 = sshll.u32 %s3778_s26, 6  ;;  %s4029_s11 = ssub.s32 %s3782_s27, %s5246_s10 }
  0x7e   : > { %5142 = sst [smem:[#allocation23_spill]] %s5141_s30  ;;  %s43_s14 = sor.u32 %s42_s8, %s4029_s11 }
  0x7f   : > { %p44_p2 = scmp.eq.s32.totalorder %s43_s14, 0  ;;  %s2800_s2 = sshll.u32 %s239_s13, 9 }
  0x80   : > { %s2803_s18 = sshll.u32 %s3782_s27, 7  ;;  %s243_s3 = scalar_lea.vmem [#allocation2], %s2800_s2 }
  0x81   : > { %s4035_s5 = scalar_select %p44_p2, %s3766_s23, %s46_s25  }
  0x82   : > { %s250_s21 = sadd.s32 %s2970_s15, %s2803_s18  ;;  %s253_s4 = sshll.u32 %s243_s3, 4  ;;  %s4037_s4 = int_to_ptr.vmem [resolvable:$true] %s253_s4 }
  0x83   : > { %s2804_s12 = sshll.u32 %s250_s21, 7  ;;  %p4048_p5 = pnand %p5101_p10, %p4018_p12 }
  0x84   : > { %s4042_s10 = scalar_lea.hbm %s5076_s0, %s2804_s12  ;;  %s263_s3 = sand.u32 1, %s3786_s28  }
  0x85   : > { %s4053_s21 = scalar_lea.sflag [#allocation3], %s239_s13  ;;  %s3592_s8 = scalar_lea.hbm %s4042_s10, 8192 }
  0x86   : > { %p3593_p7 = scmp.ne.s32.totalorder %s4042_s10, %s3592_s8  ;;  %p3594_p9 = pneg %p4048_p5 }
  0x87   : > { %s3597_s30 = scalar_lea.hbm %s5076_s0, 32768  ;;  %p3598_p1 = scmp.lt.u32.totalorder %s4042_s10, %s5076_s0 }
  0x88   : > { %p3595_p11 = pnand %p3594_p9, %p3593_p7  ;;  %p3599_p4 = scmp.lt.u32.totalorder %s3597_s30, %s3592_s8 }
  0x89   : > { %p3601_p12 = scmp.lt.u32.totalorder %s3592_s8, %s4042_s10 }
  0x8a   : > { %p3596_p0 = pneg %p3595_p11  ;;  %p3600_p6 = por %p3599_p4, %p3598_p1 }
  0x8c   : > { %p3602_p2 = por %p3601_p12, %p3600_p6 }
  0x8e   : > { %p3603_p10 = pnand %p3602_p2, %p3596_p0 }
  0x90   : > { %3606 = shalt.err (!%p3603_p10)
}
  0x91   : > { %s3607_s13 = scalar_lea.vmem %s4037_s4, 8192  ;;  %s3795_s14 = smov [#allocation2]  }
  0x92   : > { %p3608_p7 = scmp.ne.s32.totalorder %s4037_s4, %s3607_s13  ;;  %s3612_s2 = sshll.u32 %s3795_s14, 4  ;;  %s3613_s2 = int_to_ptr.vmem [resolvable:$false] %s3612_s2 }
  0x93   : > { %s3614_s18 = scalar_lea.vmem %s3613_s2, 16384  ;;  %p3615_p13 = scmp.lt.s32.totalorder %s4037_s4, %s3613_s2 }
  0x94   : > { %p3610_p11 = pnand %p3608_p7, %p3594_p9  ;;  %p3616_p1 = scmp.lt.s32.totalorder %s3614_s18, %s3607_s13 }
  0x96   : > { %p3611_p3 = pneg %p3610_p11  ;;  %p3617_p4 = por %p3616_p1, %p3615_p13 }
  0x98   : > { %p3618_p6 = pnand %p3617_p4, %p3611_p3 }
  0x9a   : > { %3621 = shalt.err (!%p3618_p6)
}
  0x9b   : > { %s5146_s8 = smov 16   ;;  %s5147_s7 = smov 256  }
  0x9c   : > { %3004 = dma.hbm_to_vmem [thread:$0]  (!%p4048_p5), %s4042_s10, 8192, %s4037_s4, %s4053_s21, %s5147_s7, %s5147_s7, %s5146_s8  }
  0x9d   : > { %s72_s12 = sadd.s32 1, %s3754_s20  ;;  %p79_p3 = scmp.ne.s32.totalorder %s3754_s20, %s3750_s19 }
  0x9e   : > { %p5148_p10 = scmp.eq.s32.totalorder %s4029_s11, 0  ;;  %p5149_p13 = scmp.eq.s32.totalorder %s3786_s28, 0 }
  0x9f   : > { %s265_s30 = sand.u32 1, %s3754_s20   ;;  %s2971_s17 = sshll.u32 %s3782_s27, 9 }
  0xa0   : > { %s4090_s25 = scalar_select %p5148_p10, %s3754_s20, %s72_s12  }
  0xa1   : > { %p81_p9 = por %p79_p3, %p5149_p13  ;;  %s2805_s15 = sshll.u32 %s265_s30, 5 }
  0xa2   : > { %s4099_s2 = scalar_lea.hbm %s5077_s1, %s2971_s17  ;;  %p5150_p0 = scmp.lt.s32.totalorder %s3786_s28, 4 }
  0xa3   : > { %s267_s10 = scalar_lea.vmem [#allocation5], %s2805_s15  ;;  %s4111_s21 = scalar_lea.sflag [#allocation6], %s263_s3 }
  0xa4   : > { %p4103_p5 = pnand %p5150_p0, %p81_p9  ;;  %s274_s11 = sshll.u32 %s267_s10, 4  ;;  %s4107_s11 = int_to_ptr.vmem [resolvable:$true] %s274_s11 }
  0xa5   : > { %s3622_s18 = scalar_lea.hbm %s4099_s2, 512  ;;  %s3627_s12 = scalar_lea.hbm %s5077_s1, 1024 }
  0xa6   : > { %p3623_p12 = scmp.ne.s32.totalorder %s4099_s2, %s3622_s18  ;;  %p3624_p2 = pneg %p4103_p5 }
  0xa7   : > { %p3628_p1 = scmp.lt.u32.totalorder %s4099_s2, %s5077_s1  ;;  %p3629_p4 = scmp.lt.u32.totalorder %s3627_s12, %s3622_s18 }
  0xa8   : > { %p3625_p7 = pnand %p3624_p2, %p3623_p12  ;;  %p3631_p3 = scmp.lt.u32.totalorder %s3622_s18, %s4099_s2 }
  0xa9   : > { %p3630_p6 = por %p3629_p4, %p3628_p1 }
  0xaa   : > { %p3626_p11 = pneg %p3625_p7 }
  0xab   : > { %p3632_p10 = por %p3631_p3, %p3630_p6 }
  0xad   : > { %p3633_p13 = pnand %p3632_p10, %p3626_p11 }
  0xaf   : > { %3636 = shalt.err (!%p3633_p13)
}
  0xb0   : > { %s3637_s3 = scalar_lea.vmem %s4107_s11, 512  ;;  %s3796_s15 = smov [#allocation5]  }
  0xb1   : > { %p3638_p9 = scmp.ne.s32.totalorder %s4107_s11, %s3637_s3  ;;  %s3642_s13 = sshll.u32 %s3796_s15, 4  ;;  %s3643_s13 = int_to_ptr.vmem [resolvable:$false] %s3642_s13 }
  0xb2   : > { %s3644_s14 = scalar_lea.vmem %s3643_s13, 1024  ;;  %p3645_p7 = scmp.lt.s32.totalorder %s4107_s11, %s3643_s13 }
  0xb3   : > { %p3640_p0 = pnand %p3638_p9, %p3624_p2  ;;  %p3646_p1 = scmp.lt.s32.totalorder %s3644_s14, %s3637_s3 }
  0xb5   : > { %p3641_p12 = pneg %p3640_p0  ;;  %p3647_p4 = por %p3646_p1, %p3645_p7 }
  0xb7   : > { %p3648_p6 = pnand %p3647_p4, %p3641_p12 }
  0xb9   : > { %3651 = shalt.err (!%p3648_p6)
}
  0xba   : > { %3007 = dma.hbm_to_vmem [thread:$0]  (!%p4103_p5), %s4099_s2, 512, %s4107_s11, %s4111_s21, %s5138_s24, %s5138_s24, %s5137_s16  }
  0xbb   : > { %p5152_p2 = scmp.ne.s32.totalorder %s5131_s9, 0 }
  0xbd   : > { %286 = sbr.rel (%p5152_p2) target bundleno = 1810 (0x712), region = 40 }
  0xc4   : > { %s4145_s10 = sand.u32 1, %s3762_s22   ;;  %p5153_p11 = scmp.ne.s32.totalorder %s5126_s6, 0 }
  0xc5   : > { %s2809_s18 = sshll.u32 %s4145_s10, 9  ;;  %s289_s8 = scalar_lea.sflag [#allocation3], %s4145_s10 }
  0xc6   : > { %s4151_s4 = scalar_lea.vmem [#allocation2], %s2809_s18 }
  0xc7   : > { %3725 = dma.done.wait (%p5153_p11), %s289_s8, 8192  }
  0xc8   : > { %3727 = vsyncadd (%p5153_p11), %s289_s8, 4294959104  ;;  %s5154_s9 = sld [smem:[#allocation20_spill]]  ;;  %s297_s16 = sand.u32 1, %s3885_s29  }
  0xc9   : > { %s299_s24 = sand.u32 1, %s3750_s19   ;;  %s298_s11 = scalar_lea.sflag [#allocation6], %s297_s16 }
  0xca   : > { %s2810_s2 = sshll.u32 %s299_s24, 5 }
  0xcb   : > { %s4159_s21 = scalar_lea.vmem [#allocation5], %s2810_s2 }
  0xce   : > { %p5155_p5 = scmp.ne.s32.totalorder %s5154_s9, 0 }
  0xd0   : > { %3729 = dma.done.wait (%p5155_p5), %s298_s11, 512  }
  0xd1   : > { %3731 = vsyncadd (%p5155_p5), %s298_s11, 4294966784  ;;  %p5156_p3 = scmp.eq.s32.totalorder %s3885_s29, 0 }
  0xd3   : > { %3733 = dma.done.wait (%p5156_p3), [#allocation6], 4096   ;;  %p5157_p10 = pmov %p5156_p3 }
  0xd4   : > { %p5158_p13 = pmov %p5156_p3 }
  0xd5   : > { %3735 = vsyncadd (%p5157_p10), [#allocation6], 4294963200 }
  0xd6   : > { %3737 = dma.done.wait (%p5158_p13), [#allocation9], 12288   ;;  %p5159_p9 = pmov %p5156_p3 }
  0xd7   : > { %v3118_v0 = vld [vmem:[#allocation7 + $0x4] ss:$8 sps:$4 sm:$0xff]   ;;  %v3120_v1 = vld [vmem:[#allocation7] ss:$8 sps:$4 sm:$0xff]   ;;  %v3121_v2 = vld [vmem:[#allocation7 + $0x14] ss:$8 sps:$4 sm:$0xff]  }
  0xd8   : > { %3739 = vsyncadd (%p5159_p9), [#allocation9], 4294955008  ;;  %636 = vmatprep.subr.bf16.mxu0 %v3118_v0  ;;  %v3123_v3 = vld [vmem:[#allocation7 + $0x10] ss:$8 sps:$4 sm:$0xff]   ;;  %v3124_v4 = vld [vmem:[#allocation7 + $0x24] ss:$8 sps:$4 sm:$0xff]  }
  0xd9   : > { %637 = vmatpush1.bf16.msra.mxu0 %v3120_v1  ;;  %v3126_v5 = vld [vmem:[#allocation7 + $0x20] ss:$8 sps:$4 sm:$0xff]   ;;  %v3127_v6 = vld [vmem:[#allocation7 + $0x34] ss:$8 sps:$4 sm:$0xff]   ;;  %v3129_v7 = vld [vmem:[#allocation7 + $0x30] ss:$8 sps:$4 sm:$0xff]  }
  0xda   : > { %638 = vmatprep.subr.bf16.mxu0 %v3121_v2  ;;  %v3130_v8 = vld [vmem:[#allocation7 + $0x44] ss:$8 sps:$4 sm:$0xff]   ;;  %v3132_v9 = vld [vmem:[#allocation7 + $0x40] ss:$8 sps:$4 sm:$0xff]   ;;  %v3133_v10 = vld [vmem:[#allocation7 + $0x54] ss:$8 sps:$4 sm:$0xff]  }
  0xdb   : > { %v3135_v11 = vld [vmem:[#allocation7 + $0x50] ss:$8 sps:$4 sm:$0xff]   ;;  %v3136_v12 = vld [vmem:[#allocation7 + $0x64] ss:$8 sps:$4 sm:$0xff]   ;;  %v3138_v16 = vld [vmem:[#allocation7 + $0x60] ss:$8 sps:$4 sm:$0xff]  }
  0xdc   : > { %v349_v13 = vld [vmem:[%s4151_s4 + $0x8] sm:$0xff]  ;;  %v351_v14 = vld [vmem:[%s4151_s4 + $0x18] sm:$0xff]  ;;  %v348_v35 = vld [vmem:[%s4151_s4] sm:$0xff]  ;;  %vm1544_vm0 = vcmask 261120   ;;  %s4877_s29 = scalar_lea.vmem [#allocation11], %s2809_s18  ;;  %s5222_s6 = sld [smem:[#allocation18_spill]] }
  0xdd   : > { %639 = vmatpush1.bf16.msra.mxu0 %v3123_v3  ;;  %v413_v15 = vpack.c.bf16 %v351_v14, %v349_v13  ;;  %v3139_v17 = vld [vmem:[#allocation7 + $0x74] ss:$8 sps:$4 sm:$0xff]   ;;  %v3141_v18 = vld [vmem:[#allocation7 + $0x70] ss:$8 sps:$4 sm:$0xff]   ;;  %v3142_v19 = vld [vmem:[#allocation7 + $0x84] ss:$8 sps:$4 sm:$0xff]  }
  0xde   : > { %640 = vmatprep.subr.bf16.mxu0 %v3124_v4  ;;  %v3144_v20 = vld [vmem:[#allocation7 + $0x80] ss:$8 sps:$4 sm:$0xff]   ;;  %v3145_v21 = vld [vmem:[#allocation7 + $0x94] ss:$8 sps:$4 sm:$0xff]   ;;  %v3147_v22 = vld [vmem:[#allocation7 + $0x90] ss:$8 sps:$4 sm:$0xff]  }
  0xdf   : > { %668 = vmatprep.mubr.bf16.mxu0 %v413_v15  ;;  %v3148_v23 = vld [vmem:[#allocation7 + $0xa4] ss:$8 sps:$4 sm:$0xff]   ;;  %v3150_v24 = vld [vmem:[#allocation7 + $0xa0] ss:$8 sps:$4 sm:$0xff]   ;;  %v3151_v25 = vld [vmem:[#allocation7 + $0xb4] ss:$8 sps:$4 sm:$0xff]  }
  0xe0   : > { %v3153_v26 = vld [vmem:[#allocation7 + $0xb0] ss:$8 sps:$4 sm:$0xff]   ;;  %v3154_v27 = vld [vmem:[#allocation7 + $0xc4] ss:$8 sps:$4 sm:$0xff]   ;;  %v3156_v28 = vld [vmem:[#allocation7 + $0xc0] ss:$8 sps:$4 sm:$0xff]  }
  0xe1   : > { %641 = vmatpush1.bf16.msra.mxu0 %v3126_v5  ;;  %v3157_v29 = vld [vmem:[#allocation7 + $0xd4] ss:$8 sps:$4 sm:$0xff]   ;;  %v3159_v30 = vld [vmem:[#allocation7 + $0xd0] ss:$8 sps:$4 sm:$0xff]   ;;  %v3160_v31 = vld [vmem:[#allocation7 + $0xe4] ss:$8 sps:$4 sm:$0xff]  }
  0xe2   : > { %642 = vmatprep.subr.bf16.mxu0 %v3127_v6  ;;  %v3162_v32 = vld [vmem:[#allocation7 + $0xe0] ss:$8 sps:$4 sm:$0xff]   ;;  %v3163_v33 = vld [vmem:[#allocation7 + $0xf4] ss:$8 sps:$4 sm:$0xff]   ;;  %v3165_v34 = vld [vmem:[#allocation7 + $0xf0] ss:$8 sps:$4 sm:$0xff]  }
  0xe3   : > { %v350_v36 = vld [vmem:[%s4151_s4 + $0x10] sm:$0xff]  ;;  %v353_v38 = vld [vmem:[%s4151_s4 + $0x28] sm:$0xff]  ;;  %v355_v39 = vld [vmem:[%s4151_s4 + $0x38] sm:$0xff]  ;;  %s5223_s7 = sld [smem:[#allocation19_spill]]  ;;  %s2972_s12 = sshll.u32 %s5222_s6, 6 }
  0xe4   : > { %v3168_v37 = vld [vmem:[#allocation8 + $0x4] ss:$16 sps:$4 sm:$0xff]   ;;  %v412_v40 = vpack.c.bf16 %v350_v36, %v348_v35  ;;  %v3166_v41 = vld [vmem:[#allocation8] ss:$16 sps:$4 sm:$0xff]   ;;  %v415_v42 = vpack.c.bf16 %v355_v39, %v353_v38  ;;  %v357_v47 = vld [vmem:[%s4151_s4 + $0x48] sm:$0xff]  ;;  %s2652_s15 = sshll.u32 %s4877_s29, 4  ;;  %s5009_s15 = int_to_ptr.vmem [resolvable:$true] %s2652_s15 }
  0xe5   : > { %643 = vmatpush1.bf16.msra.mxu0 %v3129_v7  ;;  %v3171_v43 = vld [vmem:[#allocation8 + $0x24] ss:$16 sps:$4 sm:$0xff]   ;;  %v3169_v46 = vld [vmem:[#allocation8 + $0x20] ss:$16 sps:$4 sm:$0xff]   ;;  %v359_v48 = vld [vmem:[%s4151_s4 + $0x58] sm:$0xff]  ;;  %s5225_s8 = sld [smem:[#allocation44_spill]] }
  0xe6   : > { %644 = vmatprep.subr.bf16.mxu0 %v3130_v8  ;;  %v352_v44 = vld [vmem:[%s4151_s4 + $0x20] sm:$0xff]  ;;  %v354_v45 = vld [vmem:[%s4151_s4 + $0x30] sm:$0xff]  ;;  %v417_v54 = vpack.c.bf16 %v359_v48, %v357_v47  ;;  %v3220_v55 = vld [vmem:[#allocation8 + $0xc] ss:$16 sps:$4 sm:$0xff]   ;;  %s2636_s16 = scalar_lea.sflag [#allocation4], %s4145_s10  ;;  %s3652_s24 = scalar_lea.vmem %s5009_s15, 8192 }
  0xe7   : > { %v4184_v49 = vld [vmem:[%s4159_s21 + $0x4] ss:$8 sps:$4 sm:$0xff]   ;;  %v3172_v51 = vld [vmem:[#allocation8 + $0x40] ss:$16 sps:$4 sm:$0xff]   ;;  %v414_v52 = vpack.c.bf16 %v354_v45, %v352_v44  ;;  %v3222_v56 = vld [vmem:[#allocation8 + $0x8] ss:$16 sps:$4 sm:$0xff]   ;;  %1290 = vmatprep.subr.bf16.mxu1 %v3220_v55  ;;  %p3653_p0 = scmp.ne.s32.totalorder %s5009_s15, %s3652_s24 }
  0xe8   : > { %v3174_v50 = vld [vmem:[#allocation8 + $0x44] ss:$16 sps:$4 sm:$0xff]   ;;  %1322 = vmatprep.mubr.bf16.mxu1 %v4184_v49  ;;  %v3223_v57 = vld [vmem:[#allocation8 + $0x2c] ss:$16 sps:$4 sm:$0xff]   ;;  %v3175_v60 = vld [vmem:[#allocation8 + $0x60] ss:$16 sps:$4 sm:$0xff]   ;;  %1291 = vmatpush1.bf16.msra.mxu1 %v3222_v56 }
  0xe9   : > { %645 = vmatpush1.bf16.msra.mxu0 %v3132_v9  ;;  %v3177_v53 = vld [vmem:[#allocation8 + $0x64] ss:$16 sps:$4 sm:$0xff]   ;;  %v361_v61 = vld [vmem:[%s4151_s4 + $0x68] sm:$0xff]  ;;  %v363_v62 = vld [vmem:[%s4151_s4 + $0x78] sm:$0xff]  ;;  %1292 = vmatprep.subr.bf16.mxu1 %v3223_v57  ;;  %s2966_s30 = sshll.u32 %s5223_s7, 7  ;;  %p3654_p12 = pnand %p3653_p0, %p4012_p8 }
  0xea   : > { %646 = vmatprep.subr.bf16.mxu0 %v3133_v10  ;;  %v356_v58 = vld [vmem:[%s4151_s4 + $0x40] sm:$0xff]  ;;  %v358_v59 = vld [vmem:[%s4151_s4 + $0x50] sm:$0xff]  ;;  %v3225_v0 = vld [vmem:[#allocation8 + $0x28] ss:$16 sps:$4 sm:$0xff]   ;;  %v419_v3 = vpack.c.bf16 %v363_v62, %v361_v61  ;;  %s2649_s17 = sadd.s32 %s2972_s12, %s2966_s30  ;;  %s3798_s2 = smov [#allocation11]  }
  0xeb   : > { %v3180_v63 = vld [vmem:[#allocation8 + $0x84] ss:$16 sps:$4 sm:$0xff]   ;;  %v416_v1 = vpack.c.bf16 %v358_v59, %v356_v58  ;;  %v3226_v2 = vld [vmem:[#allocation8 + $0x4c] ss:$16 sps:$4 sm:$0xff]   ;;  %v3178_v4 = vld [vmem:[#allocation8 + $0x80] ss:$16 sps:$4 sm:$0xff]   ;;  %p3655_p7 = pneg %p3654_p12 }
  0xec   : > { %v3183_v5 = vld [vmem:[#allocation8 + $0xa4] ss:$16 sps:$4 sm:$0xff]   ;;  %1293 = vmatpush1.bf16.msra.mxu1 %v3225_v0  ;;  %v3228_v8 = vld [vmem:[#allocation8 + $0x48] ss:$16 sps:$4 sm:$0xff]   ;;  %v3229_v10 = vld [vmem:[#allocation8 + $0x6c] ss:$16 sps:$4 sm:$0xff]  }
  0xed   : > { %647 = vmatpush1.bf16.msra.mxu0 %v3135_v11  ;;  %v360_v6 = vld [vmem:[%s4151_s4 + $0x60] sm:$0xff]  ;;  %v362_v7 = vld [vmem:[%s4151_s4 + $0x70] sm:$0xff]  ;;  %v365_v9 = vld [vmem:[%s4151_s4 + $0x88] sm:$0xff]  ;;  %1294 = vmatprep.subr.bf16.mxu1 %v3226_v2  ;;  %s2967_s3 = sshll.u32 %s2649_s17, 7  ;;  %s3656_s11 = sshll.u32 %s3798_s2, 4  ;;  %s3657_s11 = int_to_ptr.vmem [resolvable:$false] %s3656_s11 }
  0xee   : > { %648 = vmatprep.subr.bf16.mxu0 %v3136_v12  ;;  %v367_v11 = vld [vmem:[%s4151_s4 + $0x98] sm:$0xff]  ;;  %v3181_v12 = vld [vmem:[#allocation8 + $0xa0] ss:$16 sps:$4 sm:$0xff]   ;;  %v3186_v13 = vld [vmem:[#allocation8 + $0xc4] ss:$16 sps:$4 sm:$0xff]   ;;  %v418_v15 = vpack.c.bf16 %v362_v7, %v360_v6  ;;  %s5007_s9 = scalar_lea.hbm %s5225_s8, %s2967_s3  ;;  %p3659_p1 = scmp.lt.s32.totalorder %s5009_s15, %s3657_s11 }
  0xef   : > { %v3231_v14 = vld [vmem:[#allocation8 + $0x68] ss:$16 sps:$4 sm:$0xff]   ;;  %v3241_v35 = vld [vmem:[#allocation8 + $0xec] ss:$16 sps:$4 sm:$0xff]   ;;  %v368_v36 = vld [vmem:[%s4151_s4 + $0xa0] sm:$0xff] }
  0xf0   : > { %1295 = vmatpush1.bf16.msra.mxu1 %v3228_v8  ;;  %v3193_v38 = vld [vmem:[#allocation8 + $0x120] ss:$16 sps:$4 sm:$0xff]   ;;  %v373_v39 = vld [vmem:[%s4151_s4 + $0xc8] sm:$0xff]  ;;  %v3201_v47 = vld [vmem:[#allocation8 + $0x164] ss:$16 sps:$4 sm:$0xff]  }
  0xf1   : > { %649 = vmatpush1.bf16.msra.mxu0 %v3138_v16  ;;  %v3184_v16 = vld [vmem:[#allocation8 + $0xc0] ss:$16 sps:$4 sm:$0xff]   ;;  %1296 = vmatprep.subr.bf16.mxu1 %v3229_v10  ;;  %v3244_v44 = vld [vmem:[#allocation8 + $0x10c] ss:$16 sps:$4 sm:$0xff]   ;;  %v3246_v48 = vld [vmem:[#allocation8 + $0x108] ss:$16 sps:$4 sm:$0xff]  }
  0xf2   : > { %650 = vmatprep.subr.bf16.mxu0 %v3139_v17  ;;  %v3232_v17 = vld [vmem:[#allocation8 + $0x8c] ss:$16 sps:$4 sm:$0xff]   ;;  %v3204_v56 = vld [vmem:[#allocation8 + $0x184] ss:$16 sps:$4 sm:$0xff]   ;;  %v3249_v57 = vld [vmem:[#allocation8 + $0x128] ss:$16 sps:$4 sm:$0xff]  }
  0xf3   : > { %v379_v55 = vld [vmem:[%s4151_s4 + $0xf8] sm:$0xff]  ;;  %v3202_v61 = vld [vmem:[#allocation8 + $0x180] ss:$16 sps:$4 sm:$0xff]   ;;  %v3207_v62 = vld [vmem:[#allocation8 + $0x1a4] ss:$16 sps:$4 sm:$0xff]  }
  0xf4   : > { %1297 = vmatpush1.bf16.msra.mxu1 %v3231_v14  ;;  %v3250_v59 = vld [vmem:[#allocation8 + $0x14c] ss:$16 sps:$4 sm:$0xff]   ;;  %v378_v2 = vld [vmem:[%s4151_s4 + $0xf0] sm:$0xff]  ;;  %v3255_v7 = vld [vmem:[#allocation8 + $0x168] ss:$16 sps:$4 sm:$0xff]  }
  0xf5   : > { %651 = vmatpush1.bf16.msra.mxu0 %v3141_v18  ;;  %v421_v18 = vpack.c.bf16 %v367_v11, %v365_v9  ;;  %1298 = vmatprep.subr.bf16.mxu1 %v3232_v17  ;;  %v3253_v0 = vld [vmem:[#allocation8 + $0x16c] ss:$16 sps:$4 sm:$0xff]   ;;  %v3210_v6 = vld [vmem:[#allocation8 + $0x1c4] ss:$16 sps:$4 sm:$0xff]   ;;  %v3208_v11 = vld [vmem:[#allocation8 + $0x1c0] ss:$16 sps:$4 sm:$0xff]  }
  0xf6   : > { %652 = vmatprep.subr.bf16.mxu0 %v3142_v19  ;;  %v3189_v19 = vld [vmem:[#allocation8 + $0xe4] ss:$16 sps:$4 sm:$0xff]   ;;  %v3256_v9 = vld [vmem:[#allocation8 + $0x18c] ss:$16 sps:$4 sm:$0xff]   ;;  %v3211_v17 = vld [vmem:[#allocation8 + $0x1e0] ss:$16 sps:$4 sm:$0xff]  }
  0xf7   : > { %v3259_v14 = vld [vmem:[#allocation8 + $0x1ac] ss:$16 sps:$4 sm:$0xff]  }
  0xf9   : > { %653 = vmatpush1.bf16.msra.mxu0 %v3144_v20  ;;  %v3234_v20 = vld [vmem:[#allocation8 + $0x88] ss:$16 sps:$4 sm:$0xff]  }
  0xfa   : > { %654 = vmatprep.subr.bf16.mxu0 %v3145_v21  ;;  %v3235_v21 = vld [vmem:[#allocation8 + $0xac] ss:$16 sps:$4 sm:$0xff]   ;;  %1299 = vmatpush1.bf16.msra.mxu1 %v3234_v20  ;;  %v3261_v20 = vld [vmem:[#allocation8 + $0x1a8] ss:$16 sps:$4 sm:$0xff]  }
  0xfb   : > { %1300 = vmatprep.subr.bf16.mxu1 %v3235_v21 }
  0xfd   : > { %655 = vmatpush1.bf16.msra.mxu0 %v3147_v22  ;;  %v364_v22 = vld [vmem:[%s4151_s4 + $0x80] sm:$0xff] }
  0xfe   : > { %656 = vmatprep.subr.bf16.mxu0 %v3148_v23  ;;  %v366_v23 = vld [vmem:[%s4151_s4 + $0x90] sm:$0xff] }
 0x101   : > { %657 = vmatpush1.bf16.msra.mxu0 %v3150_v24  ;;  %v3187_v24 = vld [vmem:[#allocation8 + $0xe0] ss:$16 sps:$4 sm:$0xff]  }
 0x102   : > { %658 = vmatprep.subr.bf16.mxu0 %v3151_v25  ;;  %v369_v25 = vld [vmem:[%s4151_s4 + $0xa8] sm:$0xff] }
 0x105   : > { %659 = vmatpush1.bf16.msra.mxu0 %v3153_v26  ;;  %v371_v26 = vld [vmem:[%s4151_s4 + $0xb8] sm:$0xff] }
 0x106   : > { %660 = vmatprep.subr.bf16.mxu0 %v3154_v27  ;;  %v3192_v27 = vld [vmem:[#allocation8 + $0x104] ss:$16 sps:$4 sm:$0xff]  }
 0x109   : > { %661 = vmatpush1.bf16.msra.mxu0 %v3156_v28  ;;  %v3237_v28 = vld [vmem:[#allocation8 + $0xa8] ss:$16 sps:$4 sm:$0xff]  }
 0x10a   : > { %662 = vmatprep.subr.bf16.mxu0 %v3157_v29  ;;  %v3238_v29 = vld [vmem:[#allocation8 + $0xcc] ss:$16 sps:$4 sm:$0xff]   ;;  %1301 = vmatpush1.bf16.msra.mxu1 %v3237_v28 }
 0x10b   : > { %1302 = vmatprep.subr.bf16.mxu1 %v3238_v29  ;;  %v389_v28 = vld [vmem:[%s4151_s4 + $0x148] sm:$0xff]  ;;  %v391_v29 = vld [vmem:[%s4151_s4 + $0x158] sm:$0xff] }
 0x10d   : > { %663 = vmatpush1.bf16.msra.mxu0 %v3159_v30  ;;  %v3190_v30 = vld [vmem:[#allocation8 + $0x100] ss:$16 sps:$4 sm:$0xff]  }
 0x10e   : > { %664 = vmatprep.subr.bf16.mxu0 %v3160_v31  ;;  %v420_v31 = vpack.c.bf16 %v366_v23, %v364_v22  ;;  %v3262_v22 = vld [vmem:[#allocation8 + $0x1cc] ss:$16 sps:$4 sm:$0xff]  }
 0x111   : > { %665 = vmatpush1.bf16.msra.mxu0 %v3162_v32  ;;  %v3195_v32 = vld [vmem:[#allocation8 + $0x124] ss:$16 sps:$4 sm:$0xff]  }
 0x112   : > { %666 = vmatprep.subr.bf16.mxu0 %v3163_v33  ;;  %v423_v33 = vpack.c.bf16 %v371_v26, %v369_v25  ;;  %v3265_v25 = vld [vmem:[#allocation8 + $0x1ec] ss:$16 sps:$4 sm:$0xff]   ;;  %v384_v26 = vld [vmem:[%s4151_s4 + $0x120] sm:$0xff] }
 0x115   : > { %667 = vmatpush1.bf16.msra.mxu0 %v3165_v34  ;;  %v3240_v34 = vld [vmem:[#allocation8 + $0xc8] ss:$16 sps:$4 sm:$0xff]  }
 0x116   : > { %1237 = vmatprep.subr.bf16.mxu0 %v3168_v37  ;;  %v370_v37 = vld [vmem:[%s4151_s4 + $0xb0] sm:$0xff]  ;;  %1303 = vmatpush1.bf16.msra.mxu1 %v3240_v34  ;;  %v388_v34 = vld [vmem:[%s4151_s4 + $0x140] sm:$0xff] }
 0x117   : > { %1304 = vmatprep.subr.bf16.mxu1 %v3241_v35  ;;  %v390_v35 = vld [vmem:[%s4151_s4 + $0x150] sm:$0xff] }
 0x118   : > { %669 = vmatmul.mubr.bf16.vlgmr.msra.gmra.mrb[0].mxu0 %v412_v40  ;;  %v375_v40 = vld [vmem:[%s4151_s4 + $0xd8] sm:$0xff] }
 0x119   : > { %1238 = vmatpush1.bf16.msra.mxu0 %v3166_v41  ;;  %678 = vmatprep.mubr.bf16.mxu0 %v415_v42  ;;  %v3198_v41 = vld [vmem:[#allocation8 + $0x144] ss:$16 sps:$4 sm:$0xff]   ;;  %v3243_v42 = vld [vmem:[#allocation8 + $0xe8] ss:$16 sps:$4 sm:$0xff]   ;;  %v425_v45 = vpack.c.bf16 %v375_v40, %v373_v39  ;;  %v432_v39 = vpack.c.bf16 %v390_v35, %v388_v34 }
 0x11a   : > { %1239 = vmatprep.subr.bf16.mxu0 %v3171_v43  ;;  %v422_v43 = vpack.c.bf16 %v370_v37, %v368_v36  ;;  %1305 = vmatpush1.bf16.msra.mxu1 %v3243_v42  ;;  %v3217_v36 = vld [vmem:[%s4159_s21 + $0x14] ss:$8 sps:$4 sm:$0xff]   ;;  %v393_v37 = vld [vmem:[%s4151_s4 + $0x168] sm:$0xff]  ;;  %v392_v42 = vld [vmem:[%s4151_s4 + $0x160] sm:$0xff] }
 0x11b   : > { %1306 = vmatprep.subr.bf16.mxu1 %v3244_v44  ;;  %v397_v44 = vld [vmem:[%s4151_s4 + $0x188] sm:$0xff] }
 0x11d   : > { %1240 = vmatpush1.bf16.msra.mxu0 %v3169_v46  ;;  %v3196_v46 = vld [vmem:[#allocation8 + $0x140] ss:$16 sps:$4 sm:$0xff]  }
 0x11e   : > { %1241 = vmatprep.subr.bf16.mxu0 %v3174_v50  ;;  %v3247_v50 = vld [vmem:[#allocation8 + $0x12c] ss:$16 sps:$4 sm:$0xff]   ;;  %1307 = vmatpush1.bf16.msra.mxu1 %v3246_v48  ;;  %v396_v48 = vld [vmem:[%s4151_s4 + $0x180] sm:$0xff] }
 0x11f   : > { %1308 = vmatprep.subr.bf16.mxu1 %v3247_v50  ;;  %v398_v50 = vld [vmem:[%s4151_s4 + $0x190] sm:$0xff] }
 0x120   : > { %679 = vmatmul.mubr.bf16.gmra.mrb[4].mxu0 %v414_v52  ;;  %v374_v52 = vld [vmem:[%s4151_s4 + $0xd0] sm:$0xff] }
 0x121   : > { %688 = vmatprep.mubr.bf16.mxu0 %v417_v54  ;;  %1242 = vmatpush1.bf16.msra.mxu0 %v3172_v51  ;;  %v372_v51 = vld [vmem:[%s4151_s4 + $0xc0] sm:$0xff]  ;;  %v377_v54 = vld [vmem:[%s4151_s4 + $0xe8] sm:$0xff] }
 0x122   : > { %1243 = vmatprep.subr.bf16.mxu0 %v3177_v53  ;;  %v3199_v53 = vld [vmem:[#allocation8 + $0x160] ss:$16 sps:$4 sm:$0xff]   ;;  %v424_v58 = vpack.c.bf16 %v374_v52, %v372_v51  ;;  %1309 = vmatpush1.bf16.msra.mxu1 %v3249_v57  ;;  %v401_v51 = vld [vmem:[%s4151_s4 + $0x1a8] sm:$0xff]  ;;  %v403_v52 = vld [vmem:[%s4151_s4 + $0x1b8] sm:$0xff] }
 0x123   : > { %1310 = vmatprep.subr.bf16.mxu1 %v3250_v59  ;;  %v405_v57 = vld [vmem:[%s4151_s4 + $0x1c8] sm:$0xff] }
 0x125   : > { %1244 = vmatpush1.bf16.msra.mxu0 %v3175_v60  ;;  %v427_v60 = vpack.c.bf16 %v379_v55, %v377_v54  ;;  %v439_v54 = vpack.c.bf16 %v403_v52, %v401_v51  ;;  %v400_v55 = vld [vmem:[%s4151_s4 + $0x1a0] sm:$0xff] }
 0x126   : > { %1245 = vmatprep.subr.bf16.mxu0 %v3180_v63  ;;  %v3252_v63 = vld [vmem:[#allocation8 + $0x148] ss:$16 sps:$4 sm:$0xff]  }
 0x127   : > { %1311 = vmatpush1.bf16.msra.mxu1 %v3252_v63  ;;  %v409_v63 = vld [vmem:[%s4151_s4 + $0x1e8] sm:$0xff] }
 0x128   : > { %689 = vmatmul.mubr.bf16.gmra.mrb[8].mxu0 %v416_v1  ;;  %v376_v1 = vld [vmem:[%s4151_s4 + $0xe0] sm:$0xff]  ;;  %1312 = vmatprep.subr.bf16.mxu1 %v3253_v0  ;;  %v411_v0 = vld [vmem:[%s4151_s4 + $0x1f8] sm:$0xff] }
 0x129   : > { %698 = vmatprep.mubr.bf16.mxu0 %v419_v3  ;;  %1246 = vmatpush1.bf16.msra.mxu0 %v3178_v4  ;;  %v3205_v3 = vld [vmem:[#allocation8 + $0x1a0] ss:$16 sps:$4 sm:$0xff]   ;;  %v381_v4 = vld [vmem:[%s4151_s4 + $0x108] sm:$0xff]  ;;  %v426_v8 = vpack.c.bf16 %v378_v2, %v376_v1  ;;  %v443_v2 = vpack.c.bf16 %v411_v0, %v409_v63 }
 0x12a   : > { %1247 = vmatprep.subr.bf16.mxu0 %v3183_v5  ;;  %v383_v5 = vld [vmem:[%s4151_s4 + $0x118] sm:$0xff] }
 0x12b   : > { %v429_v10 = vpack.c.bf16 %v383_v5, %v381_v4  ;;  %1313 = vmatpush1.bf16.msra.mxu1 %v3255_v7  ;;  %v410_v4 = vld [vmem:[%s4151_s4 + $0x1f0] sm:$0xff] }
 0x12c   : > { %1314 = vmatprep.subr.bf16.mxu1 %v3256_v9 }
 0x12d   : > { %1248 = vmatpush1.bf16.msra.mxu0 %v3181_v12  ;;  %v3213_v12 = vld [vmem:[#allocation8 + $0x1e4] ss:$16 sps:$4 sm:$0xff]  }
 0x12e   : > { %1249 = vmatprep.subr.bf16.mxu0 %v3186_v13  ;;  %v3258_v13 = vld [vmem:[#allocation8 + $0x188] ss:$16 sps:$4 sm:$0xff]  }
 0x12f   : > { %1315 = vmatpush1.bf16.msra.mxu1 %v3258_v13 }
 0x130   : > { %699 = vmatmul.mubr.bf16.gmra.mrb[12].mxu0 %v418_v15  ;;  %v380_v15 = vld [vmem:[%s4151_s4 + $0x100] sm:$0xff]  ;;  %1316 = vmatprep.subr.bf16.mxu1 %v3259_v14 }
 0x131   : > { %708 = vmatprep.mubr.bf16.mxu0 %v421_v18  ;;  %1250 = vmatpush1.bf16.msra.mxu0 %v3184_v16  ;;  %v382_v16 = vld [vmem:[%s4151_s4 + $0x110] sm:$0xff]  ;;  %v385_v18 = vld [vmem:[%s4151_s4 + $0x128] sm:$0xff] }
 0x132   : > { %1251 = vmatprep.subr.bf16.mxu0 %v3189_v19  ;;  %v387_v19 = vld [vmem:[%s4151_s4 + $0x138] sm:$0xff]  ;;  %v428_v21 = vpack.c.bf16 %v382_v16, %v380_v15 }
 0x133   : > { %v431_v23 = vpack.c.bf16 %v387_v19, %v385_v18  ;;  %1317 = vmatpush1.bf16.msra.mxu1 %v3261_v20 }
 0x134   : > { %1318 = vmatprep.subr.bf16.mxu1 %v3262_v22 }
 0x135   : > { %1252 = vmatpush1.bf16.msra.mxu0 %v3187_v24  ;;  %v3264_v24 = vld [vmem:[#allocation8 + $0x1c8] ss:$16 sps:$4 sm:$0xff]  }
 0x136   : > { %1253 = vmatprep.subr.bf16.mxu0 %v3192_v27  ;;  %v386_v27 = vld [vmem:[%s4151_s4 + $0x130] sm:$0xff] }
 0x137   : > { %1319 = vmatpush1.bf16.msra.mxu1 %v3264_v24 }
 0x138   : > { %709 = vmatmul.mubr.bf16.gmra.mrb[16].mxu0 %v420_v31  ;;  %v430_v31 = vpack.c.bf16 %v386_v27, %v384_v26  ;;  %1320 = vmatprep.subr.bf16.mxu1 %v3265_v25 }
 0x139   : > { %718 = vmatprep.mubr.bf16.mxu0 %v423_v33  ;;  %1254 = vmatpush1.bf16.msra.mxu0 %v3190_v30  ;;  %v3267_v30 = vld [vmem:[#allocation8 + $0x1e8] ss:$16 sps:$4 sm:$0xff]  }
 0x13a   : > { %1255 = vmatprep.subr.bf16.mxu0 %v3195_v32  ;;  %v433_v32 = vpack.c.bf16 %v391_v29, %v389_v28  ;;  %v3214_v33 = vld [vmem:[%s4159_s21] ss:$8 sps:$4 sm:$0xff]  }
 0x13b   : > { %1321 = vmatpush1.bf16.msra.mxu1 %v3267_v30 }
 0x13d   : > { %1256 = vmatpush1.bf16.msra.mxu0 %v3193_v38  ;;  %v395_v38 = vld [vmem:[%s4151_s4 + $0x178] sm:$0xff] }
 0x13e   : > { %1257 = vmatprep.subr.bf16.mxu0 %v3198_v41  ;;  %1323 = vmatmul.mubr.bf16.vlgmr.msra.gmra.mrb[0].mxu1 %v3214_v33  ;;  %v435_v40 = vpack.c.bf16 %v395_v38, %v393_v37  ;;  %v3219_v41 = vld [vmem:[%s4159_s21 + $0x10] ss:$8 sps:$4 sm:$0xff]   ;;  %s3658_s21 = scalar_lea.vmem %s3657_s11, 16384 }
 0x13f   : > { %1332 = vmatprep.mubr.bf16.mxu1 %v3217_v36  ;;  %p3660_p4 = scmp.lt.s32.totalorder %s3658_s21, %s3652_s24 }
 0x140   : > { %719 = vmatmul.mubr.bf16.gmra.mrb[20].mxu0 %v422_v43  ;;  %v394_v43 = vld [vmem:[%s4151_s4 + $0x170] sm:$0xff] }
 0x141   : > { %728 = vmatprep.mubr.bf16.mxu0 %v425_v45  ;;  %1258 = vmatpush1.bf16.msra.mxu0 %v3196_v46  ;;  %v399_v45 = vld [vmem:[%s4151_s4 + $0x198] sm:$0xff]  ;;  %v434_v46 = vpack.c.bf16 %v394_v43, %v392_v42  ;;  %p3661_p6 = por %p3660_p4, %p3659_p1 }
 0x142   : > { %1259 = vmatprep.subr.bf16.mxu0 %v3201_v47  ;;  %v437_v47 = vpack.c.bf16 %v399_v45, %v397_v44 }
 0x143   : > { %p3662_p2 = pnand %p3661_p6, %p3655_p7 }
 0x145   : > { %1260 = vmatpush1.bf16.msra.mxu0 %v3199_v53  ;;  %v436_v53 = vpack.c.bf16 %v398_v50, %v396_v48 }
 0x146   : > { %1261 = vmatprep.subr.bf16.mxu0 %v3204_v56  ;;  %1333 = vmatmul.mubr.bf16.gmra.mrb[4].mxu1 %v3219_v41  ;;  %v402_v56 = vld [vmem:[%s4151_s4 + $0x1b0] sm:$0xff] }
 0x147   : > { %v438_v59 = vpack.c.bf16 %v402_v56, %v400_v55 }
 0x148   : > { %729 = vmatmul.mubr.bf16.gmra.mrb[24].mxu0 %v424_v58  ;;  %v407_v58 = vld [vmem:[%s4151_s4 + $0x1d8] sm:$0xff] }
 0x149   : > { %738 = vmatprep.mubr.bf16.mxu0 %v427_v60  ;;  %1262 = vmatpush1.bf16.msra.mxu0 %v3202_v61  ;;  %v441_v60 = vpack.c.bf16 %v407_v58, %v405_v57  ;;  %v404_v61 = vld [vmem:[%s4151_s4 + $0x1c0] sm:$0xff] }
 0x14a   : > { %1263 = vmatprep.subr.bf16.mxu0 %v3207_v62  ;;  %v406_v62 = vld [vmem:[%s4151_s4 + $0x1d0] sm:$0xff] }
 0x14b   : > { %v440_v1 = vpack.c.bf16 %v406_v62, %v404_v61 }
 0x14d   : > { %1264 = vmatpush1.bf16.msra.mxu0 %v3205_v3  ;;  %v408_v3 = vld [vmem:[%s4151_s4 + $0x1e0] sm:$0xff] }
 0x14e   : > { %1265 = vmatprep.subr.bf16.mxu0 %v3210_v6  ;;  %v442_v5 = vpack.c.bf16 %v410_v4, %v408_v3 }
 0x150   : > { %739 = vmatmul.mubr.bf16.gmra.mrb[28].mxu0 %v426_v8 }
 0x151   : > { %748 = vmatprep.mubr.bf16.mxu0 %v429_v10  ;;  %1266 = vmatpush1.bf16.msra.mxu0 %v3208_v11 }
 0x152   : > { %1267 = vmatprep.subr.bf16.mxu0 %v3213_v12 }
 0x155   : > { %1268 = vmatpush1.bf16.msra.mxu0 %v3211_v17 }
 0x158   : > { %749 = vmatmul.mubr.bf16.gmra.mrb[32].mxu0 %v428_v21 }
 0x159   : > { %758 = vmatprep.mubr.bf16.mxu0 %v431_v23 }
 0x160   : > { %759 = vmatmul.mubr.bf16.gmra.mrb[36].mxu0 %v430_v31 }
 0x161   : > { %768 = vmatprep.mubr.bf16.mxu0 %v433_v32 }
 0x168   : > { %769 = vmatmul.mubr.bf16.gmra.mrb[40].mxu0 %v432_v39 }
 0x169   : > { %778 = vmatprep.mubr.bf16.mxu0 %v435_v40 }
 0x170   : > { %779 = vmatmul.mubr.bf16.gmra.mrb[44].mxu0 %v434_v46 }
 0x171   : > { %788 = vmatprep.mubr.bf16.mxu0 %v437_v47 }
 0x178   : > { %789 = vmatmul.mubr.bf16.gmra.mrb[48].mxu0 %v436_v53 }
 0x179   : > { %798 = vmatprep.mubr.bf16.mxu0 %v439_v54 }
 0x180   : > { %799 = vmatmul.mubr.bf16.gmra.mrb[52].mxu0 %v438_v59 }
 0x181   : > { %808 = vmatprep.mubr.bf16.mxu0 %v441_v60 }
 0x188   : > { %809 = vmatmul.mubr.bf16.gmra.mrb[56].mxu0 %v440_v1 }
 0x189   : > { %818 = vmatprep.mubr.bf16.mxu0 %v443_v2 }
 0x190   : > { %819 = vmatmul.mubr.bf16.gmra.mrb[60].mxu0 %v442_v5 }
 0x191   : > { %1269 = vmatprep.mubr.bf16.mxu0 %v4184_v49 }
 0x198   : > { %1270 = vmatmul.mubr.bf16.vlgmr.msra.gmra.mrb[64].mxu0 %v3214_v33 }
 0x199   : > { %1279 = vmatprep.mubr.bf16.mxu0 %v3217_v36 }
 0x1a0   : > { %1280 = vmatmul.mubr.bf16.gmra.mrb[68].mxu0 %v3219_v41 }
 0x1eb   : > { %v4245_v6 = vpop.f32.mrb[0].mxu0 }
 0x1ec   : > { %v672_v7 = vpop.f32.mrb[1].mxu0 }
 0x1ed   : > { %v4247_v8 = vpop.f32.mrb[2].mxu0 }
 0x1ee   : > { %v676_v10 = vpop.f32.mrb[3].mxu0 }
 0x1ef   : > { %v1352_v11 = vpack.c.bf16 %v676_v10, %v672_v7 }
 0x1f1   : > { %1415 = vmatprep.mubr.bf16.mxu1 %v1352_v11 }
 0x1f3   : > { %v4251_v12 = vpop.f32.mrb[4].mxu0 }
 0x1f4   : > { %v4253_v13 = vpop.f32.mrb[5].mxu0 }
 0x1f5   : > { %v4255_v14 = vpop.f32.mrb[6].mxu0 }
 0x1f6   : > { %v4259_v15 = vpop.f32.mrb[7].mxu0 }
 0x1fb   : > { %v4263_v17 = vpop.f32.mrb[8].mxu0 }
 0x1fc   : > { %v4265_v18 = vpop.f32.mrb[9].mxu0 }
 0x1fd   : > { %v4267_v19 = vpop.f32.mrb[10].mxu0 }
 0x1fe   : > { %v4271_v21 = vpop.f32.mrb[11].mxu0 }
 0x203   : > { %v4275_v23 = vpop.f32.mrb[12].mxu0 }
 0x204   : > { %v4277_v24 = vpop.f32.mrb[13].mxu0 }
 0x205   : > { %v4279_v25 = vpop.f32.mrb[14].mxu0 }
 0x206   : > { %v4283_v27 = vpop.f32.mrb[15].mxu0 }
 0x20b   : > { %v4287_v29 = vpop.f32.mrb[16].mxu0 }
 0x20c   : > { %v4289_v30 = vpop.f32.mrb[17].mxu0 }
 0x20d   : > { %v4291_v31 = vpop.f32.mrb[18].mxu0 }
 0x20e   : > { %v4295_v33 = vpop.f32.mrb[19].mxu0 }
 0x211   : > { %v1324_v26 = vpop.f32.mrb[0].mxu1 }
 0x213   : > { %v4299_v35 = vpop.f32.mrb[20].mxu0 }
 0x214   : > { %v4301_v36 = vpop.f32.mrb[21].mxu0 }
 0x215   : > { %v4303_v37 = vpop.f32.mrb[22].mxu0 }
 0x216   : > { %v4307_v39 = vpop.f32.mrb[23].mxu0 }
 0x21b   : > { %v4311_v41 = vpop.f32.mrb[24].mxu0 }
 0x21c   : > { %v4313_v42 = vpop.f32.mrb[25].mxu0 }
 0x21d   : > { %v4315_v43 = vpop.f32.mrb[26].mxu0 }
 0x21e   : > { %v4319_v45 = vpop.f32.mrb[27].mxu0 }
 0x223   : > { %v4323_v47 = vpop.f32.mrb[28].mxu0 }
 0x224   : > { %v4325_v48 = vpop.f32.mrb[29].mxu0 }
 0x225   : > { %v4327_v50 = vpop.f32.mrb[30].mxu0 }
 0x226   : > { %v4331_v52 = vpop.f32.mrb[31].mxu0 }
 0x22b   : > { %v4335_v54 = vpop.f32.mrb[32].mxu0 }
 0x22c   : > { %v4337_v55 = vpop.f32.mrb[33].mxu0 }
 0x22d   : > { %v4339_v56 = vpop.f32.mrb[34].mxu0 }
 0x22e   : > { %v4343_v58 = vpop.f32.mrb[35].mxu0 }
 0x233   : > { %v4347_v60 = vpop.f32.mrb[36].mxu0 }
 0x234   : > { %v4349_v61 = vpop.f32.mrb[37].mxu0 }
 0x235   : > { %v4351_v62 = vpop.f32.mrb[38].mxu0 }
 0x236   : > { %v4355_v0 = vpop.f32.mrb[39].mxu0 }
 0x23b   : > { %v4359_v2 = vpop.f32.mrb[40].mxu0 }
 0x23c   : > { %v4361_v3 = vpop.f32.mrb[41].mxu0 }
 0x23d   : > { %v4363_v4 = vpop.f32.mrb[42].mxu0 }
 0x23e   : > { %v4367_v7 = vpop.f32.mrb[43].mxu0 }
 0x243   : > { %v4371_v11 = vpop.f32.mrb[44].mxu0 }
 0x244   : > { %5160 = vst [vmem:[#allocation25_spill] sm:$0xff] %v4371_v11  ;;  %v4373_v63 = vpop.f32.mrb[45].mxu0 }
 0x245   : > { %v4375_v57 = vpop.f32.mrb[46].mxu0 }
 0x246   : > { %5161 = vst [vmem:[#allocation26_spill] sm:$0xff] %v4375_v57  ;;  %v4379_v59 = vpop.f32.mrb[47].mxu0 }
 0x24b   : > { %v4383_v5 = vpop.f32.mrb[48].mxu0 }
 0x24c   : > { %5162 = vst [vmem:[#allocation27_spill] sm:$0xff] %v4383_v5  ;;  %v4385_v53 = vpop.f32.mrb[49].mxu0 }
 0x24d   : > { %5163 = vst [vmem:[#allocation28_spill] sm:$0xff] %v4385_v53  ;;  %v4387_v44 = vpop.f32.mrb[50].mxu0 }
 0x24e   : > { %5164 = vst [vmem:[#allocation29_spill] sm:$0xff] %v4387_v44  ;;  %v4391_v46 = vpop.f32.mrb[51].mxu0 }
 0x24f   : > { %5165 = vst [vmem:[#allocation30_spill] sm:$0xff] %v4391_v46 }
 0x253   : > { %v4395_v1 = vpop.f32.mrb[52].mxu0 }
 0x254   : > { %5166 = vst [vmem:[#allocation31_spill] sm:$0xff] %v4395_v1  ;;  %v4397_v40 = vpop.f32.mrb[53].mxu0 }
 0x255   : > { %5167 = vst [vmem:[#allocation32_spill] sm:$0xff] %v4397_v40  ;;  %v4399_v32 = vpop.f32.mrb[54].mxu0 }
 0x256   : > { %5168 = vst [vmem:[#allocation33_spill] sm:$0xff] %v4399_v32  ;;  %v4403_v34 = vpop.f32.mrb[55].mxu0 }
 0x257   : > { %5169 = vst [vmem:[#allocation34_spill] sm:$0xff] %v4403_v34 }
 0x25b   : > { %v4407_v10 = vpop.f32.mrb[56].mxu0 }
 0x25c   : > { %5170 = vst [vmem:[#allocation35_spill] sm:$0xff] %v4407_v10  ;;  %v4409_v28 = vpop.f32.mrb[57].mxu0 }
 0x25d   : > { %5171 = vst [vmem:[#allocation36_spill] sm:$0xff] %v4409_v28  ;;  %v4411_v20 = vpop.f32.mrb[58].mxu0 }
 0x25e   : > { %5172 = vst [vmem:[#allocation37_spill] sm:$0xff] %v4411_v20  ;;  %v4415_v22 = vpop.f32.mrb[59].mxu0 }
 0x25f   : > { %5173 = vst [vmem:[#allocation38_spill] sm:$0xff] %v4415_v22 }
 0x263   : > { %v4419_v51 = vpop.f32.mrb[60].mxu0 }
 0x264   : > { %5174 = vst [vmem:[#allocation39_spill] sm:$0xff] %v4419_v51  ;;  %v4421_v16 = vpop.f32.mrb[61].mxu0  ;;  %v1326_v51 = vpop.f32.mrb[1].mxu1 }
 0x265   : > { %v4423_v9 = vpop.f32.mrb[62].mxu0 }
 0x266   : > { %5175 = vst [vmem:[#allocation40_spill] sm:$0xff] %v4423_v9  ;;  %v4427_v1 = vpop.f32.mrb[63].mxu0  ;;  %v1328_v9 = vpop.f32.mrb[2].mxu1 }
 0x267   : > { %v1382_v32 = vpack.c.bf16 %v4427_v1, %v4421_v16  ;;  %v1347_v16 = vpack.c.bf16 %v1328_v9, %v1324_v26  ;;  %v1330_v1 = vpop.f32.mrb[3].mxu1  ;;  %v5178_v9 = vpack.c.bf16 %v4255_v14, %v4251_v12  ;;  %v5179_v26 = vpack.c.bf16 %v4271_v21, %v4265_v18 }
 0x268   : > { %v1348_v11 = vpack.c.bf16 %v1330_v1, %v1326_v51  ;;  %v1334_v57 = vpop.f32.mrb[4].mxu1  ;;  %v5183_v12 = vpack.c.bf16 %v4295_v33, %v4289_v30  ;;  %v5185_v14 = vpack.c.bf16 %v4307_v39, %v4301_v36  ;;  %v5188_v18 = vpack.c.bf16 %v4315_v43, %v4311_v41  ;;  %v5198_v33 = vld [vmem:[#allocation26_spill] sm:$0xff]  ;;  %v5202_v39 = vld [vmem:[#allocation28_spill] sm:$0xff]  ;;  %v5205_v43 = vld [vmem:[#allocation27_spill] sm:$0xff] }
 0x269   : > { %v5190_v21 = vpack.c.bf16 %v4327_v50, %v4323_v47  ;;  %v5196_v30 = vpack.c.bf16 %v4363_v4, %v4359_v2  ;;  %v5208_v47 = vld [vmem:[#allocation32_spill] sm:$0xff]  ;;  %v5210_v50 = vld [vmem:[#allocation33_spill] sm:$0xff]  ;;  %v5211_v51 = vld [vmem:[#allocation31_spill] sm:$0xff] }
 0x26a   : > { %1961 = vmatprep.subr.bf16.mxu0 %v1348_v11 }
 0x26b   : > { %v1271_v38 = vpop.f32.mrb[64].mxu0  ;;  %1962 = vmatpush1.bf16.msra.mxu0 %v1347_v16 }
 0x26c   : > { %v1273_v10 = vpop.f32.mrb[65].mxu0 }
 0x26d   : > { %v1275_v20 = vpop.f32.mrb[66].mxu0 }
 0x26e   : > { %v1343_v40 = vpack.c.bf16 %v1275_v20, %v1271_v38  ;;  %v1277_v34 = vpop.f32.mrb[67].mxu0  ;;  %v1336_v20 = vpop.f32.mrb[5].mxu1 }
 0x26f   : > { %v1344_v49 = vpack.c.bf16 %v1277_v34, %v1273_v10  ;;  %v1338_v34 = vpop.f32.mrb[6].mxu1 }
 0x270   : > { %v1340_v38 = vpop.f32.mrb[7].mxu1 }
 0x271   : > { %1383 = vmatprep.subr.bf16.mxu1 %v1344_v49  ;;  %v1349_v49 = vpack.c.bf16 %v1338_v34, %v1334_v57  ;;  %v5217_v57 = vld [vmem:[#allocation35_spill] sm:$0xff] }
 0x272   : > { %1384 = vmatpush1.bf16.xpose.msra.mxu1 %v1343_v40  ;;  %v5177_v40 = vpack.c.bf16 %v4259_v15, %v4253_v13  ;;  %v5184_v13 = vpack.c.bf16 %v4291_v31, %v4287_v29  ;;  %v5186_v15 = vpack.c.bf16 %v4303_v37, %v4299_v35  ;;  %v5195_v29 = vpack.c.bf16 %v4367_v7, %v4361_v3  ;;  %v5199_v35 = vld [vmem:[#allocation25_spill] sm:$0xff]  ;;  %v5201_v37 = vld [vmem:[#allocation30_spill] sm:$0xff] }
 0x273   : > { %v1281_v28 = vpop.f32.mrb[68].mxu0  ;;  %v5197_v31 = vpack.c.bf16 %v4379_v59, %v4373_v63  ;;  %v5200_v36 = vpack.c.bf16 %v5198_v33, %v5199_v35  ;;  %v5203_v41 = vpack.c.bf16 %v5201_v37, %v5202_v39  ;;  %v5219_v59 = vld [vmem:[#allocation40_spill] sm:$0xff] }
 0x274   : > { %v1283_v22 = vpop.f32.mrb[69].mxu0 }
 0x275   : > { %v1285_v5 = vpop.f32.mrb[70].mxu0 }
 0x276   : > { %v1345_v44 = vpack.c.bf16 %v1285_v5, %v1281_v28  ;;  %v1287_v53 = vpop.f32.mrb[71].mxu0  ;;  %v5176_v28 = vpack.c.bf16 %v4247_v8, %v4245_v6  ;;  %v5181_v6 = vpack.c.bf16 %v4283_v27, %v4277_v24  ;;  %v5182_v8 = vpack.c.bf16 %v4279_v25, %v4275_v23 }
 0x277   : > { %v1346_v46 = vpack.c.bf16 %v1287_v53, %v1283_v22  ;;  %v1350_v22 = vpack.c.bf16 %v1340_v38, %v1336_v20  ;;  %v5191_v23 = vpack.c.bf16 %v4343_v58, %v4337_v55  ;;  %v5192_v24 = vpack.c.bf16 %v4339_v56, %v4335_v54  ;;  %v5213_v53 = vld [vmem:[#allocation38_spill] sm:$0xff]  ;;  %v5214_v54 = vld [vmem:[#allocation36_spill] sm:$0xff]  ;;  %v5216_v56 = vld [vmem:[#allocation37_spill] sm:$0xff] }
 0x278   : > { %v5193_v25 = vpack.c.bf16 %v4355_v0, %v4349_v61  ;;  %v5194_v27 = vpack.c.bf16 %v4351_v62, %v4347_v60  ;;  %v5215_v55 = vpack.c.bf16 %v5213_v53, %v5214_v54  ;;  %v5218_v58 = vpack.c.bf16 %v5216_v56, %v5217_v57  ;;  %v5220_v60 = vld [vmem:[#allocation39_spill] sm:$0xff] }
 0x279   : > { %1385 = vmatprep.subr.bf16.mxu1 %v1346_v46  ;;  %1963 = vmatprep.subr.bf16.mxu0 %v1350_v22  ;;  %v5207_v46 = vld [vmem:[#allocation34_spill] sm:$0xff]  ;;  %v5221_v61 = vpack.c.bf16 %v5219_v59, %v5220_v60 }
 0x27a   : > { %1386 = vmatpush1.bf16.xpose.msra.mxu1 %v1345_v44  ;;  %1964 = vmatpush1.bf16.msra.mxu0 %v1349_v49  ;;  %v5180_v44 = vpack.c.bf16 %v4267_v19, %v4263_v17  ;;  %v5187_v17 = vpack.c.bf16 %v4319_v45, %v4313_v42  ;;  %v5189_v19 = vpack.c.bf16 %v4331_v52, %v4325_v48  ;;  %v5204_v42 = vld [vmem:[#allocation29_spill] sm:$0xff] }
 0x27b   : > { %v5206_v45 = vpack.c.bf16 %v5204_v42, %v5205_v43  ;;  %v5209_v48 = vpack.c.bf16 %v5207_v46, %v5208_v47  ;;  %v5212_v52 = vpack.c.bf16 %v5210_v50, %v5211_v51 }
 0x281   : > { %1416 = vmatmul.mubr.bf16.vlgmr.msra.gmra.mrb[8].mxu1 %v5176_v28 }
 0x282   : > { %1423 = vmatprep.mubr.bf16.mxu1 %v5177_v40 }
 0x289   : > { %1424 = vmatmul.mubr.bf16.gmra.mrb[12].mxu1 %v5178_v9 }
 0x28a   : > { %1431 = vmatprep.mubr.bf16.mxu1 %v5179_v26 }
 0x291   : > { %1432 = vmatmul.mubr.bf16.gmra.mrb[16].mxu1 %v5180_v44 }
 0x292   : > { %1439 = vmatprep.mubr.bf16.mxu1 %v5181_v6 }
 0x299   : > { %1440 = vmatmul.mubr.bf16.gmra.mrb[20].mxu1 %v5182_v8 }
 0x29a   : > { %1447 = vmatprep.mubr.bf16.mxu1 %v5183_v12 }
 0x2a1   : > { %1448 = vmatmul.mubr.bf16.gmra.mrb[24].mxu1 %v5184_v13 }
 0x2a2   : > { %1455 = vmatprep.mubr.bf16.mxu1 %v5185_v14 }
 0x2a9   : > { %1456 = vmatmul.mubr.bf16.gmra.mrb[28].mxu1 %v5186_v15 }
 0x2aa   : > { %1463 = vmatprep.mubr.bf16.mxu1 %v5187_v17 }
 0x2b1   : > { %1464 = vmatmul.mubr.bf16.gmra.mrb[32].mxu1 %v5188_v18 }
 0x2b2   : > { %1471 = vmatprep.mubr.bf16.mxu1 %v5189_v19 }
 0x2b9   : > { %1472 = vmatmul.mubr.bf16.gmra.mrb[36].mxu1 %v5190_v21 }
 0x2ba   : > { %1479 = vmatprep.mubr.bf16.mxu1 %v5191_v23 }
 0x2c1   : > { %1480 = vmatmul.mubr.bf16.gmra.mrb[40].mxu1 %v5192_v24 }
 0x2c2   : > { %1487 = vmatprep.mubr.bf16.mxu1 %v5193_v25 }
 0x2c9   : > { %1488 = vmatmul.mubr.bf16.gmra.mrb[44].mxu1 %v5194_v27 }
 0x2ca   : > { %1495 = vmatprep.mubr.bf16.mxu1 %v5195_v29 }
 0x2d1   : > { %1496 = vmatmul.mubr.bf16.gmra.mrb[48].mxu1 %v5196_v30 }
 0x2d2   : > { %1503 = vmatprep.mubr.bf16.mxu1 %v5197_v31 }
 0x2d9   : > { %1504 = vmatmul.mubr.bf16.gmra.mrb[52].mxu1 %v5200_v36 }
 0x2da   : > { %1511 = vmatprep.mubr.bf16.mxu1 %v5203_v41 }
 0x2e1   : > { %1512 = vmatmul.mubr.bf16.gmra.mrb[56].mxu1 %v5206_v45 }
 0x2e2   : > { %1519 = vmatprep.mubr.bf16.mxu1 %v5209_v48 }
 0x2e9   : > { %1520 = vmatmul.mubr.bf16.gmra.mrb[60].mxu1 %v5212_v52 }
 0x2ea   : > { %1527 = vmatprep.mubr.bf16.mxu1 %v5215_v55 }
 0x2f1   : > { %1528 = vmatmul.mubr.bf16.gmra.mrb[64].mxu1 %v5218_v58 }
 0x2f2   : > { %1535 = vmatprep.mubr.bf16.mxu1 %v1382_v32 }
 0x2f9   : > { %1536 = vmatmul.mubr.bf16.gmra.mrb[68].mxu1 %v5221_v61 }
 0x354   : > { %v4521_v62 = vpop.f32.mrb[8].mxu1 }
 0x355   : > { %v1419_v63 = vpop.f32.mrb[9].mxu1  ;;  %v1545_v0 = vsel %vm1544_vm0, %v4521_v62, -inf }
 0x356   : > { %1546 = vmax.xlane.f32.xlu0 %v1545_v0  ;;  %v4525_v2 = vpop.f32.mrb[10].mxu1 }
 0x357   : > { %v1422_v3 = vpop.f32.mrb[11].mxu1  ;;  %v1548_v4 = vsel %vm1544_vm0, %v4525_v2, -inf }
 0x35a   : > { %1549 = vmax.xlane.f32.xlu0 %v1548_v4 }
 0x35c   : > { %v4529_v32 = vpop.f32.mrb[12].mxu1 }
 0x35d   : > { %v1427_v5 = vpop.f32.mrb[13].mxu1  ;;  %v1551_v7 = vsel %vm1544_vm0, %v4529_v32, -inf }
 0x35e   : > { %1552 = vmax.xlane.f32.xlu1 %v1551_v7  ;;  %v4533_v10 = vpop.f32.mrb[14].mxu1 }
 0x35f   : > { %v1430_v11 = vpop.f32.mrb[15].mxu1  ;;  %v1554_v16 = vsel %vm1544_vm0, %v4533_v10, -inf }
 0x362   : > { %1555 = vmax.xlane.f32.xlu1 %v1554_v16 }
 0x364   : > { %v4537_v1 = vpop.f32.mrb[16].mxu1 }
 0x365   : > { %v1435_v20 = vpop.f32.mrb[17].mxu1  ;;  %v1557_v34 = vsel %vm1544_vm0, %v4537_v1, -inf }
 0x366   : > { %1558 = vmax.xlane.f32.xlu0 %v1557_v34  ;;  %v4541_v49 = vpop.f32.mrb[18].mxu1 }
 0x367   : > { %v1438_v38 = vpop.f32.mrb[19].mxu1  ;;  %v1560_v28 = vsel %vm1544_vm0, %v4541_v49, -inf }
 0x368   : > { %1561 = vmax.xlane.f32.xlu1 %v1560_v28 }
 0x36c   : > { %v4545_v22 = vpop.f32.mrb[20].mxu1 }
 0x36d   : > { %v1443_v40 = vpop.f32.mrb[21].mxu1  ;;  %v1563_v9 = vsel %vm1544_vm0, %v4545_v22, -inf }
 0x36e   : > { %1564 = vmax.xlane.f32.xlu0 %v1563_v9  ;;  %v4549_v26 = vpop.f32.mrb[22].mxu1 }
 0x36f   : > { %v1446_v44 = vpop.f32.mrb[23].mxu1  ;;  %v1566_v6 = vsel %vm1544_vm0, %v4549_v26, -inf }
 0x370   : > { %1567 = vmax.xlane.f32.xlu1 %v1566_v6 }
 0x374   : > { %v4553_v8 = vpop.f32.mrb[24].mxu1 }
 0x375   : > { %v1451_v12 = vpop.f32.mrb[25].mxu1  ;;  %v1569_v13 = vsel %vm1544_vm0, %v4553_v8, -inf }
 0x376   : > { %1570 = vmax.xlane.f32.xlu0 %v1569_v13  ;;  %v4557_v14 = vpop.f32.mrb[26].mxu1 }
 0x377   : > { %v1454_v15 = vpop.f32.mrb[27].mxu1  ;;  %v1572_v17 = vsel %vm1544_vm0, %v4557_v14, -inf }
 0x378   : > { %1573 = vmax.xlane.f32.xlu1 %v1572_v17 }
 0x37c   : > { %v4561_v18 = vpop.f32.mrb[28].mxu1 }
 0x37d   : > { %v1459_v19 = vpop.f32.mrb[29].mxu1  ;;  %v1575_v21 = vsel %vm1544_vm0, %v4561_v18, -inf }
 0x37e   : > { %1576 = vmax.xlane.f32.xlu0 %v1575_v21  ;;  %v4565_v23 = vpop.f32.mrb[30].mxu1 }
 0x37f   : > { %v1462_v24 = vpop.f32.mrb[31].mxu1  ;;  %v1578_v25 = vsel %vm1544_vm0, %v4565_v23, -inf }
 0x380   : > { %1579 = vmax.xlane.f32.xlu1 %v1578_v25 }
 0x384   : > { %v4569_v27 = vpop.f32.mrb[32].mxu1 }
 0x385   : > { %v1467_v29 = vpop.f32.mrb[33].mxu1  ;;  %v1581_v30 = vsel %vm1544_vm0, %v4569_v27, -inf }
 0x386   : > { %1582 = vmax.xlane.f32.xlu0 %v1581_v30  ;;  %v4573_v31 = vpop.f32.mrb[34].mxu1 }
 0x387   : > { %v1470_v33 = vpop.f32.mrb[35].mxu1  ;;  %v1584_v35 = vsel %vm1544_vm0, %v4573_v31, -inf }
 0x388   : > { %1585 = vmax.xlane.f32.xlu1 %v1584_v35 }
 0x38c   : > { %v4577_v36 = vpop.f32.mrb[36].mxu1 }
 0x38d   : > { %v1475_v37 = vpop.f32.mrb[37].mxu1  ;;  %v1587_v39 = vsel %vm1544_vm0, %v4577_v36, -inf }
 0x38e   : > { %1588 = vmax.xlane.f32.xlu0 %v1587_v39  ;;  %v4581_v41 = vpop.f32.mrb[38].mxu1 }
 0x38f   : > { %v1478_v42 = vpop.f32.mrb[39].mxu1  ;;  %v1590_v43 = vsel %vm1544_vm0, %v4581_v41, -inf }
 0x390   : > { %1591 = vmax.xlane.f32.xlu1 %v1590_v43 }
 0x394   : > { %v4585_v45 = vpop.f32.mrb[40].mxu1 }
 0x395   : > { %v1483_v46 = vpop.f32.mrb[41].mxu1  ;;  %v1593_v47 = vsel %vm1544_vm0, %v4585_v45, -inf }
 0x396   : > { %1594 = vmax.xlane.f32.xlu0 %v1593_v47  ;;  %v4589_v48 = vpop.f32.mrb[42].mxu1 }
 0x397   : > { %v1486_v50 = vpop.f32.mrb[43].mxu1  ;;  %v1596_v51 = vsel %vm1544_vm0, %v4589_v48, -inf }
 0x398   : > { %1597 = vmax.xlane.f32.xlu1 %v1596_v51 }
 0x39c   : > { %v4593_v52 = vpop.f32.mrb[44].mxu1 }
 0x39d   : > { %v1491_v53 = vpop.f32.mrb[45].mxu1  ;;  %v1599_v54 = vsel %vm1544_vm0, %v4593_v52, -inf }
 0x39e   : > { %1600 = vmax.xlane.f32.xlu0 %v1599_v54  ;;  %v4597_v55 = vpop.f32.mrb[46].mxu1 }
 0x39f   : > { %v1494_v56 = vpop.f32.mrb[47].mxu1  ;;  %v1602_v57 = vsel %vm1544_vm0, %v4597_v55, -inf }
 0x3a0   : > { %1603 = vmax.xlane.f32.xlu1 %v1602_v57 }
 0x3a4   : > { %v4601_v58 = vpop.f32.mrb[48].mxu1 }
 0x3a5   : > { %v1499_v59 = vpop.f32.mrb[49].mxu1  ;;  %v1605_v60 = vsel %vm1544_vm0, %v4601_v58, -inf }
 0x3a6   : > { %1606 = vmax.xlane.f32.xlu0 %v1605_v60  ;;  %v4605_v61 = vpop.f32.mrb[50].mxu1 }
 0x3a7   : > { %v1502_v63 = vpop.f32.mrb[51].mxu1  ;;  %v1608_v0 = vsel %vm1544_vm0, %v4605_v61, -inf }
 0x3a8   : > { %1609 = vmax.xlane.f32.xlu1 %v1608_v0 }
 0x3ac   : > { %v4609_v3 = vpop.f32.mrb[52].mxu1 }
 0x3ad   : > { %v1507_v4 = vpop.f32.mrb[53].mxu1  ;;  %v1611_v5 = vsel %vm1544_vm0, %v4609_v3, -inf }
 0x3ae   : > { %1612 = vmax.xlane.f32.xlu0 %v1611_v5  ;;  %v4613_v7 = vpop.f32.mrb[54].mxu1 }
 0x3af   : > { %v1510_v11 = vpop.f32.mrb[55].mxu1  ;;  %v1614_v16 = vsel %vm1544_vm0, %v4613_v7, -inf }
 0x3b0   : > { %1615 = vmax.xlane.f32.xlu1 %v1614_v16 }
 0x3b4   : > { %v4617_v20 = vpop.f32.mrb[56].mxu1 }
 0x3b5   : > { %v1515_v34 = vpop.f32.mrb[57].mxu1  ;;  %v1617_v60 = vsel %vm1544_vm0, %v4617_v20, -inf }
 0x3b6   : > { %v4619_v38 = vpop.f32.mrb[58].mxu1 }
 0x3b7   : > { %v1518_v28 = vpop.f32.mrb[59].mxu1 }
 0x3bc   : > { %v4621_v40 = vpop.f32.mrb[60].mxu1 }
 0x3bd   : > { %v1523_v9 = vpop.f32.mrb[61].mxu1 }
 0x3be   : > { %v4623_v44 = vpop.f32.mrb[62].mxu1 }
 0x3bf   : > { %v1526_v6 = vpop.f32.mrb[63].mxu1 }
 0x3c0   : > { %v1623_v6 = vsel %vm1544_vm0, %v4621_v40, -inf }
 0x3c4   : > { %v4625_v12 = vpop.f32.mrb[64].mxu1 }
 0x3c5   : > { %v1531_v13 = vpop.f32.mrb[65].mxu1 }
 0x3c6   : > { %v4627_v15 = vpop.f32.mrb[66].mxu1 }
 0x3c7   : > { %v1534_v17 = vpop.f32.mrb[67].mxu1 }
 0x3cc   : > { %v4629_v19 = vpop.f32.mrb[68].mxu1 }
 0x3cd   : > { %v1539_v21 = vpop.f32.mrb[69].mxu1 }
 0x3ce   : > { %v4631_v24 = vpop.f32.mrb[70].mxu1 }
 0x3cf   : > { %v1542_v25 = vpop.f32.mrb[71].mxu1 }
 0x3e3   : > { %v1547_v29 = vpop.xlane.xlu0 %1546 }
 0x3e4   : > { %v1641_v30 = vsub.f32 %v4521_v62, %v1547_v29 }
 0x3e6   : > { %v1673_v33 = vmul.f32 1.442695, %v1641_v30 }
 0x3e7   : > { %v1550_v35 = vpop.xlane.xlu0 %1549 }
 0x3e8   : > { %3316 = vpow2.f32 %v1673_v33  ;;  %v1642_v37 = vsub.f32 %v4525_v2, %v1550_v35 }
 0x3ea   : > { %v1675_v39 = vmul.f32 1.442695, %v1642_v37 }
 0x3eb   : > { %v1553_v42 = vpop.xlane.xlu1 %1552 }
 0x3ec   : > { %3318 = vpow2.f32 %v1675_v39  ;;  %v1643_v43 = vsub.f32 %v4529_v32, %v1553_v42  ;;  %v1629_v39 = vsel %vm1544_vm0, %v4625_v12, -inf }
 0x3ee   : > { %v1677_v46 = vmul.f32 1.442695, %v1643_v43 }
 0x3ef   : > { %v1556_v47 = vpop.xlane.xlu1 %1555 }
 0x3f0   : > { %3320 = vpow2.f32 %v1677_v46  ;;  %v1644_v50 = vsub.f32 %v4533_v10, %v1556_v47 }
 0x3f2   : > { %v4637_v51 = vpop.eup %3316  ;;  %v1679_v53 = vmul.f32 1.442695, %v1644_v50 }
 0x3f3   : > { %v1559_v54 = vpop.xlane.xlu0 %1558  ;;  %v1737_v62 = vsel %vm1544_vm0, %v4637_v51, 0.0 }
 0x3f4   : > { %3322 = vpow2.f32 %v1679_v53  ;;  %v1645_v2 = vsub.f32 %v4537_v1, %v1559_v54  ;;  %1738 = vadd.xlane.f32.xlu0 %v1737_v62 }
 0x3f5   : > { %v1562_v56 = vpop.xlane.xlu1 %1561 }
 0x3f6   : > { %v4642_v57 = vpop.eup %3318  ;;  %v1681_v32 = vmul.f32 1.442695, %v1645_v2  ;;  %v1646_v59 = vsub.f32 %v4541_v49, %v1562_v56  ;;  %v1620_v49 = vsel %vm1544_vm0, %v4619_v38, -inf  ;;  %v1635_v56 = vsel %vm1544_vm0, %v4629_v19, -inf }
 0x3f7   : > { %v1740_v10 = vsel %vm1544_vm0, %v4642_v57, 0.0 }
 0x3f8   : > { %3324 = vpow2.f32 %v1681_v32  ;;  %v1683_v63 = vmul.f32 1.442695, %v1646_v59  ;;  %1741 = vadd.xlane.f32.xlu1 %v1740_v10  ;;  %1618 = vmax.xlane.f32.xlu0 %v1617_v60 }
 0x3fa   : > { %v4649_v0 = vpop.eup %3320  ;;  %3326 = vpow2.f32 %v1683_v63 }
 0x3fb   : > { %v1565_v1 = vpop.xlane.xlu0 %1564  ;;  %v1743_v4 = vsel %vm1544_vm0, %v4649_v0, 0.0 }
 0x3fc   : > { %v1647_v5 = vsub.f32 %v4545_v22, %v1565_v1  ;;  %1744 = vadd.xlane.f32.xlu0 %v1743_v4  ;;  %1621 = vmax.xlane.f32.xlu1 %v1620_v49  ;;  %v3797_v4 = vmov 0  }
 0x3fd   : > { %v1568_v11 = vpop.xlane.xlu1 %1567  ;;  %1993 = vmatprep.mubr.bf16.mxu0 %v3797_v4 }
 0x3fe   : > { %v4656_v16 = vpop.eup %3322  ;;  %v1685_v34 = vmul.f32 1.442695, %v1647_v5  ;;  %v1648_v28 = vsub.f32 %v4549_v26, %v1568_v11  ;;  %v1626_v26 = vsel %vm1544_vm0, %v4623_v44, -inf }
 0x3ff   : > { %v1746_v9 = vsel %vm1544_vm0, %v4656_v16, 0.0 }
 0x400   : > { %3328 = vpow2.f32 %v1685_v34  ;;  %v1687_v13 = vmul.f32 1.442695, %v1648_v28  ;;  %1747 = vadd.xlane.f32.xlu1 %v1746_v9  ;;  %1624 = vmax.xlane.f32.xlu0 %v1623_v6 }
 0x402   : > { %v4663_v17 = vpop.eup %3324  ;;  %3330 = vpow2.f32 %v1687_v13 }
 0x403   : > { %v1571_v22 = vpop.xlane.xlu0 %1570  ;;  %v1749_v21 = vsel %vm1544_vm0, %v4663_v17, 0.0 }
 0x404   : > { %v4669_v25 = vpop.eup %3326  ;;  %v1649_v29 = vsub.f32 %v4553_v8, %v1571_v22  ;;  %1750 = vadd.xlane.f32.xlu0 %v1749_v21  ;;  %1627 = vmax.xlane.f32.xlu1 %v1626_v26 }
 0x405   : > { %v1574_v30 = vpop.xlane.xlu1 %1573  ;;  %v1752_v37 = vsel %vm1544_vm0, %v4669_v25, 0.0 }
 0x406   : > { %v1689_v33 = vmul.f32 1.442695, %v1649_v29  ;;  %v1650_v35 = vsub.f32 %v4557_v14, %v1574_v30  ;;  %v1632_v14 = vsel %vm1544_vm0, %v4627_v15, -inf }
 0x408   : > { %3332 = vpow2.f32 %v1689_v33  ;;  %v1691_v42 = vmul.f32 1.442695, %v1650_v35  ;;  %1753 = vadd.xlane.f32.xlu1 %v1752_v37  ;;  %1630 = vmax.xlane.f32.xlu0 %v1629_v39 }
 0x40a   : > { %v4677_v43 = vpop.eup %3328  ;;  %3334 = vpow2.f32 %v1691_v42 }
 0x40b   : > { %v1577_v8 = vpop.xlane.xlu0 %1576  ;;  %v1755_v46 = vsel %vm1544_vm0, %v4677_v43, 0.0 }
 0x40c   : > { %v4683_v47 = vpop.eup %3330  ;;  %v1651_v50 = vsub.f32 %v4561_v18, %v1577_v8  ;;  %1756 = vadd.xlane.f32.xlu0 %v1755_v46  ;;  %1633 = vmax.xlane.f32.xlu1 %v1632_v14 }
 0x40d   : > { %v1580_v53 = vpop.xlane.xlu1 %1579  ;;  %v1758_v2 = vsel %vm1544_vm0, %v4683_v47, 0.0 }
 0x40e   : > { %v1693_v54 = vmul.f32 1.442695, %v1651_v50  ;;  %v1652_v62 = vsub.f32 %v4565_v23, %v1580_v53  ;;  %v1638_v23 = vsel %vm1544_vm0, %v4631_v24, -inf }
 0x410   : > { %3336 = vpow2.f32 %v1693_v54  ;;  %v1695_v32 = vmul.f32 1.442695, %v1652_v62  ;;  %1759 = vadd.xlane.f32.xlu1 %v1758_v2  ;;  %1636 = vmax.xlane.f32.xlu0 %v1635_v56 }
 0x412   : > { %v4691_v59 = vpop.eup %3332  ;;  %3338 = vpow2.f32 %v1695_v32 }
 0x413   : > { %v1583_v18 = vpop.xlane.xlu0 %1582  ;;  %v1761_v10 = vsel %vm1544_vm0, %v4691_v59, 0.0 }
 0x414   : > { %v4697_v60 = vpop.eup %3334  ;;  %v1653_v63 = vsub.f32 %v4569_v27, %v1583_v18  ;;  %1762 = vadd.xlane.f32.xlu0 %v1761_v10  ;;  %1639 = vmax.xlane.f32.xlu1 %v1638_v23 }
 0x415   : > { %v1586_v1 = vpop.xlane.xlu1 %1585  ;;  %v1764_v11 = vsel %vm1544_vm0, %v4697_v60, 0.0 }
 0x416   : > { %v1697_v49 = vmul.f32 1.442695, %v1653_v63  ;;  %v1654_v5 = vsub.f32 %v4573_v31, %v1586_v1 }
 0x418   : > { %3340 = vpow2.f32 %v1697_v49  ;;  %v1699_v34 = vmul.f32 1.442695, %v1654_v5  ;;  %1765 = vadd.xlane.f32.xlu1 %v1764_v11 }
 0x41a   : > { %v4704_v28 = vpop.eup %3336  ;;  %3342 = vpow2.f32 %v1699_v34 }
 0x41b   : > { %v1589_v9 = vpop.xlane.xlu0 %1588  ;;  %v1767_v27 = vsel %vm1544_vm0, %v4704_v28, 0.0 }
 0x41c   : > { %v4708_v6 = vpop.eup %3338  ;;  %v1655_v13 = vsub.f32 %v4577_v36, %v1589_v9  ;;  %1768 = vadd.xlane.f32.xlu0 %v1767_v27 }
 0x41d   : > { %v1592_v22 = vpop.xlane.xlu1 %1591  ;;  %v1770_v31 = vsel %vm1544_vm0, %v4708_v6, 0.0 }
 0x41e   : > { %v1701_v21 = vmul.f32 1.442695, %v1655_v13  ;;  %v1656_v26 = vsub.f32 %v4581_v41, %v1592_v22  ;;  %1771 = vadd.xlane.f32.xlu1 %v1770_v31 }
 0x420   : > { %3344 = vpow2.f32 %v1701_v21  ;;  %v1703_v29 = vmul.f32 1.442695, %v1656_v26 }
 0x422   : > { %v4714_v30 = vpop.eup %3340  ;;  %3346 = vpow2.f32 %v1703_v29 }
 0x423   : > { %v1595_v33 = vpop.xlane.xlu0 %1594  ;;  %v1773_v35 = vsel %vm1544_vm0, %v4714_v30, 0.0 }
 0x424   : > { %v4718_v37 = vpop.eup %3342  ;;  %v1657_v36 = vsub.f32 %v4585_v45, %v1595_v33  ;;  %1774 = vadd.xlane.f32.xlu0 %v1773_v35 }
 0x425   : > { %v1598_v39 = vpop.xlane.xlu1 %1597  ;;  %v1776_v42 = vsel %vm1544_vm0, %v4718_v37, 0.0 }
 0x426   : > { %v1705_v41 = vmul.f32 1.442695, %v1657_v36  ;;  %v1658_v8 = vsub.f32 %v4589_v48, %v1598_v39  ;;  %1777 = vadd.xlane.f32.xlu1 %v1776_v42 }
 0x428   : > { %3348 = vpow2.f32 %v1705_v41  ;;  %v1707_v46 = vmul.f32 1.442695, %v1658_v8 }
 0x42a   : > { %v4724_v14 = vpop.eup %3344  ;;  %3350 = vpow2.f32 %v1707_v46 }
 0x42b   : > { %v1601_v50 = vpop.xlane.xlu0 %1600  ;;  %v1779_v53 = vsel %vm1544_vm0, %v4724_v14, 0.0 }
 0x42c   : > { %v4728_v54 = vpop.eup %3346  ;;  %v1659_v45 = vsub.f32 %v4593_v52, %v1601_v50  ;;  %1780 = vadd.xlane.f32.xlu0 %v1779_v53 }
 0x42d   : > { %v1604_v62 = vpop.xlane.xlu1 %1603  ;;  %v1782_v2 = vsel %vm1544_vm0, %v4728_v54, 0.0 }
 0x42e   : > { %v1709_v48 = vmul.f32 1.442695, %v1659_v45  ;;  %v1660_v56 = vsub.f32 %v4597_v55, %v1604_v62  ;;  %1783 = vadd.xlane.f32.xlu1 %v1782_v2 }
 0x430   : > { %3352 = vpow2.f32 %v1709_v48  ;;  %v1711_v32 = vmul.f32 1.442695, %v1660_v56 }
 0x432   : > { %v4734_v18 = vpop.eup %3348  ;;  %3354 = vpow2.f32 %v1711_v32 }
 0x433   : > { %v1607_v10 = vpop.xlane.xlu0 %1606  ;;  %v1785_v23 = vsel %vm1544_vm0, %v4734_v18, 0.0 }
 0x434   : > { %v4738_v63 = vpop.eup %3350  ;;  %v1661_v52 = vsub.f32 %v4601_v58, %v1607_v10  ;;  %1786 = vadd.xlane.f32.xlu0 %v1785_v23 }
 0x435   : > { %v1610_v1 = vpop.xlane.xlu1 %1609  ;;  %v1788_v49 = vsel %vm1544_vm0, %v4738_v63, 0.0 }
 0x436   : > { %v1713_v55 = vmul.f32 1.442695, %v1661_v52  ;;  %v1662_v5 = vsub.f32 %v4605_v61, %v1610_v1  ;;  %1789 = vadd.xlane.f32.xlu1 %v1788_v49 }
 0x438   : > { %3356 = vpow2.f32 %v1713_v55  ;;  %v1715_v11 = vmul.f32 1.442695, %v1662_v5 }
 0x43a   : > { %v4744_v34 = vpop.eup %3352  ;;  %3358 = vpow2.f32 %v1715_v11 }
 0x43b   : > { %v1613_v9 = vpop.xlane.xlu0 %1612  ;;  %v1791_v27 = vsel %vm1544_vm0, %v4744_v34, 0.0 }
 0x43c   : > { %v4748_v13 = vpop.eup %3354  ;;  %v1663_v58 = vsub.f32 %v4609_v3, %v1613_v9  ;;  %1792 = vadd.xlane.f32.xlu0 %v1791_v27 }
 0x43d   : > { %v1616_v22 = vpop.xlane.xlu1 %1615  ;;  %v1794_v31 = vsel %vm1544_vm0, %v4748_v13, 0.0 }
 0x43e   : > { %v1717_v61 = vmul.f32 1.442695, %v1663_v58  ;;  %v1664_v21 = vsub.f32 %v4613_v7, %v1616_v22  ;;  %1795 = vadd.xlane.f32.xlu1 %v1794_v31 }
 0x440   : > { %3360 = vpow2.f32 %v1717_v61  ;;  %v1719_v26 = vmul.f32 1.442695, %v1664_v21 }
 0x442   : > { %v4754_v29 = vpop.eup %3356  ;;  %3362 = vpow2.f32 %v1719_v26 }
 0x443   : > { %v1797_v33 = vsel %vm1544_vm0, %v4754_v29, 0.0 }
 0x444   : > { %v4758_v35 = vpop.eup %3358  ;;  %1798 = vadd.xlane.f32.xlu0 %v1797_v33 }
 0x445   : > { %v1800_v3 = vsel %vm1544_vm0, %v4758_v35, 0.0 }
 0x446   : > { %1801 = vadd.xlane.f32.xlu1 %v1800_v3 }
 0x44a   : > { %v4762_v36 = vpop.eup %3360 }
 0x44b   : > { %v1803_v7 = vsel %vm1544_vm0, %v4762_v36, 0.0 }
 0x44c   : > { %v4766_v39 = vpop.eup %3362  ;;  %1804 = vadd.xlane.f32.xlu0 %v1803_v7 }
 0x44d   : > { %v1806_v42 = vsel %vm1544_vm0, %v4766_v39, 0.0 }
 0x44e   : > { %1807 = vadd.xlane.f32.xlu1 %v1806_v42 }
 0x481   : > { %v1739_v41 = vpop.xlane.xlu0 %1738 }
 0x482   : > { %3364 = vrcp.f32 %v1739_v41 }
 0x485   : > { %v1742_v8 = vpop.xlane.xlu1 %1741  ;;  %v1619_v46 = vpop.xlane.xlu0 %1618 }
 0x486   : > { %3366 = vrcp.f32 %v1742_v8  ;;  %v1665_v50 = vsub.f32 %v4617_v20, %v1619_v46 }
 0x488   : > { %v1721_v53 = vmul.f32 1.442695, %v1665_v50 }
 0x489   : > { %v1745_v45 = vpop.xlane.xlu0 %1744  ;;  %v1622_v62 = vpop.xlane.xlu1 %1621 }
 0x48a   : > { %3368 = vpow2.f32 %v1721_v53  ;;  %v1666_v2 = vsub.f32 %v4619_v38, %v1622_v62 }
 0x48b   : > { %3370 = vrcp.f32 %v1745_v45 }
 0x48c   : > { %v1723_v48 = vmul.f32 1.442695, %v1666_v2  ;;  %v3365_v10 = vpop.eup %3364 }
 0x48d   : > { %v1748_v56 = vpop.xlane.xlu1 %1747  ;;  %v1625_v32 = vpop.xlane.xlu0 %1624  ;;  %v1865_v49 = vmul.f32 %v3365_v10, %v4637_v51 }
 0x48e   : > { %3372 = vpow2.f32 %v1723_v48  ;;  %v1667_v23 = vsub.f32 %v4621_v40, %v1625_v32 }
 0x48f   : > { %3374 = vrcp.f32 %v1748_v56 }
 0x490   : > { %v3367_v52 = vpop.eup %3366  ;;  %v1725_v1 = vmul.f32 1.442695, %v1667_v23 }
 0x491   : > { %v1866_v20 = vmul.f32 %v3367_v52, %v4642_v57  ;;  %v1751_v55 = vpop.xlane.xlu0 %1750  ;;  %v1628_v5 = vpop.xlane.xlu1 %1627 }
 0x492   : > { %3376 = vpow2.f32 %v1725_v1  ;;  %v1668_v38 = vsub.f32 %v4623_v44, %v1628_v5 }
 0x493   : > { %v1897_v11 = vpack.c.bf16 %v1866_v20, %v1865_v49  ;;  %3378 = vrcp.f32 %v1751_v55 }
 0x494   : > { %v4776_v9 = vpop.eup %3368  ;;  %v1727_v27 = vmul.f32 1.442695, %v1668_v38 }
 0x495   : > { %2915 = vmatmul.mubr.msk.bf16.vlgmr.msra.gmra.mrb[72].mxu0 %vm1544_vm0, %v1897_v11  ;;  %v1754_v40 = vpop.xlane.xlu1 %1753  ;;  %v1631_v58 = vpop.xlane.xlu0 %1630  ;;  %v1809_v22 = vsel %vm1544_vm0, %v4776_v9, 0.0 }
 0x496   : > { %3380 = vpow2.f32 %v1727_v27  ;;  %v1669_v51 = vsub.f32 %v4625_v12, %v1631_v58  ;;  %1810 = vadd.xlane.f32.xlu0 %v1809_v22  ;;  %2003 = vmatprep.mubr.bf16.mxu0 %v3797_v4  ;;  %v3371_v57 = vpop.eup %3370  ;;  %v3268_v22 = vld [vmem:[#allocation10] ss:$8 sps:$4 sm:$0xff]  }
 0x497   : > { %3382 = vrcp.f32 %v1754_v40  ;;  %v1867_v12 = vmul.f32 %v3371_v57, %v4649_v0 }
 0x498   : > { %v4783_v44 = vpop.eup %3372  ;;  %v1729_v31 = vmul.f32 1.442695, %v1669_v51  ;;  %v3270_v51 = vld [vmem:[#allocation10 + $0x4] ss:$8 sps:$4 sm:$0xff]  }
 0x499   : > { %v3375_v61 = vpop.eup %3374  ;;  %v1757_v21 = vpop.xlane.xlu0 %1756  ;;  %v1812_v33 = vsel %vm1544_vm0, %v4783_v44, 0.0  ;;  %2378 = vmatprep.subr.bf16.mxu1 %v3270_v51 }
 0x49a   : > { %v1634_v26 = vpop.xlane.xlu1 %1633  ;;  %3384 = vpow2.f32 %v1729_v31  ;;  %1813 = vadd.xlane.f32.xlu1 %v1812_v33  ;;  %v1868_v7 = vmul.f32 %v3375_v61, %v4656_v16  ;;  %2379 = vmatpush1.bf16.msra.mxu1 %v3268_v22  ;;  %v3273_v61 = vld [vmem:[#allocation10 + $0x14] ss:$8 sps:$4 sm:$0xff]  }
 0x49b   : > { %v1670_v3 = vsub.f32 %v4627_v15, %v1634_v26  ;;  %3386 = vrcp.f32 %v1757_v21  ;;  %2380 = vmatprep.subr.bf16.mxu1 %v3273_v61 }
 0x49c   : > { %v4790_v42 = vpop.eup %3376  ;;  %v1898_v8 = vpack.c.bf16 %v1868_v7, %v1867_v12 }
 0x49d   : > { %v1731_v41 = vmul.f32 1.442695, %v1670_v3  ;;  %v1637_v50 = vpop.xlane.xlu0 %1636  ;;  %v1815_v53 = vsel %vm1544_vm0, %v4790_v42, 0.0  ;;  %v3379_v45 = vpop.eup %3378 }
 0x49e   : > { %v1760_v46 = vpop.xlane.xlu1 %1759  ;;  %2916 = vmatmul.mubr.msk.bf16.gmra.mrb[76].mxu0 %vm1544_vm0, %v1898_v8  ;;  %v1671_v15 = vsub.f32 %v4629_v19, %v1637_v50  ;;  %1816 = vadd.xlane.f32.xlu0 %v1815_v53  ;;  %v1869_v19 = vmul.f32 %v3379_v45, %v4663_v17  ;;  %v3274_v53 = vld [vmem:[#allocation10 + $0x20] ss:$8 sps:$4 sm:$0xff]  }
 0x49f   : > { %3388 = vpow2.f32 %v1731_v41  ;;  %2013 = vmatprep.mubr.bf16.mxu0 %v3797_v4 }
 0x4a0   : > { %3390 = vrcp.f32 %v1760_v46  ;;  %v4797_v0 = vpop.eup %3380  ;;  %v1733_v16 = vmul.f32 1.442695, %v1671_v15  ;;  %v3276_v46 = vld [vmem:[#allocation10 + $0x24] ss:$8 sps:$4 sm:$0xff]  }
 0x4a1   : > { %v3383_v62 = vpop.eup %3382  ;;  %v1818_v48 = vsel %vm1544_vm0, %v4797_v0, 0.0  ;;  %v1763_v56 = vpop.xlane.xlu0 %1762 }
 0x4a2   : > { %v1640_v2 = vpop.xlane.xlu1 %1639  ;;  %3392 = vpow2.f32 %v1733_v16  ;;  %1819 = vadd.xlane.f32.xlu1 %v1818_v48  ;;  %v1870_v10 = vmul.f32 %v3383_v62, %v4669_v25 }
 0x4a3   : > { %v1672_v32 = vsub.f32 %v4631_v24, %v1640_v2  ;;  %3394 = vrcp.f32 %v1763_v56  ;;  %v3282_v56 = vld [vmem:[#allocation10 + $0x44] ss:$8 sps:$4 sm:$0xff]  }
 0x4a4   : > { %v4804_v23 = vpop.eup %3384  ;;  %v1899_v1 = vpack.c.bf16 %v1870_v10, %v1869_v19  ;;  %v3285_v10 = vld [vmem:[#allocation10 + $0x54] ss:$8 sps:$4 sm:$0xff]  }
 0x4a5   : > { %v1735_v52 = vmul.f32 1.442695, %v1672_v32  ;;  %v1821_v20 = vsel %vm1544_vm0, %v4804_v23, 0.0  ;;  %v3387_v55 = vpop.eup %3386 }
 0x4a6   : > { %v1766_v49 = vpop.xlane.xlu1 %1765  ;;  %2917 = vmatmul.mubr.msk.bf16.gmra.mrb[80].mxu0 %vm1544_vm0, %v1899_v1  ;;  %1822 = vadd.xlane.f32.xlu0 %v1821_v20  ;;  %v1871_v38 = vmul.f32 %v3387_v55, %v4677_v43 }
 0x4a7   : > { %3396 = vpow2.f32 %v1735_v52  ;;  %2023 = vmatprep.mubr.bf16.mxu0 %v3797_v4 }
 0x4a8   : > { %3398 = vrcp.f32 %v1766_v49 }
 0x4a9   : > { %v4810_v24 = vpop.eup %3388  ;;  %v1769_v5 = vpop.xlane.xlu0 %1768 }
 0x4aa   : > { %v3391_v17 = vpop.eup %3390  ;;  %v1824_v25 = vsel %vm1544_vm0, %v4810_v24, 0.0 }
 0x4ab   : > { %1825 = vadd.xlane.f32.xlu1 %v1824_v25  ;;  %v1872_v11 = vmul.f32 %v3391_v17, %v4683_v47  ;;  %v1772_v27 = vpop.xlane.xlu1 %1771  ;;  %v3271_v47 = vld [vmem:[#allocation10 + $0x10] ss:$8 sps:$4 sm:$0xff]   ;;  %v3288_v17 = vld [vmem:[#allocation10 + $0x64] ss:$8 sps:$4 sm:$0xff]  }
 0x4ac   : > { %v4816_v40 = vpop.eup %3392  ;;  %3400 = vrcp.f32 %v1772_v27  ;;  %2381 = vmatpush1.bf16.msra.mxu1 %v3271_v47  ;;  %v3297_v47 = vld [vmem:[#allocation10 + $0x94] ss:$8 sps:$4 sm:$0xff]  }
 0x4ad   : > { %v1900_v58 = vpack.c.bf16 %v1872_v11, %v1871_v38  ;;  %3402 = vrcp.f32 %v1769_v5  ;;  %v1827_v57 = vsel %vm1544_vm0, %v4816_v40, 0.0  ;;  %v3395_v31 = vpop.eup %3394  ;;  %2382 = vmatprep.subr.bf16.mxu1 %v3276_v46  ;;  %v3291_v5 = vld [vmem:[#allocation10 + $0x74] ss:$8 sps:$4 sm:$0xff]  }
 0x4ae   : > { %1828 = vadd.xlane.f32.xlu0 %v1827_v57  ;;  %v1873_v3 = vmul.f32 %v3395_v31, %v4691_v59  ;;  %v3279_v59 = vld [vmem:[#allocation10 + $0x34] ss:$8 sps:$4 sm:$0xff]   ;;  %v3294_v57 = vld [vmem:[#allocation10 + $0x84] ss:$8 sps:$4 sm:$0xff]  }
 0x4af   : > { %2918 = vmatmul.mubr.msk.bf16.gmra.mrb[84].mxu0 %vm1544_vm0, %v1900_v58 }
 0x4b0   : > { %2033 = vmatprep.mubr.bf16.mxu0 %v3797_v4  ;;  %2383 = vmatpush1.bf16.msra.mxu1 %v3274_v53 }
 0x4b1   : > { %v4822_v43 = vpop.eup %3396  ;;  %v1775_v33 = vpop.xlane.xlu0 %1774  ;;  %2384 = vmatprep.subr.bf16.mxu1 %v3279_v59 }
 0x4b2   : > { %v3399_v21 = vpop.eup %3398  ;;  %v1830_v26 = vsel %vm1544_vm0, %v4822_v43, 0.0 }
 0x4b3   : > { %1831 = vadd.xlane.f32.xlu1 %v1830_v26  ;;  %v1874_v12 = vmul.f32 %v3399_v21, %v4697_v60  ;;  %v1778_v7 = vpop.xlane.xlu1 %1777  ;;  %v3277_v60 = vld [vmem:[#allocation10 + $0x30] ss:$8 sps:$4 sm:$0xff]  }
 0x4b4   : > { %3404 = vrcp.f32 %v1778_v7  ;;  %2385 = vmatpush1.bf16.msra.mxu1 %v3277_v60  ;;  %v3298_v7 = vld [vmem:[#allocation10 + $0xa0] ss:$8 sps:$4 sm:$0xff]  }
 0x4b5   : > { %v1901_v41 = vpack.c.bf16 %v1874_v12, %v1873_v3  ;;  %3406 = vrcp.f32 %v1775_v33  ;;  %2386 = vmatprep.subr.bf16.mxu1 %v3282_v56  ;;  %v3300_v33 = vld [vmem:[#allocation10 + $0xa4] ss:$8 sps:$4 sm:$0xff]  }
 0x4b6   : > { %v3401_v8 = vpop.eup %3400  ;;  %v3312_v56 = vld [vmem:[#allocation10 + $0xe4] ss:$8 sps:$4 sm:$0xff]  }
 0x4b7   : > { %2919 = vmatmul.mubr.msk.bf16.gmra.mrb[88].mxu0 %vm1544_vm0, %v1901_v41  ;;  %v3403_v50 = vpop.eup %3402  ;;  %v1876_v15 = vmul.f32 %v3401_v8, %v4708_v6  ;;  %v3280_v6 = vld [vmem:[#allocation10 + $0x40] ss:$8 sps:$4 sm:$0xff]   ;;  %v3303_v8 = vld [vmem:[#allocation10 + $0xb4] ss:$8 sps:$4 sm:$0xff]  }
 0x4b8   : > { %2043 = vmatprep.mubr.bf16.mxu0 %v3797_v4  ;;  %v1875_v16 = vmul.f32 %v3403_v50, %v4704_v28  ;;  %2387 = vmatpush1.bf16.msra.mxu1 %v3280_v6  ;;  %v3283_v28 = vld [vmem:[#allocation10 + $0x50] ss:$8 sps:$4 sm:$0xff]   ;;  %v3310_v6 = vld [vmem:[#allocation10 + $0xe0] ss:$8 sps:$4 sm:$0xff]  }
 0x4b9   : > { %v1781_v45 = vpop.xlane.xlu0 %1780  ;;  %2388 = vmatprep.subr.bf16.mxu1 %v3285_v10 }
 0x4ba   : > { %v1902_v2 = vpack.c.bf16 %v1876_v15, %v1875_v16  ;;  %v3306_v15 = vld [vmem:[#allocation10 + $0xc4] ss:$8 sps:$4 sm:$0xff]  }
 0x4bb   : > { %v1784_v62 = vpop.xlane.xlu1 %1783 }
 0x4bc   : > { %3408 = vrcp.f32 %v1784_v62  ;;  %2389 = vmatpush1.bf16.msra.mxu1 %v3283_v28  ;;  %v3309_v62 = vld [vmem:[#allocation10 + $0xd4] ss:$8 sps:$4 sm:$0xff]  }
 0x4bd   : > { %3410 = vrcp.f32 %v1781_v45  ;;  %2390 = vmatprep.subr.bf16.mxu1 %v3288_v17  ;;  %v3304_v45 = vld [vmem:[#allocation10 + $0xc0] ss:$8 sps:$4 sm:$0xff]  }
 0x4be   : > { %v3405_v48 = vpop.eup %3404 }
 0x4bf   : > { %2920 = vmatmul.mubr.msk.bf16.gmra.mrb[92].mxu0 %vm1544_vm0, %v1902_v2  ;;  %v3407_v32 = vpop.eup %3406  ;;  %v1878_v19 = vmul.f32 %v3405_v48, %v4718_v37  ;;  %v3286_v37 = vld [vmem:[#allocation10 + $0x60] ss:$8 sps:$4 sm:$0xff]  }
 0x4c0   : > { %2053 = vmatprep.mubr.bf16.mxu0 %v3797_v4  ;;  %v1877_v1 = vmul.f32 %v3407_v32, %v4714_v30  ;;  %2391 = vmatpush1.bf16.msra.mxu1 %v3286_v37  ;;  %v3289_v30 = vld [vmem:[#allocation10 + $0x70] ss:$8 sps:$4 sm:$0xff]  }
 0x4c1   : > { %v1787_v52 = vpop.xlane.xlu0 %1786  ;;  %2392 = vmatprep.subr.bf16.mxu1 %v3291_v5 }
 0x4c2   : > { %v1903_v20 = vpack.c.bf16 %v1878_v19, %v1877_v1  ;;  %v3313_v1 = vld [vmem:[#allocation10 + $0xf0] ss:$8 sps:$4 sm:$0xff]  }
 0x4c3   : > { %v1790_v49 = vpop.xlane.xlu1 %1789 }
 0x4c4   : > { %3412 = vrcp.f32 %v1790_v49  ;;  %2393 = vmatpush1.bf16.msra.mxu1 %v3289_v30 }
 0x4c5   : > { %3414 = vrcp.f32 %v1787_v52  ;;  %2394 = vmatprep.subr.bf16.mxu1 %v3294_v57  ;;  %v3315_v52 = vld [vmem:[#allocation10 + $0xf4] ss:$8 sps:$4 sm:$0xff]  }
 0x4c6   : > { %v3409_v55 = vpop.eup %3408 }
 0x4c7   : > { %2921 = vmatmul.mubr.msk.bf16.gmra.mrb[96].mxu0 %vm1544_vm0, %v1903_v20  ;;  %v3411_v25 = vpop.eup %3410  ;;  %v1880_v38 = vmul.f32 %v3409_v55, %v4728_v54  ;;  %v3292_v54 = vld [vmem:[#allocation10 + $0x80] ss:$8 sps:$4 sm:$0xff]  }
 0x4c8   : > { %2063 = vmatprep.mubr.bf16.mxu0 %v3797_v4  ;;  %v1879_v27 = vmul.f32 %v3411_v25, %v4724_v14  ;;  %2395 = vmatpush1.bf16.msra.mxu1 %v3292_v54  ;;  %v3295_v14 = vld [vmem:[#allocation10 + $0x90] ss:$8 sps:$4 sm:$0xff]  }
 0x4c9   : > { %v1793_v11 = vpop.xlane.xlu0 %1792  ;;  %2396 = vmatprep.subr.bf16.mxu1 %v3297_v47 }
 0x4ca   : > { %v1904_v22 = vpack.c.bf16 %v1880_v38, %v1879_v27 }
 0x4cb   : > { %v1796_v58 = vpop.xlane.xlu1 %1795 }
 0x4cc   : > { %3416 = vrcp.f32 %v1796_v58  ;;  %2397 = vmatpush1.bf16.msra.mxu1 %v3295_v14 }
 0x4cd   : > { %3418 = vrcp.f32 %v1793_v11  ;;  %2398 = vmatprep.subr.bf16.mxu1 %v3300_v33 }
 0x4ce   : > { %v3413_v51 = vpop.eup %3412 }
 0x4cf   : > { %2922 = vmatmul.mubr.msk.bf16.gmra.mrb[100].mxu0 %vm1544_vm0, %v1904_v22  ;;  %v3415_v31 = vpop.eup %3414  ;;  %v1882_v61 = vmul.f32 %v3413_v51, %v4738_v63 }
 0x4d0   : > { %2073 = vmatprep.mubr.bf16.mxu0 %v3797_v4  ;;  %v1881_v26 = vmul.f32 %v3415_v31, %v4734_v18  ;;  %2399 = vmatpush1.bf16.msra.mxu1 %v3298_v7  ;;  %v3301_v18 = vld [vmem:[#allocation10 + $0xb0] ss:$8 sps:$4 sm:$0xff]  }
 0x4d1   : > { %v1799_v21 = vpop.xlane.xlu0 %1798  ;;  %2400 = vmatprep.subr.bf16.mxu1 %v3303_v8 }
 0x4d2   : > { %v1905_v12 = vpack.c.bf16 %v1882_v61, %v1881_v26 }
 0x4d3   : > { %v1802_v3 = vpop.xlane.xlu1 %1801 }
 0x4d4   : > { %3420 = vrcp.f32 %v1802_v3  ;;  %2401 = vmatpush1.bf16.msra.mxu1 %v3301_v18 }
 0x4d5   : > { %3422 = vrcp.f32 %v1799_v21  ;;  %2402 = vmatprep.subr.bf16.mxu1 %v3306_v15 }
 0x4d6   : > { %v3417_v41 = vpop.eup %3416 }
 0x4d7   : > { %2923 = vmatmul.mubr.msk.bf16.gmra.mrb[104].mxu0 %vm1544_vm0, %v1905_v12  ;;  %v3419_v63 = vpop.eup %3418  ;;  %v1884_v46 = vmul.f32 %v3417_v41, %v4748_v13 }
 0x4d8   : > { %2083 = vmatprep.mubr.bf16.mxu0 %v3797_v4  ;;  %v1883_v53 = vmul.f32 %v3419_v63, %v4744_v34  ;;  %2403 = vmatpush1.bf16.msra.mxu1 %v3304_v45  ;;  %v3307_v34 = vld [vmem:[#allocation10 + $0xd0] ss:$8 sps:$4 sm:$0xff]  }
 0x4d9   : > { %v1805_v50 = vpop.xlane.xlu0 %1804  ;;  %2404 = vmatprep.subr.bf16.mxu1 %v3309_v62 }
 0x4da   : > { %v1906_v60 = vpack.c.bf16 %v1884_v46, %v1883_v53 }
 0x4db   : > { %v1808_v59 = vpop.xlane.xlu1 %1807 }
 0x4dc   : > { %3424 = vrcp.f32 %v1808_v59  ;;  %2405 = vmatpush1.bf16.msra.mxu1 %v3307_v34 }
 0x4dd   : > { %3426 = vrcp.f32 %v1805_v50  ;;  %2406 = vmatprep.subr.bf16.mxu1 %v3312_v56 }
 0x4de   : > { %v3421_v16 = vpop.eup %3420 }
 0x4df   : > { %2924 = vmatmul.mubr.msk.bf16.gmra.mrb[108].mxu0 %vm1544_vm0, %v1906_v60  ;;  %v3423_v2 = vpop.eup %3422  ;;  %v1886_v13 = vmul.f32 %v3421_v16, %v4758_v35 }
 0x4e0   : > { %2093 = vmatprep.mubr.bf16.mxu0 %v3797_v4  ;;  %v1885_v48 = vmul.f32 %v3423_v2, %v4754_v29  ;;  %2407 = vmatpush1.bf16.msra.mxu1 %v3310_v6 }
 0x4e1   : > { %2408 = vmatprep.subr.bf16.mxu1 %v3315_v52 }
 0x4e2   : > { %v1907_v32 = vpack.c.bf16 %v1886_v13, %v1885_v48 }
 0x4e4   : > { %2409 = vmatpush1.bf16.msra.mxu1 %v3313_v1 }
 0x4e6   : > { %v3425_v19 = vpop.eup %3424 }
 0x4e7   : > { %2925 = vmatmul.mubr.msk.bf16.gmra.mrb[112].mxu0 %vm1544_vm0, %v1907_v32  ;;  %v3427_v10 = vpop.eup %3426  ;;  %v1888_v28 = vmul.f32 %v3425_v19, %v4766_v39 }
 0x4e8   : > { %2103 = vmatprep.mubr.bf16.mxu0 %v3797_v4  ;;  %v1887_v35 = vmul.f32 %v3427_v10, %v4762_v36 }
 0x4ea   : > { %v1908_v29 = vpack.c.bf16 %v1888_v28, %v1887_v35 }
 0x4ef   : > { %2926 = vmatmul.mubr.msk.bf16.gmra.mrb[116].mxu0 %vm1544_vm0, %v1908_v29 }
 0x4f0   : > { %2113 = vmatprep.mubr.bf16.mxu0 %v3797_v4 }
 0x523   : > { %v1811_v49 = vpop.xlane.xlu0 %1810 }
 0x524   : > { %3428 = vrcp.f32 %v1811_v49 }
 0x527   : > { %v1814_v20 = vpop.xlane.xlu1 %1813 }
 0x528   : > { %3430 = vrcp.f32 %v1814_v20 }
 0x52b   : > { %v1817_v55 = vpop.xlane.xlu0 %1816 }
 0x52c   : > { %3432 = vrcp.f32 %v1817_v55 }
 0x52e   : > { %v3429_v39 = vpop.eup %3428 }
 0x52f   : > { %v1820_v17 = vpop.xlane.xlu1 %1819  ;;  %v1889_v37 = vmul.f32 %v3429_v39, %v4776_v9 }
 0x530   : > { %3434 = vrcp.f32 %v1820_v17 }
 0x532   : > { %v3431_v25 = vpop.eup %3430 }
 0x533   : > { %v1823_v36 = vpop.xlane.xlu0 %1822  ;;  %v1890_v5 = vmul.f32 %v3431_v25, %v4783_v44 }
 0x534   : > { %3436 = vrcp.f32 %v1823_v36 }
 0x535   : > { %v1909_v38 = vpack.c.bf16 %v1890_v5, %v1889_v37 }
 0x536   : > { %v3433_v11 = vpop.eup %3432 }
 0x537   : > { %2927 = vmatmul.mubr.msk.bf16.gmra.mrb[120].mxu0 %vm1544_vm0, %v1909_v38  ;;  %v1891_v22 = vmul.f32 %v3433_v11, %v4790_v42 }
 0x538   : > { %v1826_v30 = vpop.xlane.xlu1 %1825  ;;  %2123 = vmatprep.mubr.bf16.mxu0 %v3797_v4 }
 0x539   : > { %3438 = vrcp.f32 %v1826_v30 }
 0x53a   : > { %v3435_v27 = vpop.eup %3434 }
 0x53b   : > { %v1829_v58 = vpop.xlane.xlu0 %1828  ;;  %v1892_v51 = vmul.f32 %v3435_v27, %v4797_v0 }
 0x53c   : > { %3440 = vrcp.f32 %v1829_v58 }
 0x53d   : > { %v1910_v57 = vpack.c.bf16 %v1892_v51, %v1891_v22 }
 0x53e   : > { %v3437_v44 = vpop.eup %3436 }
 0x53f   : > { %2928 = vmatmul.mubr.msk.bf16.gmra.mrb[124].mxu0 %vm1544_vm0, %v1910_v57  ;;  %v1893_v54 = vmul.f32 %v3437_v44, %v4804_v23 }
 0x540   : > { %v1832_v9 = vpop.xlane.xlu1 %1831  ;;  %2133 = vmatprep.mubr.bf16.mxu0 %v3797_v4 }
 0x541   : > { %3442 = vrcp.f32 %v1832_v9 }
 0x543   : > { %v3439_v31 = vpop.eup %3438 }
 0x544   : > { %v1894_v47 = vmul.f32 %v3439_v31, %v4810_v24 }
 0x546   : > { %v1911_v61 = vpack.c.bf16 %v1894_v47, %v1893_v54  ;;  %v3441_v42 = vpop.eup %3440 }
 0x547   : > { %v1895_v14 = vmul.f32 %v3441_v42, %v4816_v40 }
 0x548   : > { %2929 = vmatmul.mubr.msk.bf16.gmra.mrb[128].mxu0 %vm1544_vm0, %v1911_v61 }
 0x549   : > { %2143 = vmatprep.mubr.bf16.mxu0 %v3797_v4 }
 0x54b   : > { %v3443_v0 = vpop.eup %3442 }
 0x54c   : > { %v1896_v21 = vmul.f32 %v3443_v0, %v4822_v43 }
 0x54e   : > { %v1912_v26 = vpack.c.bf16 %v1896_v21, %v1895_v14 }
 0x550   : > { %2930 = vmatmul.mubr.msk.bf16.gmra.mrb[132].mxu0 %vm1544_vm0, %v1912_v26 }
 0x568   : > { %v1995_v33 = vpop.f32.mrb[72].mxu0 }
 0x569   : > { %v1997_v3 = vpop.f32.mrb[73].mxu0 }
 0x56a   : > { %v1999_v12 = vpop.f32.mrb[74].mxu0 }
 0x56b   : > { %v2154_v23 = vpack.c.bf16 %v1999_v12, %v1995_v33  ;;  %v2001_v7 = vpop.f32.mrb[75].mxu0 }
 0x56c   : > { %v2155_v24 = vpack.c.bf16 %v2001_v7, %v1997_v3 }
 0x56e   : > { %2410 = vmatprep.mubr.bf16.mxu1 %v2155_v24 }
 0x56f   : > { %2411 = vmatmul.mubr.bf16.vlgmr.msra.gmra.mrb[72].mxu1 %v2154_v23 }
 0x571   : > { %v2005_v41 = vpop.f32.mrb[76].mxu0 }
 0x572   : > { %v2007_v8 = vpop.f32.mrb[77].mxu0 }
 0x573   : > { %v2009_v63 = vpop.f32.mrb[78].mxu0 }
 0x574   : > { %v2156_v4 = vpack.c.bf16 %v2009_v63, %v2005_v41  ;;  %v2011_v46 = vpop.f32.mrb[79].mxu0 }
 0x575   : > { %v2157_v18 = vpack.c.bf16 %v2011_v46, %v2007_v8 }
 0x577   : > { %2420 = vmatprep.mubr.bf16.mxu1 %v2157_v18 }
 0x578   : > { %2421 = vmatmul.mubr.bf16.gmra.mrb[76].mxu1 %v2156_v4 }
 0x579   : > { %v2015_v40 = vpop.f32.mrb[80].mxu0 }
 0x57a   : > { %v2017_v43 = vpop.f32.mrb[81].mxu0 }
 0x57b   : > { %v2019_v50 = vpop.f32.mrb[82].mxu0 }
 0x57c   : > { %v2158_v53 = vpack.c.bf16 %v2019_v50, %v2015_v40  ;;  %v2021_v15 = vpop.f32.mrb[83].mxu0 }
 0x57d   : > { %v2159_v59 = vpack.c.bf16 %v2021_v15, %v2017_v43 }
 0x57f   : > { %2430 = vmatprep.mubr.bf16.mxu1 %v2159_v59 }
 0x580   : > { %2431 = vmatmul.mubr.bf16.gmra.mrb[80].mxu1 %v2158_v53 }
 0x582   : > { %v2025_v60 = vpop.f32.mrb[84].mxu0 }
 0x583   : > { %v2027_v45 = vpop.f32.mrb[85].mxu0 }
 0x584   : > { %v2029_v16 = vpop.f32.mrb[86].mxu0 }
 0x585   : > { %v2160_v62 = vpack.c.bf16 %v2029_v16, %v2025_v60  ;;  %v2031_v2 = vpop.f32.mrb[87].mxu0 }
 0x586   : > { %v2161_v13 = vpack.c.bf16 %v2031_v2, %v2027_v45 }
 0x588   : > { %2440 = vmatprep.mubr.bf16.mxu1 %v2161_v13 }
 0x589   : > { %2441 = vmatmul.mubr.bf16.gmra.mrb[84].mxu1 %v2160_v62 }
 0x58a   : > { %v2035_v34 = vpop.f32.mrb[88].mxu0 }
 0x58b   : > { %v2037_v48 = vpop.f32.mrb[89].mxu0 }
 0x58c   : > { %v2039_v56 = vpop.f32.mrb[90].mxu0 }
 0x58d   : > { %v2162_v32 = vpack.c.bf16 %v2039_v56, %v2035_v34  ;;  %v2041_v6 = vpop.f32.mrb[91].mxu0 }
 0x58e   : > { %v2163_v19 = vpack.c.bf16 %v2041_v6, %v2037_v48 }
 0x590   : > { %2450 = vmatprep.mubr.bf16.mxu1 %v2163_v19 }
 0x591   : > { %2451 = vmatmul.mubr.bf16.gmra.mrb[88].mxu1 %v2162_v32 }
 0x592   : > { %v2045_v10 = vpop.f32.mrb[92].mxu0 }
 0x593   : > { %v2047_v28 = vpop.f32.mrb[93].mxu0 }
 0x594   : > { %v2049_v35 = vpop.f32.mrb[94].mxu0 }
 0x595   : > { %v2164_v52 = vpack.c.bf16 %v2049_v35, %v2045_v10  ;;  %v2051_v1 = vpop.f32.mrb[95].mxu0 }
 0x596   : > { %v2165_v29 = vpack.c.bf16 %v2051_v1, %v2047_v28 }
 0x598   : > { %2460 = vmatprep.mubr.bf16.mxu1 %v2165_v29 }
 0x599   : > { %2461 = vmatmul.mubr.bf16.gmra.mrb[92].mxu1 %v2164_v52  ;;  %v3444_v52 = vld [vmem:[%s4151_s4] sm:$0xff] }
 0x59a   : > { %v2055_v49 = vpop.f32.mrb[96].mxu0 }
 0x59b   : > { %v2057_v20 = vpop.f32.mrb[97].mxu0 }
 0x59c   : > { %v2059_v55 = vpop.f32.mrb[98].mxu0 }
 0x59d   : > { %v2166_v17 = vpack.c.bf16 %v2059_v55, %v2055_v49  ;;  %v2061_v39 = vpop.f32.mrb[99].mxu0  ;;  %v3445_v49 = vld [vmem:[%s4151_s4 + $0x8] sm:$0xff] }
 0x59e   : > { %v2167_v25 = vpack.c.bf16 %v2061_v39, %v2057_v20 }
 0x5a0   : > { %2470 = vmatprep.mubr.bf16.mxu1 %v2167_v25 }
 0x5a1   : > { %2471 = vmatmul.mubr.bf16.gmra.mrb[96].mxu1 %v2166_v17  ;;  %v3446_v17 = vld [vmem:[%s4151_s4 + $0x10] sm:$0xff] }
 0x5a2   : > { %v2065_v36 = vpop.f32.mrb[100].mxu0 }
 0x5a3   : > { %v2067_v37 = vpop.f32.mrb[101].mxu0 }
 0x5a4   : > { %v2069_v5 = vpop.f32.mrb[102].mxu0 }
 0x5a5   : > { %v2168_v38 = vpack.c.bf16 %v2069_v5, %v2065_v36  ;;  %v2071_v30 = vpop.f32.mrb[103].mxu0  ;;  %v3447_v36 = vld [vmem:[%s4151_s4 + $0x18] sm:$0xff] }
 0x5a6   : > { %v2169_v11 = vpack.c.bf16 %v2071_v30, %v2067_v37 }
 0x5a8   : > { %2480 = vmatprep.mubr.bf16.mxu1 %v2169_v11 }
 0x5a9   : > { %2481 = vmatmul.mubr.bf16.gmra.mrb[100].mxu1 %v2168_v38  ;;  %v3448_v38 = vld [vmem:[%s4151_s4 + $0x20] sm:$0xff] }
 0x5aa   : > { %v2075_v27 = vpop.f32.mrb[104].mxu0 }
 0x5ab   : > { %v2077_v58 = vpop.f32.mrb[105].mxu0 }
 0x5ac   : > { %v2079_v22 = vpop.f32.mrb[106].mxu0 }
 0x5ad   : > { %v2170_v51 = vpack.c.bf16 %v2079_v22, %v2075_v27  ;;  %v2081_v57 = vpop.f32.mrb[107].mxu0  ;;  %v3449_v27 = vld [vmem:[%s4151_s4 + $0x28] sm:$0xff] }
 0x5ae   : > { %v2171_v9 = vpack.c.bf16 %v2081_v57, %v2077_v58 }
 0x5b0   : > { %2490 = vmatprep.mubr.bf16.mxu1 %v2171_v9 }
 0x5b1   : > { %2491 = vmatmul.mubr.bf16.gmra.mrb[104].mxu1 %v2170_v51  ;;  %v3450_v51 = vld [vmem:[%s4151_s4 + $0x30] sm:$0xff] }
 0x5b2   : > { %v2085_v44 = vpop.f32.mrb[108].mxu0 }
 0x5b3   : > { %v2087_v31 = vpop.f32.mrb[109].mxu0 }
 0x5b4   : > { %v2089_v54 = vpop.f32.mrb[110].mxu0 }
 0x5b5   : > { %v2172_v47 = vpack.c.bf16 %v2089_v54, %v2085_v44  ;;  %v2091_v61 = vpop.f32.mrb[111].mxu0  ;;  %v3451_v44 = vld [vmem:[%s4151_s4 + $0x38] sm:$0xff] }
 0x5b6   : > { %v2173_v42 = vpack.c.bf16 %v2091_v61, %v2087_v31 }
 0x5b8   : > { %2500 = vmatprep.mubr.bf16.mxu1 %v2173_v42 }
 0x5b9   : > { %2501 = vmatmul.mubr.bf16.gmra.mrb[108].mxu1 %v2172_v47  ;;  %v3452_v47 = vld [vmem:[%s4151_s4 + $0x40] sm:$0xff] }
 0x5ba   : > { %v2095_v0 = vpop.f32.mrb[112].mxu0 }
 0x5bb   : > { %v2097_v14 = vpop.f32.mrb[113].mxu0 }
 0x5bc   : > { %v2099_v21 = vpop.f32.mrb[114].mxu0 }
 0x5bd   : > { %v2174_v26 = vpack.c.bf16 %v2099_v21, %v2095_v0  ;;  %v2101_v33 = vpop.f32.mrb[115].mxu0  ;;  %v3453_v0 = vld [vmem:[%s4151_s4 + $0x48] sm:$0xff] }
 0x5be   : > { %v2175_v3 = vpack.c.bf16 %v2101_v33, %v2097_v14 }
 0x5c0   : > { %2510 = vmatprep.mubr.bf16.mxu1 %v2175_v3 }
 0x5c1   : > { %2511 = vmatmul.mubr.bf16.gmra.mrb[112].mxu1 %v2174_v26  ;;  %v3454_v26 = vld [vmem:[%s4151_s4 + $0x50] sm:$0xff] }
 0x5c2   : > { %v2105_v12 = vpop.f32.mrb[116].mxu0 }
 0x5c3   : > { %v2107_v23 = vpop.f32.mrb[117].mxu0 }
 0x5c4   : > { %v2109_v7 = vpop.f32.mrb[118].mxu0 }
 0x5c5   : > { %v2176_v24 = vpack.c.bf16 %v2109_v7, %v2105_v12  ;;  %v2111_v41 = vpop.f32.mrb[119].mxu0  ;;  %v3455_v12 = vld [vmem:[%s4151_s4 + $0x58] sm:$0xff] }
 0x5c6   : > { %v2177_v8 = vpack.c.bf16 %v2111_v41, %v2107_v23 }
 0x5c8   : > { %2520 = vmatprep.mubr.bf16.mxu1 %v2177_v8 }
 0x5c9   : > { %2521 = vmatmul.mubr.bf16.gmra.mrb[116].mxu1 %v2176_v24  ;;  %v3456_v24 = vld [vmem:[%s4151_s4 + $0x60] sm:$0xff] }
 0x60a   : > { %v2115_v63 = vpop.f32.mrb[120].mxu0 }
 0x60b   : > { %v2117_v4 = vpop.f32.mrb[121].mxu0 }
 0x60c   : > { %v2119_v46 = vpop.f32.mrb[122].mxu0 }
 0x60d   : > { %v2178_v18 = vpack.c.bf16 %v2119_v46, %v2115_v63  ;;  %v2121_v40 = vpop.f32.mrb[123].mxu0  ;;  %v3457_v63 = vld [vmem:[%s4151_s4 + $0x68] sm:$0xff] }
 0x60e   : > { %v2179_v43 = vpack.c.bf16 %v2121_v40, %v2117_v4 }
 0x610   : > { %2530 = vmatprep.mubr.bf16.mxu1 %v2179_v43 }
 0x611   : > { %2531 = vmatmul.mubr.bf16.gmra.mrb[120].mxu1 %v2178_v18  ;;  %v3458_v18 = vld [vmem:[%s4151_s4 + $0x70] sm:$0xff] }
 0x612   : > { %v2125_v50 = vpop.f32.mrb[124].mxu0 }
 0x613   : > { %v2127_v53 = vpop.f32.mrb[125].mxu0 }
 0x614   : > { %v2129_v15 = vpop.f32.mrb[126].mxu0 }
 0x615   : > { %v2180_v59 = vpack.c.bf16 %v2129_v15, %v2125_v50  ;;  %v2131_v60 = vpop.f32.mrb[127].mxu0  ;;  %v3459_v50 = vld [vmem:[%s4151_s4 + $0x78] sm:$0xff] }
 0x616   : > { %v2181_v45 = vpack.c.bf16 %v2131_v60, %v2127_v53 }
 0x618   : > { %2540 = vmatprep.mubr.bf16.mxu1 %v2181_v45 }
 0x619   : > { %2541 = vmatmul.mubr.bf16.gmra.mrb[124].mxu1 %v2180_v59  ;;  %v3460_v59 = vld [vmem:[%s4151_s4 + $0x80] sm:$0xff] }
 0x61b   : > { %v2135_v16 = vpop.f32.mrb[128].mxu0 }
 0x61c   : > { %v2137_v62 = vpop.f32.mrb[129].mxu0 }
 0x61d   : > { %v2139_v2 = vpop.f32.mrb[130].mxu0 }
 0x61e   : > { %v2182_v13 = vpack.c.bf16 %v2139_v2, %v2135_v16  ;;  %v2141_v34 = vpop.f32.mrb[131].mxu0  ;;  %v3461_v16 = vld [vmem:[%s4151_s4 + $0x88] sm:$0xff] }
 0x61f   : > { %v2183_v48 = vpack.c.bf16 %v2141_v34, %v2137_v62 }
 0x621   : > { %2550 = vmatprep.mubr.bf16.mxu1 %v2183_v48 }
 0x622   : > { %2551 = vmatmul.mubr.bf16.gmra.mrb[128].mxu1 %v2182_v13  ;;  %v3462_v13 = vld [vmem:[%s4151_s4 + $0x90] sm:$0xff] }
 0x623   : > { %v2145_v56 = vpop.f32.mrb[132].mxu0 }
 0x624   : > { %v2147_v32 = vpop.f32.mrb[133].mxu0 }
 0x625   : > { %v2149_v6 = vpop.f32.mrb[134].mxu0 }
 0x626   : > { %v2184_v19 = vpack.c.bf16 %v2149_v6, %v2145_v56  ;;  %v2151_v10 = vpop.f32.mrb[135].mxu0  ;;  %v3463_v56 = vld [vmem:[%s4151_s4 + $0x98] sm:$0xff] }
 0x627   : > { %v2185_v28 = vpack.c.bf16 %v2151_v10, %v2147_v32 }
 0x629   : > { %2560 = vmatprep.mubr.bf16.mxu1 %v2185_v28 }
 0x62a   : > { %2561 = vmatmul.mubr.bf16.gmra.mrb[132].mxu1 %v2184_v19  ;;  %v3464_v19 = vld [vmem:[%s4151_s4 + $0xa0] sm:$0xff] }
 0x642   : > { %v2412_v35 = vpop.f32.mrb[72].mxu1 }
 0x643   : > { %v2413_v1 = vadd.f32 %v3444_v52, %v2412_v35  ;;  %v2414_v29 = vpop.f32.mrb[73].mxu1  ;;  %v3465_v35 = vld [vmem:[%s4151_s4 + $0xa8] sm:$0xff] }
 0x644   : > { %v2415_v20 = vadd.f32 %v3445_v49, %v2414_v29  ;;  %v2416_v55 = vpop.f32.mrb[74].mxu1  ;;  %v3466_v29 = vld [vmem:[%s4151_s4 + $0xb0] sm:$0xff] }
 0x645   : > { %2571 = vst [vmem:[%s4877_s29] sm:$0xff] %v2413_v1  ;;  %v2417_v39 = vadd.f32 %v3446_v17, %v2416_v55  ;;  %v2418_v25 = vpop.f32.mrb[75].mxu1  ;;  %v3467_v55 = vld [vmem:[%s4151_s4 + $0xb8] sm:$0xff] }
 0x646   : > { %2572 = vst [vmem:[%s4877_s29 + $0x8] sm:$0xff] %v2415_v20  ;;  %v2419_v37 = vadd.f32 %v3447_v36, %v2418_v25  ;;  %v3468_v25 = vld [vmem:[%s4151_s4 + $0xc0] sm:$0xff] }
 0x647   : > { %2573 = vst [vmem:[%s4877_s29 + $0x10] sm:$0xff] %v2417_v39 }
 0x648   : > { %2574 = vst [vmem:[%s4877_s29 + $0x18] sm:$0xff] %v2419_v37 }
 0x64b   : > { %v2422_v5 = vpop.f32.mrb[76].mxu1 }
 0x64c   : > { %v2423_v30 = vadd.f32 %v3448_v38, %v2422_v5  ;;  %v2424_v11 = vpop.f32.mrb[77].mxu1  ;;  %v3469_v5 = vld [vmem:[%s4151_s4 + $0xc8] sm:$0xff] }
 0x64d   : > { %v2425_v58 = vadd.f32 %v3449_v27, %v2424_v11  ;;  %v2426_v22 = vpop.f32.mrb[78].mxu1  ;;  %v3470_v11 = vld [vmem:[%s4151_s4 + $0xd0] sm:$0xff] }
 0x64e   : > { %2575 = vst [vmem:[%s4877_s29 + $0x20] sm:$0xff] %v2423_v30  ;;  %v2427_v57 = vadd.f32 %v3450_v51, %v2426_v22  ;;  %v2428_v9 = vpop.f32.mrb[79].mxu1  ;;  %v3471_v22 = vld [vmem:[%s4151_s4 + $0xd8] sm:$0xff] }
 0x64f   : > { %2576 = vst [vmem:[%s4877_s29 + $0x28] sm:$0xff] %v2425_v58  ;;  %v2429_v31 = vadd.f32 %v3451_v44, %v2428_v9  ;;  %v3472_v9 = vld [vmem:[%s4151_s4 + $0xe0] sm:$0xff] }
 0x650   : > { %2577 = vst [vmem:[%s4877_s29 + $0x30] sm:$0xff] %v2427_v57 }
 0x651   : > { %2578 = vst [vmem:[%s4877_s29 + $0x38] sm:$0xff] %v2429_v31 }
 0x653   : > { %v2432_v54 = vpop.f32.mrb[80].mxu1 }
 0x654   : > { %v2433_v61 = vadd.f32 %v3452_v47, %v2432_v54  ;;  %v2434_v42 = vpop.f32.mrb[81].mxu1  ;;  %v3473_v54 = vld [vmem:[%s4151_s4 + $0xe8] sm:$0xff] }
 0x655   : > { %v2435_v14 = vadd.f32 %v3453_v0, %v2434_v42  ;;  %v2436_v21 = vpop.f32.mrb[82].mxu1  ;;  %v3474_v42 = vld [vmem:[%s4151_s4 + $0xf0] sm:$0xff] }
 0x656   : > { %2579 = vst [vmem:[%s4877_s29 + $0x40] sm:$0xff] %v2433_v61  ;;  %v2437_v33 = vadd.f32 %v3454_v26, %v2436_v21  ;;  %v2438_v3 = vpop.f32.mrb[83].mxu1  ;;  %v3475_v21 = vld [vmem:[%s4151_s4 + $0xf8] sm:$0xff] }
 0x657   : > { %2580 = vst [vmem:[%s4877_s29 + $0x48] sm:$0xff] %v2435_v14  ;;  %v2439_v23 = vadd.f32 %v3455_v12, %v2438_v3  ;;  %v3476_v3 = vld [vmem:[%s4151_s4 + $0x100] sm:$0xff] }
 0x658   : > { %2581 = vst [vmem:[%s4877_s29 + $0x50] sm:$0xff] %v2437_v33 }
 0x659   : > { %2582 = vst [vmem:[%s4877_s29 + $0x58] sm:$0xff] %v2439_v23 }
 0x65c   : > { %v2442_v7 = vpop.f32.mrb[84].mxu1 }
 0x65d   : > { %v2443_v41 = vadd.f32 %v3456_v24, %v2442_v7  ;;  %v2444_v8 = vpop.f32.mrb[85].mxu1  ;;  %v3477_v7 = vld [vmem:[%s4151_s4 + $0x108] sm:$0xff] }
 0x65e   : > { %v2445_v4 = vadd.f32 %v3457_v63, %v2444_v8  ;;  %v2446_v46 = vpop.f32.mrb[86].mxu1  ;;  %v3478_v8 = vld [vmem:[%s4151_s4 + $0x110] sm:$0xff] }
 0x65f   : > { %2583 = vst [vmem:[%s4877_s29 + $0x60] sm:$0xff] %v2443_v41  ;;  %v2447_v40 = vadd.f32 %v3458_v18, %v2446_v46  ;;  %v2448_v43 = vpop.f32.mrb[87].mxu1  ;;  %v3479_v46 = vld [vmem:[%s4151_s4 + $0x118] sm:$0xff] }
 0x660   : > { %2584 = vst [vmem:[%s4877_s29 + $0x68] sm:$0xff] %v2445_v4  ;;  %v2449_v53 = vadd.f32 %v3459_v50, %v2448_v43  ;;  %v3480_v43 = vld [vmem:[%s4151_s4 + $0x120] sm:$0xff] }
 0x661   : > { %2585 = vst [vmem:[%s4877_s29 + $0x70] sm:$0xff] %v2447_v40 }
 0x662   : > { %2586 = vst [vmem:[%s4877_s29 + $0x78] sm:$0xff] %v2449_v53 }
 0x664   : > { %v2452_v15 = vpop.f32.mrb[88].mxu1 }
 0x665   : > { %v2453_v60 = vadd.f32 %v3460_v59, %v2452_v15  ;;  %v2454_v45 = vpop.f32.mrb[89].mxu1  ;;  %v3481_v15 = vld [vmem:[%s4151_s4 + $0x128] sm:$0xff] }
 0x666   : > { %v2455_v62 = vadd.f32 %v3461_v16, %v2454_v45  ;;  %v2456_v2 = vpop.f32.mrb[90].mxu1  ;;  %v3482_v45 = vld [vmem:[%s4151_s4 + $0x130] sm:$0xff] }
 0x667   : > { %2587 = vst [vmem:[%s4877_s29 + $0x80] sm:$0xff] %v2453_v60  ;;  %v2457_v34 = vadd.f32 %v3462_v13, %v2456_v2  ;;  %v2458_v48 = vpop.f32.mrb[91].mxu1  ;;  %v3483_v2 = vld [vmem:[%s4151_s4 + $0x138] sm:$0xff] }
 0x668   : > { %2588 = vst [vmem:[%s4877_s29 + $0x88] sm:$0xff] %v2455_v62  ;;  %v2459_v32 = vadd.f32 %v3463_v56, %v2458_v48  ;;  %v3484_v48 = vld [vmem:[%s4151_s4 + $0x140] sm:$0xff] }
 0x669   : > { %2589 = vst [vmem:[%s4877_s29 + $0x90] sm:$0xff] %v2457_v34 }
 0x66a   : > { %2590 = vst [vmem:[%s4877_s29 + $0x98] sm:$0xff] %v2459_v32 }
 0x66c   : > { %v2462_v6 = vpop.f32.mrb[92].mxu1 }
 0x66d   : > { %v2463_v10 = vadd.f32 %v3464_v19, %v2462_v6  ;;  %v2464_v28 = vpop.f32.mrb[93].mxu1  ;;  %v3485_v6 = vld [vmem:[%s4151_s4 + $0x148] sm:$0xff] }
 0x66e   : > { %v2465_v52 = vadd.f32 %v3465_v35, %v2464_v28  ;;  %v2466_v1 = vpop.f32.mrb[94].mxu1  ;;  %v3486_v28 = vld [vmem:[%s4151_s4 + $0x150] sm:$0xff] }
 0x66f   : > { %2591 = vst [vmem:[%s4877_s29 + $0xa0] sm:$0xff] %v2463_v10  ;;  %v2467_v49 = vadd.f32 %v3466_v29, %v2466_v1  ;;  %v2468_v20 = vpop.f32.mrb[95].mxu1  ;;  %v3487_v1 = vld [vmem:[%s4151_s4 + $0x158] sm:$0xff] }
 0x670   : > { %2592 = vst [vmem:[%s4877_s29 + $0xa8] sm:$0xff] %v2465_v52  ;;  %v2469_v17 = vadd.f32 %v3467_v55, %v2468_v20  ;;  %v3488_v20 = vld [vmem:[%s4151_s4 + $0x160] sm:$0xff] }
 0x671   : > { %2593 = vst [vmem:[%s4877_s29 + $0xb0] sm:$0xff] %v2467_v49 }
 0x672   : > { %2594 = vst [vmem:[%s4877_s29 + $0xb8] sm:$0xff] %v2469_v17 }
 0x674   : > { %v2472_v39 = vpop.f32.mrb[96].mxu1 }
 0x675   : > { %v2473_v36 = vadd.f32 %v3468_v25, %v2472_v39  ;;  %v2474_v37 = vpop.f32.mrb[97].mxu1  ;;  %v3489_v39 = vld [vmem:[%s4151_s4 + $0x168] sm:$0xff] }
 0x676   : > { %v2475_v38 = vadd.f32 %v3469_v5, %v2474_v37  ;;  %v2476_v30 = vpop.f32.mrb[98].mxu1  ;;  %v3490_v37 = vld [vmem:[%s4151_s4 + $0x170] sm:$0xff] }
 0x677   : > { %2595 = vst [vmem:[%s4877_s29 + $0xc0] sm:$0xff] %v2473_v36  ;;  %v2477_v27 = vadd.f32 %v3470_v11, %v2476_v30  ;;  %v2478_v58 = vpop.f32.mrb[99].mxu1  ;;  %v3491_v30 = vld [vmem:[%s4151_s4 + $0x178] sm:$0xff] }
 0x678   : > { %2596 = vst [vmem:[%s4877_s29 + $0xc8] sm:$0xff] %v2475_v38  ;;  %v2479_v51 = vadd.f32 %v3471_v22, %v2478_v58  ;;  %v3492_v58 = vld [vmem:[%s4151_s4 + $0x180] sm:$0xff] }
 0x679   : > { %2597 = vst [vmem:[%s4877_s29 + $0xd0] sm:$0xff] %v2477_v27 }
 0x67a   : > { %2598 = vst [vmem:[%s4877_s29 + $0xd8] sm:$0xff] %v2479_v51 }
 0x67c   : > { %v2482_v57 = vpop.f32.mrb[100].mxu1 }
 0x67d   : > { %v2483_v44 = vadd.f32 %v3472_v9, %v2482_v57  ;;  %v2484_v31 = vpop.f32.mrb[101].mxu1  ;;  %v3493_v57 = vld [vmem:[%s4151_s4 + $0x188] sm:$0xff] }
 0x67e   : > { %v2485_v47 = vadd.f32 %v3473_v54, %v2484_v31  ;;  %v2486_v61 = vpop.f32.mrb[102].mxu1  ;;  %v3494_v31 = vld [vmem:[%s4151_s4 + $0x190] sm:$0xff] }
 0x67f   : > { %2599 = vst [vmem:[%s4877_s29 + $0xe0] sm:$0xff] %v2483_v44  ;;  %v2487_v0 = vadd.f32 %v3474_v42, %v2486_v61  ;;  %v2488_v14 = vpop.f32.mrb[103].mxu1  ;;  %v3495_v61 = vld [vmem:[%s4151_s4 + $0x198] sm:$0xff] }
 0x680   : > { %2600 = vst [vmem:[%s4877_s29 + $0xe8] sm:$0xff] %v2485_v47  ;;  %v2489_v26 = vadd.f32 %v3475_v21, %v2488_v14  ;;  %v3496_v14 = vld [vmem:[%s4151_s4 + $0x1a0] sm:$0xff] }
 0x681   : > { %2601 = vst [vmem:[%s4877_s29 + $0xf0] sm:$0xff] %v2487_v0 }
 0x682   : > { %2602 = vst [vmem:[%s4877_s29 + $0xf8] sm:$0xff] %v2489_v26 }
 0x684   : > { %v2492_v33 = vpop.f32.mrb[104].mxu1 }
 0x685   : > { %v2493_v12 = vadd.f32 %v3476_v3, %v2492_v33  ;;  %v2494_v23 = vpop.f32.mrb[105].mxu1  ;;  %v3497_v33 = vld [vmem:[%s4151_s4 + $0x1a8] sm:$0xff] }
 0x686   : > { %v2495_v24 = vadd.f32 %v3477_v7, %v2494_v23  ;;  %v2496_v41 = vpop.f32.mrb[106].mxu1  ;;  %v3498_v23 = vld [vmem:[%s4151_s4 + $0x1b0] sm:$0xff] }
 0x687   : > { %2603 = vst [vmem:[%s4877_s29 + $0x100] sm:$0xff] %v2493_v12  ;;  %v2497_v63 = vadd.f32 %v3478_v8, %v2496_v41  ;;  %v2498_v4 = vpop.f32.mrb[107].mxu1  ;;  %v3499_v41 = vld [vmem:[%s4151_s4 + $0x1b8] sm:$0xff] }
 0x688   : > { %2604 = vst [vmem:[%s4877_s29 + $0x108] sm:$0xff] %v2495_v24  ;;  %v2499_v18 = vadd.f32 %v3479_v46, %v2498_v4  ;;  %v3500_v4 = vld [vmem:[%s4151_s4 + $0x1c0] sm:$0xff] }
 0x689   : > { %2605 = vst [vmem:[%s4877_s29 + $0x110] sm:$0xff] %v2497_v63 }
 0x68a   : > { %2606 = vst [vmem:[%s4877_s29 + $0x118] sm:$0xff] %v2499_v18 }
 0x68c   : > { %v2502_v40 = vpop.f32.mrb[108].mxu1 }
 0x68d   : > { %v2503_v50 = vadd.f32 %v3480_v43, %v2502_v40  ;;  %v2504_v53 = vpop.f32.mrb[109].mxu1  ;;  %v3501_v40 = vld [vmem:[%s4151_s4 + $0x1c8] sm:$0xff] }
 0x68e   : > { %v2505_v59 = vadd.f32 %v3481_v15, %v2504_v53  ;;  %v2506_v60 = vpop.f32.mrb[110].mxu1  ;;  %v3502_v53 = vld [vmem:[%s4151_s4 + $0x1d0] sm:$0xff] }
 0x68f   : > { %2607 = vst [vmem:[%s4877_s29 + $0x120] sm:$0xff] %v2503_v50  ;;  %v2507_v16 = vadd.f32 %v3482_v45, %v2506_v60  ;;  %v2508_v62 = vpop.f32.mrb[111].mxu1  ;;  %v3503_v60 = vld [vmem:[%s4151_s4 + $0x1d8] sm:$0xff] }
 0x690   : > { %2608 = vst [vmem:[%s4877_s29 + $0x128] sm:$0xff] %v2505_v59  ;;  %v2509_v13 = vadd.f32 %v3483_v2, %v2508_v62  ;;  %v3504_v62 = vld [vmem:[%s4151_s4 + $0x1e0] sm:$0xff] }
 0x691   : > { %2609 = vst [vmem:[%s4877_s29 + $0x130] sm:$0xff] %v2507_v16 }
 0x692   : > { %2610 = vst [vmem:[%s4877_s29 + $0x138] sm:$0xff] %v2509_v13 }
 0x694   : > { %v2512_v34 = vpop.f32.mrb[112].mxu1 }
 0x695   : > { %v2513_v56 = vadd.f32 %v3484_v48, %v2512_v34  ;;  %v2514_v32 = vpop.f32.mrb[113].mxu1  ;;  %v3505_v34 = vld [vmem:[%s4151_s4 + $0x1e8] sm:$0xff] }
 0x696   : > { %v2515_v19 = vadd.f32 %v3485_v6, %v2514_v32  ;;  %v2516_v10 = vpop.f32.mrb[114].mxu1  ;;  %v3506_v32 = vld [vmem:[%s4151_s4 + $0x1f0] sm:$0xff] }
 0x697   : > { %2611 = vst [vmem:[%s4877_s29 + $0x140] sm:$0xff] %v2513_v56  ;;  %v2517_v35 = vadd.f32 %v3486_v28, %v2516_v10  ;;  %v2518_v52 = vpop.f32.mrb[115].mxu1  ;;  %v3507_v10 = vld [vmem:[%s4151_s4 + $0x1f8] sm:$0xff] }
 0x698   : > { %2612 = vst [vmem:[%s4877_s29 + $0x148] sm:$0xff] %v2515_v19  ;;  %v2519_v29 = vadd.f32 %v3487_v1, %v2518_v52 }
 0x699   : > { %2613 = vst [vmem:[%s4877_s29 + $0x150] sm:$0xff] %v2517_v35 }
 0x69a   : > { %2614 = vst [vmem:[%s4877_s29 + $0x158] sm:$0xff] %v2519_v29 }
 0x69c   : > { %v2522_v49 = vpop.f32.mrb[116].mxu1 }
 0x69d   : > { %v2523_v55 = vadd.f32 %v3488_v20, %v2522_v49  ;;  %v2524_v17 = vpop.f32.mrb[117].mxu1 }
 0x69e   : > { %v2525_v25 = vadd.f32 %v3489_v39, %v2524_v17  ;;  %v2526_v36 = vpop.f32.mrb[118].mxu1 }
 0x69f   : > { %2615 = vst [vmem:[%s4877_s29 + $0x160] sm:$0xff] %v2523_v55  ;;  %v2527_v5 = vadd.f32 %v3490_v37, %v2526_v36  ;;  %v2528_v38 = vpop.f32.mrb[119].mxu1 }
 0x6a0   : > { %2616 = vst [vmem:[%s4877_s29 + $0x168] sm:$0xff] %v2525_v25  ;;  %v2529_v11 = vadd.f32 %v3491_v30, %v2528_v38 }
 0x6a1   : > { %2617 = vst [vmem:[%s4877_s29 + $0x170] sm:$0xff] %v2527_v5 }
 0x6a2   : > { %2618 = vst [vmem:[%s4877_s29 + $0x178] sm:$0xff] %v2529_v11 }
 0x6e4   : > { %v2532_v27 = vpop.f32.mrb[120].mxu1 }
 0x6e5   : > { %v2533_v22 = vadd.f32 %v3492_v58, %v2532_v27  ;;  %v2534_v51 = vpop.f32.mrb[121].mxu1 }
 0x6e6   : > { %v2535_v9 = vadd.f32 %v3493_v57, %v2534_v51  ;;  %v2536_v44 = vpop.f32.mrb[122].mxu1 }
 0x6e7   : > { %2619 = vst [vmem:[%s4877_s29 + $0x180] sm:$0xff] %v2533_v22  ;;  %v2537_v54 = vadd.f32 %v3494_v31, %v2536_v44  ;;  %v2538_v47 = vpop.f32.mrb[123].mxu1 }
 0x6e8   : > { %2620 = vst [vmem:[%s4877_s29 + $0x188] sm:$0xff] %v2535_v9  ;;  %v2539_v42 = vadd.f32 %v3495_v61, %v2538_v47 }
 0x6e9   : > { %2621 = vst [vmem:[%s4877_s29 + $0x190] sm:$0xff] %v2537_v54 }
 0x6ea   : > { %2622 = vst [vmem:[%s4877_s29 + $0x198] sm:$0xff] %v2539_v42 }
 0x6ec   : > { %v2542_v0 = vpop.f32.mrb[124].mxu1 }
 0x6ed   : > { %v2543_v21 = vadd.f32 %v3496_v14, %v2542_v0  ;;  %v2544_v26 = vpop.f32.mrb[125].mxu1 }
 0x6ee   : > { %v2545_v3 = vadd.f32 %v3497_v33, %v2544_v26  ;;  %v2546_v12 = vpop.f32.mrb[126].mxu1 }
 0x6ef   : > { %2623 = vst [vmem:[%s4877_s29 + $0x1a0] sm:$0xff] %v2543_v21  ;;  %v2547_v7 = vadd.f32 %v3498_v23, %v2546_v12  ;;  %v2548_v24 = vpop.f32.mrb[127].mxu1 }
 0x6f0   : > { %2624 = vst [vmem:[%s4877_s29 + $0x1a8] sm:$0xff] %v2545_v3  ;;  %v2549_v8 = vadd.f32 %v3499_v41, %v2548_v24 }
 0x6f1   : > { %2625 = vst [vmem:[%s4877_s29 + $0x1b0] sm:$0xff] %v2547_v7 }
 0x6f2   : > { %2626 = vst [vmem:[%s4877_s29 + $0x1b8] sm:$0xff] %v2549_v8 }
 0x6f5   : > { %v2552_v63 = vpop.f32.mrb[128].mxu1 }
 0x6f6   : > { %v2553_v46 = vadd.f32 %v3500_v4, %v2552_v63  ;;  %v2554_v18 = vpop.f32.mrb[129].mxu1 }
 0x6f7   : > { %v2555_v43 = vadd.f32 %v3501_v40, %v2554_v18  ;;  %v2556_v50 = vpop.f32.mrb[130].mxu1 }
 0x6f8   : > { %2627 = vst [vmem:[%s4877_s29 + $0x1c0] sm:$0xff] %v2553_v46  ;;  %v2557_v15 = vadd.f32 %v3502_v53, %v2556_v50  ;;  %v2558_v59 = vpop.f32.mrb[131].mxu1 }
 0x6f9   : > { %2628 = vst [vmem:[%s4877_s29 + $0x1c8] sm:$0xff] %v2555_v43  ;;  %v2559_v45 = vadd.f32 %v3503_v60, %v2558_v59 }
 0x6fa   : > { %2629 = vst [vmem:[%s4877_s29 + $0x1d0] sm:$0xff] %v2557_v15 }
 0x6fb   : > { %2630 = vst [vmem:[%s4877_s29 + $0x1d8] sm:$0xff] %v2559_v45 }
 0x6fd   : > { %v2562_v16 = vpop.f32.mrb[132].mxu1 }
 0x6fe   : > { %v2563_v2 = vadd.f32 %v3504_v62, %v2562_v16  ;;  %v2564_v13 = vpop.f32.mrb[133].mxu1 }
 0x6ff   : > { %v2565_v48 = vadd.f32 %v3505_v34, %v2564_v13  ;;  %v2566_v56 = vpop.f32.mrb[134].mxu1 }
 0x700   : > { %2631 = vst [vmem:[%s4877_s29 + $0x1e0] sm:$0xff] %v2563_v2  ;;  %v2567_v6 = vadd.f32 %v3506_v32, %v2566_v56  ;;  %v2568_v19 = vpop.f32.mrb[135].mxu1 }
 0x701   : > { %2632 = vst [vmem:[%s4877_s29 + $0x1e8] sm:$0xff] %v2565_v48  ;;  %v2569_v28 = vadd.f32 %v3507_v10, %v2568_v19 }
 0x702   : > { %2633 = vst [vmem:[%s4877_s29 + $0x1f0] sm:$0xff] %v2567_v6 }
 0x703   : > { %2634 = vst [vmem:[%s4877_s29 + $0x1f8] sm:$0xff] %v2569_v28 }
 0x704   : > { %3665 = shalt.err (!%p3662_p2)
}
 0x705   : > { %s3666_s4 = scalar_lea.hbm %s5007_s9, 8192  ;;  %s3670_s7 = scalar_lea.hbm %s5225_s8, 32768 }
 0x706   : > { %p3667_p11 = scmp.ne.s32.totalorder %s5007_s9, %s3666_s4  ;;  %p3671_p10 = scmp.lt.u32.totalorder %s5007_s9, %s5225_s8 }
 0x707   : > { %p3672_p13 = scmp.lt.u32.totalorder %s3670_s7, %s3666_s4  ;;  %p3674_p0 = scmp.lt.u32.totalorder %s3666_s4, %s5007_s9 }
 0x708   : > { %p3668_p5 = pnand %p3667_p11, %p4012_p8 }
 0x709   : > { %p3673_p9 = por %p3672_p13, %p3671_p10 }
 0x70a   : > { %p3669_p3 = pneg %p3668_p5 }
 0x70b   : > { %p3675_p12 = por %p3674_p0, %p3673_p9 }
 0x70d   : > { %p3676_p7 = pnand %p3675_p12, %p3669_p3 }
 0x70f   : > { %3679 = shalt.err (!%p3676_p7)
}
 0x710   : > { %s3799_s17 = smov 256   ;;  %s3800_s3 = smov 16  }
 0x711   : > { %2989 = dma.vmem_to_hbm [thread:$0]  (%p4012_p8), %s5009_s15, 8192, %s5007_s9, %s2636_s16, %s3799_s17, %s3799_s17, %s3800_s3  }
 0x712 PF: > { %s5226_s14 = sld [smem:[#allocation17_spill]]  ;;  %s5227_s18 = sld [smem:[#allocation21_spill]] }
 0x713   : > { %p3019_p1 = scmp.ge.s32.totalorder %s3786_s28, 2 }
 0x718   : > { %s2667_s24 = sand.u32 1, %s5226_s14   ;;  %p5228_p4 = scmp.ne.s32.totalorder %s5227_s18, 0 }
 0x719   : > { %s2668_s2 = scalar_lea.sflag [#allocation4], %s2667_s24 }
 0x71a   : > { %p3009_p6 = pnand %p3019_p1, %p5228_p4 }
 0x71c   : > { %3741 = dma.done.wait (!%p3009_p6), %s2668_s2, 8192  }
 0x71d   : > { %3743 = vsyncadd (!%p3009_p6), %s2668_s2, 4294959104  ;;  %s25_s28 = sadd.s32 1, %s3786_s28   ;;  %s5229_s10 = sld [smem:[#allocation22_spill]] }
 0x71e   : > { %p22_p2 = scmp.ge.s32.totalorder %s25_s28, 6   ;;  %s5230_s15 = sld [smem:[#allocation24_spill]] }
 0x71f   : > { %s5231_s18 = smov %s3750_s19  ;;  %s5232_s19 = smov %s3754_s20 }
 0x720   : > { %s5233_s20 = smov %s4090_s25  ;;  %s5234_s21 = smov %s3762_s22 }
 0x721   : > { %s5235_s22 = smov %s3766_s23  ;;  %s5236_s23 = smov %s4035_s5 }
 0x722   : > { %s5237_s24 = smov %s3778_s26  ;;  %s5238_s25 = smov %s3782_s27 }
 0x723   : > { %s5239_s26 = smov %s5229_s10  ;;  %24 = sbr.rel (!%p22_p2) target bundleno = 17 (0x11), region = 110 }
 0x724   : > { %s5240_s27 = smov %s5230_s15 }
 0x72a   :  { %2673 = vsyncpa [#allocation3], 1 }
 0x72b   :  { %2675 = vsyncpa [#allocation3 + $0x1], 1 }
 0x72c   :  { %2676 = vsyncpa [#allocation6], 1 }
 0x72d   :  { %2678 = vsyncpa [#allocation6 + $0x1], 1 }
 0x72e   :  { %2679 = vsyncpa [#allocation9], 1 }
 0x72f   :  { %2680 = vsyncpa [#allocation4], 1 }
 0x730   :  { %2682 = vsyncpa [#allocation4 + $0x1], 1 }

</bundles_post_ra>
